<compile_context>
chip_gen: v7x
topology: tpu7x:2x2x1
jax: 0.10.0
libtpu: 0.0.40
codegen_flags: <defaults>
</compile_context>

<pallas_src>
import functools
import math

import jax
import jax.numpy as jnp
from jax.experimental import pallas as pl
from jax.experimental.pallas import tpu as pltpu


# ----------------------------- helpers ---------------------------------------

def _round_up(x, m):
    return ((x + m - 1) // m) * m


_VMEM_TILE_BUDGET = 24 * 1024 * 1024   # double-buffered tile budget (fits v7x 64 MiB physical)
_VMEM_LIMIT = 32 * 1024 * 1024


# ----------------- Pallas kernels: matmul + bias + ReLU (fused) ---------------

def _mm_fused_fullk_kernel(a_ref, b_ref, bias_ref, o_ref, *, relu):
    # Single K pass: no accumulator scratch, output written exactly once.
    y = jnp.dot(a_ref[...], b_ref[...], preferred_element_type=jnp.float32)
    y = y + bias_ref[...]                       # (tm,tn) + (1,tn), f32 epilogue
    if relu:
        y = jnp.maximum(y, 0.0)
    o_ref[...] = y.astype(o_ref.dtype)


def _mm_fused_kstep_kernel(a_ref, b_ref, bias_ref, o_ref, acc_ref, *, relu):
    @pl.when(pl.program_id(2) == 0)
    def _():
        acc_ref[...] = jnp.zeros_like(acc_ref)

    acc_ref[...] += jnp.dot(a_ref[...], b_ref[...],
                            preferred_element_type=jnp.float32)

    @pl.when(pl.program_id(2) == pl.num_programs(2) - 1)
    def _():
        y = acc_ref[...] + bias_ref[...]
        if relu:
            y = jnp.maximum(y, 0.0)
        o_ref[...] = y.astype(o_ref.dtype)


def matmul_bias_act(a, b, bias, relu=True, out_dtype=jnp.float32):
    """(M,K) @ (K,N) + bias[N], optional ReLU.  MXU operands in bf16, f32 accumulate/epilogue."""
    M, K = a.shape
    K2, N = b.shape
    assert K == K2

    Kp = _round_up(K, 128)
    Np = _round_up(N, 128)
    tn = 512 if Np % 512 == 0 else (256 if Np % 256 == 0 else 128)
    tm = min(512, _round_up(M, 8))
    Mp = _round_up(M, tm)

    a_p = a.astype(jnp.bfloat16)
    if a_p.shape != (Mp, Kp):                   # callers pre-pad K; avoids a full-buffer copy
        a_p = jnp.pad(a_p, ((0, Mp - M), (0, Kp - K)))
    b_p = b.astype(jnp.bfloat16)
    if b_p.shape != (Kp, Np):
        b_p = jnp.pad(b_p, ((0, Kp - K), (0, Np - N)))
    bias_p = bias.astype(jnp.float32).reshape(1, -1)
    if bias_p.shape != (1, Np):
        bias_p = jnp.pad(bias_p, ((0, 0), (0, Np - bias_p.shape[1])))

    def vmem_bytes(tk):
        # double-buffered bf16 A/B tiles + double-buffered output tile + bias
        return 2 * (tm * tk + tk * tn) * 2 + 2 * tm * tn * 4 + 2 * tn * 4

    if vmem_bytes(Kp) <= _VMEM_TILE_BUDGET:
        out = pl.pallas_call(
            functools.partial(_mm_fused_fullk_kernel, relu=relu),
            out_shape=jax.ShapeDtypeStruct((Mp, Np), out_dtype),
            grid_spec=pltpu.PrefetchScalarGridSpec(
                num_scalar_prefetch=0,
                grid=(Mp // tm, Np // tn),
                in_specs=[pl.BlockSpec((tm, Kp), lambda i, j: (i, 0)),
                          pl.BlockSpec((Kp, tn), lambda i, j: (0, j)),
                          pl.BlockSpec((1, tn), lambda i, j: (0, j))],
                out_specs=pl.BlockSpec((tm, tn), lambda i, j: (i, j))),
            compiler_params=pltpu.CompilerParams(
                dimension_semantics=("parallel", "parallel"),
                vmem_limit_bytes=_VMEM_LIMIT),
        )(a_p, b_p, bias_p)
    else:
        # Fallback: K-stepped accumulator.  Pick the largest tk (multiple of 128, divisor of Kp)
        # that fits the VMEM budget.
        nk = Kp // 128
        d = 1
        for cand in range(nk, 0, -1):
            if nk % cand == 0 and vmem_bytes(128 * cand) <= _VMEM_TILE_BUDGET:
                d = cand
                break
        tk = 128 * d
        out = pl.pallas_call(
            functools.partial(_mm_fused_kstep_kernel, relu=relu),
            out_shape=jax.ShapeDtypeStruct((Mp, Np), out_dtype),
            grid_spec=pltpu.PrefetchScalarGridSpec(
                num_scalar_prefetch=0,
                grid=(Mp // tm, Np // tn, Kp // tk),
                in_specs=[pl.BlockSpec((tm, tk), lambda i, j, k: (i, k)),
                          pl.BlockSpec((tk, tn), lambda i, j, k: (k, j)),
                          pl.BlockSpec((1, tn), lambda i, j, k: (0, j))],
                out_specs=pl.BlockSpec((tm, tn), lambda i, j, k: (i, j)),
                scratch_shapes=[pltpu.VMEM((tm, tn), jnp.float32)]),
            compiler_params=pltpu.CompilerParams(
                dimension_semantics=("parallel", "parallel", "arbitrary"),
                vmem_limit_bytes=_VMEM_LIMIT),
        )(a_p, b_p, bias_p)
    return out[:M, :N]


# ------------------- Pallas kernel: |a-b| / (a-b)^2 mean reduction ------------

def _diff_reduce_kernel(a_ref, b_ref, o_ref, acc_ref, *, square):
    @pl.when(pl.program_id(1) == 0)
    def _():
        acc_ref[...] = jnp.zeros_like(acc_ref)

    d = a_ref[...].astype(jnp.float32) - b_ref[...].astype(jnp.float32)
    v = d * d if square else jnp.abs(d)
    acc_ref[...] += jnp.sum(v, axis=0, keepdims=True)   # (1, LANE) lane partials

    @pl.when(pl.program_id(1) == pl.num_programs(1) - 1)
    def _():
        o_ref[...] = acc_ref[...]


_RED_LANE = 512      # lane-dense 512-wide blocks
_RED_SHARDS = 2      # leading "parallel" shard axis: splits across v7x's two TensorCores


def mean_diff(a, b, square=False):
    """mean(|a-b|) or mean((a-b)^2) over all elements via a tiled Pallas reduction."""
    count = a.size
    af = a.reshape(-1)
    bf = b.reshape(-1)
    rows = -(-count // _RED_LANE)
    tm = min(1024, _round_up(rows, 8))
    Mp = _round_up(rows, _RED_SHARDS * tm)
    total = Mp * _RED_LANE
    af = jnp.pad(af, (0, total - count)).reshape(Mp, _RED_LANE)   # single pad; zeros contribute 0
    bf = jnp.pad(bf, (0, total - count)).reshape(Mp, _RED_LANE)
    tiles_per_shard = Mp // (_RED_SHARDS * tm)

    partial = pl.pallas_call(
        functools.partial(_diff_reduce_kernel, square=square),
        out_shape=jax.ShapeDtypeStruct((1, _RED_SHARDS * _RED_LANE), jnp.float32),
        grid_spec=pltpu.PrefetchScalarGridSpec(
            num_scalar_prefetch=0,
            grid=(_RED_SHARDS, tiles_per_shard),
            in_specs=[pl.BlockSpec((tm, _RED_LANE),
                                   lambda c, i: (c * tiles_per_shard + i, 0)),
                      pl.BlockSpec((tm, _RED_LANE),
                                   lambda c, i: (c * tiles_per_shard + i, 0))],
            out_specs=pl.BlockSpec((1, _RED_LANE), lambda c, i: (0, c)),
            scratch_shapes=[pltpu.VMEM((1, _RED_LANE), jnp.float32)]),
        compiler_params=pltpu.CompilerParams(
            dimension_semantics=("parallel", "arbitrary")),
    )(af, bf)
    return jnp.sum(partial) / jnp.float32(count)


# ----------------------------- VGG19 feature stack ---------------------------

IMAGENET_MEAN = jnp.array([0.485, 0.456, 0.406], jnp.float32)
IMAGENET_STD = jnp.array([0.229, 0.224, 0.225], jnp.float32)

VGG19_CFG = [64, 64, "M", 128, 128, "M", 256, 256, 256, 256, "M",
             512, 512, 512, 512, "M", 512, 512, 512, 512, "M"]


def vgg19_feature_layers():
    layers, in_c = [], 3
    for v in VGG19_CFG:
        if v == "M":
            layers.append(("pool", None, None))
        else:
            layers.append(("conv", in_c, v))
            layers.append(("relu", None, None))
            in_c = v
    return layers


def init_vgg_params(perceptual_layers, key):
    layers = vgg19_feature_layers()[:perceptual_layers + 1]
    params = []
    for kind, cin, cout in layers:
        if kind == "conv":
            key, kw, kb = jax.random.split(key, 3)
            scale = math.sqrt(2.0 / (cin * 9))
            w = scale * jax.random.normal(kw, (cout, cin, 3, 3), jnp.float32)
            b = 0.05 * jax.random.normal(kb, (cout,), jnp.float32)
            params.append({"w": w, "b": b})
        else:
            params.append(None)
    return layers, params


def conv3x3(x_nhwc, w_oihw, bias, relu, out_dtype):
    """PyTorch-equivalent Conv2d(k=3, pad=1) via bf16 im2col + fused Pallas matmul (NHWC)."""
    N, H, W, C = x_nhwc.shape
    O, Cin, kh, kw = w_oihw.shape
    assert C == Cin and kh == 3 and kw == 3
    K = 9 * C
    Kp = _round_up(K, 128)
    # Build the im2col patches directly in bf16 and already K-aligned: a single
    # concatenate produces the padded (M, Kp) operand, so the matmul wrapper does
    # no extra full-buffer pad copy and A DMA bytes are halved vs f32.
    xp = jnp.pad(x_nhwc.astype(jnp.bfloat16), ((0, 0), (1, 1), (1, 1), (0, 0)))
    cols = [xp[:, ky:ky + H, kx:kx + W, :] for ky in range(3) for kx in range(3)]
    if Kp > K:
        cols.append(jnp.zeros((N, H, W, Kp - K), jnp.bfloat16))
    patches = jnp.concatenate(cols, axis=-1).reshape(N * H * W, Kp)
    # (O,C,3,3) -> (3,3,C,O) -> (9C,O), K-padded, bf16 (tiny relative to activations)
    wmat = jnp.transpose(w_oihw, (2, 3, 1, 0)).reshape(K, O)
    wmat = jnp.pad(wmat, ((0, Kp - K), (0, 0))).astype(jnp.bfloat16)
    y = matmul_bias_act(patches, wmat, bias, relu=relu, out_dtype=out_dtype)
    return y.reshape(N, H, W, O)


def vgg_submodel_forward(x_nhwc, layers, params):
    # Intermediate conv outputs are written bf16 (they only feed the next conv/pool);
    # the final conv's output (feeding the loss reduction) stays f32.
    last_conv = max((i for i, l in enumerate(layers) if l[0] == "conv"), default=-1)
    h = x_nhwc
    i, n = 0, len(layers)
    while i < n:
        kind = layers[i][0]
        if kind == "conv":
            fuse_relu = (i + 1 < n) and layers[i + 1][0] == "relu"
            out_dtype = jnp.float32 if i == last_conv else jnp.bfloat16
            h = conv3x3(h, params[i]["w"], params[i]["b"], relu=fuse_relu,
                        out_dtype=out_dtype)
            i += 2 if fuse_relu else 1
        elif kind == "relu":
            h = jnp.maximum(h, 0.0)     # only reached if not fused into a conv
            i += 1
        else:                           # MaxPool2d(kernel=2, stride=2) — tiny JAX glue
            N, H, W, C = h.shape
            h = h.reshape(N, H // 2, 2, W // 2, 2, C).max(axis=(2, 4))
            i += 1
    return h


# ----------------------------- loss forward -----------------------------------

def l1_plus_perceptual_loss(inputs, targets, layers, vgg_params,
                            lambda_L1, lambda_perceptual, percep_is_l1):
    if lambda_L1 == 0 and lambda_perceptual == 0:
        z = jnp.zeros((1,), jnp.float32)
        return z, z, z

    loss_l1 = mean_diff(inputs, targets, square=False) * lambda_L1

    # ImageNet normalization on the raw 3-channel images (tiny elementwise glue),
    # then run fake+real through the VGG submodel in one batched pass.
    mean = IMAGENET_MEAN.reshape(1, 1, 1, 3)
    std = IMAGENET_STD.reshape(1, 1, 1, 3)
    x_nhwc = jnp.transpose(jnp.concatenate([inputs, targets], axis=0), (0, 2, 3, 1))
    x_norm = ((x_nhwc + 1.0) * 0.5 - mean) / std

    feats = vgg_submodel_forward(x_norm, layers, vgg_params)
    n = inputs.shape[0]
    f_fake, f_real = feats[:n], jax.lax.stop_gradient(feats[n:])   # .detach()

    # TODO(synk): optionally fuse |f_fake - f_real| into the final conv's epilogue to save
    # one HBM write + two reads of the feature map (skipped; moderate complexity).
    loss_perceptual = mean_diff(f_fake, f_real,
                                square=(percep_is_l1 != 1)) * lambda_perceptual
    loss = loss_l1 + loss_perceptual
    return loss, loss_l1, loss_perceptual


# ---------------------------------- main ---------------------------------------

if __name__ == "__main__":
    key = jax.random.PRNGKey(0)
    k_in, k_tgt, k_vgg = jax.random.split(key, 3)

    N, C, H, W = 2, 3, 16, 16
    # generator outputs / targets live in [-1, 1] like the PyTorch pipeline
    inputs = jax.random.uniform(k_in, (N, C, H, W), jnp.float32, -1.0, 1.0)
    targets = jax.random.uniform(k_tgt, (N, C, H, W), jnp.float32, -1.0, 1.0)

    lambda_L1 = 1.0
    lambda_perceptual = 1.0
    perceptual_layers = 3          # VGG19 features[0..3]: Conv-ReLU-Conv-ReLU
    percep_is_l1 = 1               # 1 -> L1 on features, else MSE

    layers, vgg_params = init_vgg_params(perceptual_layers, k_vgg)

    @jax.jit
    def run(inp, tgt, params):
        return l1_plus_perceptual_loss(inp, tgt, layers, params,
                                       lambda_L1, lambda_perceptual, percep_is_l1)

    loss, loss_l1, loss_p = jax.block_until_ready(run(inputs, targets, vgg_params))

    for v in (loss, loss_l1, loss_p):
        assert v.shape == (), v.shape
        assert bool(jnp.isfinite(v)), v
    assert bool(jnp.allclose(loss, loss_l1 + loss_p, rtol=1e-6, atol=1e-6))
    print("KERNEL_OK")
</pallas_src>

<mosaic_0001>
module attributes {stable_mosaic.version = 11 : i64} {
  func.func @_mm_fused_fullk_kernel(%arg0: i32, %arg1: i32, %arg2: memref<512x128xbf16, #tpu.memory_space<vmem>>, %arg3: memref<128x128xbf16, #tpu.memory_space<vmem>>, %arg4: memref<1x128xf32, #tpu.memory_space<vmem>>, %arg5: memref<512x128xbf16, #tpu.memory_space<vmem>>) attributes {dimension_semantics = [#tpu.dimension_semantics<parallel>, #tpu.dimension_semantics<parallel>], iteration_bounds = array<i64: 2, 1>, scalar_prefetch = 0 : i64, scratch_operands = 0 : i64, tpu.core_type = #tpu.core_type<tc>, window_params = [{transform_indices = @transform_0, window_bounds = array<i64: 512, 128>}, {transform_indices = @transform_1, window_bounds = array<i64: 128, 128>}, {transform_indices = @transform_2, window_bounds = array<i64: 1, 128>}, {transform_indices = @transform_3, window_bounds = array<i64: 512, 128>}]} {
    %c0 = arith.constant 0 : index
    %c0_0 = arith.constant 0 : index
    %0 = vector.load %arg2[%c0, %c0_0] : memref<512x128xbf16, #tpu.memory_space<vmem>>, vector<512x128xbf16>
    %c0_1 = arith.constant 0 : index
    %c0_2 = arith.constant 0 : index
    %1 = vector.load %arg3[%c0_1, %c0_2] : memref<128x128xbf16, #tpu.memory_space<vmem>>, vector<128x128xbf16>
    %cst = arith.constant dense<0.000000e+00> : vector<512x128xf32>
    %2 = tpu.matmul %0, %1, %cst {dimension_numbers = #tpu.dot_dimension_numbers<[1], [0], [0], [1], [0, 0, 1, 1], [], []>} : vector<512x128xbf16>, vector<128x128xbf16>, vector<512x128xf32> -> vector<512x128xf32>
    %c0_3 = arith.constant 0 : index
    %c0_4 = arith.constant 0 : index
    %3 = vector.load %arg4[%c0_3, %c0_4] : memref<1x128xf32, #tpu.memory_space<vmem>>, vector<1x128xf32>
    %4 = vector.broadcast %3 : vector<1x128xf32> to vector<512x128xf32>
    %5 = arith.addf %2, %4 : vector<512x128xf32>
    %cst_5 = arith.constant 0.000000e+00 : f32
    %6 = vector.broadcast %cst_5 : f32 to vector<512x128xf32>
    %7 = arith.maximumf %5, %6 : vector<512x128xf32>
    %8 = arith.truncf %7 : vector<512x128xf32> to vector<512x128xbf16>
    %c0_6 = arith.constant 0 : index
    %c0_7 = arith.constant 0 : index
    %9 = vector.load %arg5[%c0_6, %c0_7] : memref<512x128xbf16, #tpu.memory_space<vmem>>, vector<512x128xbf16>
    tpu.vector_store %arg5[%c0_6, %c0_7], %8 {strides = array<i32>} : memref<512x128xbf16, #tpu.memory_space<vmem>>, vector<512x128xbf16>,
    return
  }
  func.func @transform_0(%arg0: i32, %arg1: i32) -> (i32, i32) {
    %c0_i32 = arith.constant 0 : i32
    %c0_i32_0 = arith.constant 0 : i32
    return %arg0, %c0_i32 : i32, i32
  }
  func.func @transform_1(%arg0: i32, %arg1: i32) -> (i32, i32) {
    %c0_i32 = arith.constant 0 : i32
    %c0_i32_0 = arith.constant 0 : i32
    return %c0_i32, %arg1 : i32, i32
  }
  func.func @transform_2(%arg0: i32, %arg1: i32) -> (i32, i32) {
    %c0_i32 = arith.constant 0 : i32
    %c0_i32_0 = arith.constant 0 : i32
    return %c0_i32, %arg1 : i32, i32
  }
  func.func @transform_3(%arg0: i32, %arg1: i32) -> (i32, i32) {
    %c0_i32 = arith.constant 0 : i32
    return %arg0, %arg1 : i32, i32
  }
}

module attributes {stable_mosaic.version = 11 : i64} {
  func.func @_mm_fused_fullk_kernel(%arg0: i32, %arg1: i32, %arg2: memref<512x640xbf16, #tpu.memory_space<vmem>>, %arg3: memref<640x128xbf16, #tpu.memory_space<vmem>>, %arg4: memref<1x128xf32, #tpu.memory_space<vmem>>, %arg5: memref<512x128xf32, #tpu.memory_space<vmem>>) attributes {dimension_semantics = [#tpu.dimension_semantics<parallel>, #tpu.dimension_semantics<parallel>], iteration_bounds = array<i64: 2, 1>, scalar_prefetch = 0 : i64, scratch_operands = 0 : i64, tpu.core_type = #tpu.core_type<tc>, window_params = [{transform_indices = @transform_0, window_bounds = array<i64: 512, 640>}, {transform_indices = @transform_1, window_bounds = array<i64: 640, 128>}, {transform_indices = @transform_2, window_bounds = array<i64: 1, 128>}, {transform_indices = @transform_3, window_bounds = array<i64: 512, 128>}]} {
    %c0 = arith.constant 0 : index
    %c0_0 = arith.constant 0 : index
    %0 = vector.load %arg2[%c0, %c0_0] : memref<512x640xbf16, #tpu.memory_space<vmem>>, vector<512x640xbf16>
    %c0_1 = arith.constant 0 : index
    %c0_2 = arith.constant 0 : index
    %1 = vector.load %arg3[%c0_1, %c0_2] : memref<640x128xbf16, #tpu.memory_space<vmem>>, vector<640x128xbf16>
    %cst = arith.constant dense<0.000000e+00> : vector<512x128xf32>
    %2 = tpu.matmul %0, %1, %cst {dimension_numbers = #tpu.dot_dimension_numbers<[1], [0], [0], [1], [0, 0, 1, 1], [], []>} : vector<512x640xbf16>, vector<640x128xbf16>, vector<512x128xf32> -> vector<512x128xf32>
    %c0_3 = arith.constant 0 : index
    %c0_4 = arith.constant 0 : index
    %3 = vector.load %arg4[%c0_3, %c0_4] : memref<1x128xf32, #tpu.memory_space<vmem>>, vector<1x128xf32>
    %4 = vector.broadcast %3 : vector<1x128xf32> to vector<512x128xf32>
    %5 = arith.addf %2, %4 : vector<512x128xf32>
    %cst_5 = arith.constant 0.000000e+00 : f32
    %6 = vector.broadcast %cst_5 : f32 to vector<512x128xf32>
    %7 = arith.maximumf %5, %6 : vector<512x128xf32>
    %c0_6 = arith.constant 0 : index
    %c0_7 = arith.constant 0 : index
    %8 = vector.load %arg5[%c0_6, %c0_7] : memref<512x128xf32, #tpu.memory_space<vmem>>, vector<512x128xf32>
    tpu.vector_store %arg5[%c0_6, %c0_7], %7 {strides = array<i32>} : memref<512x128xf32, #tpu.memory_space<vmem>>, vector<512x128xf32>,
    return
  }
  func.func @transform_0(%arg0: i32, %arg1: i32) -> (i32, i32) {
    %c0_i32 = arith.constant 0 : i32
    %c0_i32_0 = arith.constant 0 : i32
    return %arg0, %c0_i32 : i32, i32
  }
  func.func @transform_1(%arg0: i32, %arg1: i32) -> (i32, i32) {
    %c0_i32 = arith.constant 0 : i32
    %c0_i32_0 = arith.constant 0 : i32
    return %c0_i32, %arg1 : i32, i32
  }
  func.func @transform_2(%arg0: i32, %arg1: i32) -> (i32, i32) {
    %c0_i32 = arith.constant 0 : i32
    %c0_i32_0 = arith.constant 0 : i32
    return %c0_i32, %arg1 : i32, i32
  }
  func.func @transform_3(%arg0: i32, %arg1: i32) -> (i32, i32) {
    %c0_i32 = arith.constant 0 : i32
    return %arg0, %arg1 : i32, i32
  }
}

module attributes {stable_mosaic.version = 11 : i64} {
  func.func @_diff_reduce_kernel(%arg0: i32, %arg1: i32, %arg2: memref<64x512xf32, #tpu.memory_space<vmem>>, %arg3: memref<64x512xf32, #tpu.memory_space<vmem>>, %arg4: memref<1x512xf32, #tpu.memory_space<vmem>>, %arg5: memref<1x512xf32, #tpu.memory_space<vmem>>) attributes {dimension_semantics = [#tpu.dimension_semantics<parallel>, #tpu.dimension_semantics<arbitrary>], iteration_bounds = array<i64: 2, 1>, scalar_prefetch = 0 : i64, scratch_operands = 1 : i64, tpu.core_type = #tpu.core_type<tc>, window_params = [{transform_indices = @transform_0, window_bounds = array<i64: 64, 512>}, {transform_indices = @transform_1, window_bounds = array<i64: 64, 512>}, {transform_indices = @transform_2, window_bounds = array<i64: 1, 512>}]} {
    %c0_i32 = arith.constant 0 : i32
    %0 = arith.cmpi eq, %arg1, %c0_i32 : i32
    %1 = arith.extui %0 : i1 to i32
    %c0_i32_0 = arith.constant 0 : i32
    %2 = arith.cmpi ne, %1, %c0_i32_0 : i32
    scf.if %2 {
      %cst_10 = arith.constant 0.000000e+00 : f32
      %15 = vector.broadcast %cst_10 : f32 to vector<1x512xf32>
      %c0_11 = arith.constant 0 : index
      %c0_12 = arith.constant 0 : index
      %16 = vector.load %arg5[%c0_11, %c0_12] : memref<1x512xf32, #tpu.memory_space<vmem>>, vector<1x512xf32>
      tpu.vector_store %arg5[%c0_11, %c0_12], %15 {strides = array<i32>} : memref<1x512xf32, #tpu.memory_space<vmem>>, vector<1x512xf32>,
    } else {
    }
    %c0 = arith.constant 0 : index
    %c0_1 = arith.constant 0 : index
    %3 = vector.load %arg2[%c0, %c0_1] : memref<64x512xf32, #tpu.memory_space<vmem>>, vector<64x512xf32>
    %c0_2 = arith.constant 0 : index
    %c0_3 = arith.constant 0 : index
    %4 = vector.load %arg3[%c0_2, %c0_3] : memref<64x512xf32, #tpu.memory_space<vmem>>, vector<64x512xf32>
    %5 = arith.subf %3, %4 : vector<64x512xf32>
    %6 = math.absf %5 : vector<64x512xf32>
    %c0_4 = arith.constant 0 : index
    %c0_5 = arith.constant 0 : index
    %7 = vector.load %arg5[%c0_4, %c0_5] : memref<1x512xf32, #tpu.memory_space<vmem>>, vector<1x512xf32>
    %cst = arith.constant dense<0.000000e+00> : vector<512xf32>
    %8 = vector.multi_reduction <add>, %6, %cst [0] : vector<64x512xf32> to vector<512xf32>
    %9 = vector.shape_cast %8 : vector<512xf32> to vector<1x512xf32>
    %10 = arith.addf %7, %9 : vector<1x512xf32>
    %c0_6 = arith.constant 0 : index
    %c0_7 = arith.constant 0 : index
    %11 = vector.load %arg5[%c0_6, %c0_7] : memref<1x512xf32, #tpu.memory_space<vmem>>, vector<1x512xf32>
    tpu.vector_store %arg5[%c0_6, %c0_7], %10 {strides = array<i32>} : memref<1x512xf32, #tpu.memory_space<vmem>>, vector<1x512xf32>,
    %c0_i32_8 = arith.constant 0 : i32
    %12 = arith.cmpi eq, %arg1, %c0_i32_8 : i32
    %13 = arith.extui %12 : i1 to i32
    %c0_i32_9 = arith.constant 0 : i32
    %14 = arith.cmpi ne, %13, %c0_i32_9 : i32
    scf.if %14 {
      %c0_10 = arith.constant 0 : index
      %c0_11 = arith.constant 0 : index
      %15 = vector.load %arg5[%c0_10, %c0_11] : memref<1x512xf32, #tpu.memory_space<vmem>>, vector<1x512xf32>
      %c0_12 = arith.constant 0 : index
      %c0_13 = arith.constant 0 : index
      %16 = vector.load %arg4[%c0_12, %c0_13] : memref<1x512xf32, #tpu.memory_space<vmem>>, vector<1x512xf32>
      tpu.vector_store %arg4[%c0_12, %c0_13], %15 {strides = array<i32>} : memref<1x512xf32, #tpu.memory_space<vmem>>, vector<1x512xf32>,
    } else {
    }
    return
  }
  func.func @transform_0(%arg0: i32, %arg1: i32) -> (i32, i32) {
    %c1_i32 = arith.constant 1 : i32
    %0 = arith.muli %arg0, %c1_i32 : i32
    %1 = arith.addi %0, %arg1 : i32
    %c0_i32 = arith.constant 0 : i32
    %c0_i32_0 = arith.constant 0 : i32
    return %1, %c0_i32 : i32, i32
  }
  func.func @transform_1(%arg0: i32, %arg1: i32) -> (i32, i32) {
    %c1_i32 = arith.constant 1 : i32
    %0 = arith.muli %arg0, %c1_i32 : i32
    %1 = arith.addi %0, %arg1 : i32
    %c0_i32 = arith.constant 0 : i32
    %c0_i32_0 = arith.constant 0 : i32
    return %1, %c0_i32 : i32, i32
  }
  func.func @transform_2(%arg0: i32, %arg1: i32) -> (i32, i32) {
    %c0_i32 = arith.constant 0 : i32
    %c0_i32_0 = arith.constant 0 : i32
    return %c0_i32, %arg0 : i32, i32
  }
}

module attributes {stable_mosaic.version = 11 : i64} {
  func.func @_diff_reduce_kernel(%arg0: i32, %arg1: i32, %arg2: memref<8x512xf32, #tpu.memory_space<vmem>>, %arg3: memref<8x512xf32, #tpu.memory_space<vmem>>, %arg4: memref<1x512xf32, #tpu.memory_space<vmem>>, %arg5: memref<1x512xf32, #tpu.memory_space<vmem>>) attributes {dimension_semantics = [#tpu.dimension_semantics<parallel>, #tpu.dimension_semantics<arbitrary>], iteration_bounds = array<i64: 2, 1>, scalar_prefetch = 0 : i64, scratch_operands = 1 : i64, tpu.core_type = #tpu.core_type<tc>, window_params = [{transform_indices = @transform_0, window_bounds = array<i64: 8, 512>}, {transform_indices = @transform_1, window_bounds = array<i64: 8, 512>}, {transform_indices = @transform_2, window_bounds = array<i64: 1, 512>}]} {
    %c0_i32 = arith.constant 0 : i32
    %0 = arith.cmpi eq, %arg1, %c0_i32 : i32
    %1 = arith.extui %0 : i1 to i32
    %c0_i32_0 = arith.constant 0 : i32
    %2 = arith.cmpi ne, %1, %c0_i32_0 : i32
    scf.if %2 {
      %cst_10 = arith.constant 0.000000e+00 : f32
      %15 = vector.broadcast %cst_10 : f32 to vector<1x512xf32>
      %c0_11 = arith.constant 0 : index
      %c0_12 = arith.constant 0 : index
      %16 = vector.load %arg5[%c0_11, %c0_12] : memref<1x512xf32, #tpu.memory_space<vmem>>, vector<1x512xf32>
      tpu.vector_store %arg5[%c0_11, %c0_12], %15 {strides = array<i32>} : memref<1x512xf32, #tpu.memory_space<vmem>>, vector<1x512xf32>,
    } else {
    }
    %c0 = arith.constant 0 : index
    %c0_1 = arith.constant 0 : index
    %3 = vector.load %arg2[%c0, %c0_1] : memref<8x512xf32, #tpu.memory_space<vmem>>, vector<8x512xf32>
    %c0_2 = arith.constant 0 : index
    %c0_3 = arith.constant 0 : index
    %4 = vector.load %arg3[%c0_2, %c0_3] : memref<8x512xf32, #tpu.memory_space<vmem>>, vector<8x512xf32>
    %5 = arith.subf %3, %4 : vector<8x512xf32>
    %6 = math.absf %5 : vector<8x512xf32>
    %c0_4 = arith.constant 0 : index
    %c0_5 = arith.constant 0 : index
    %7 = vector.load %arg5[%c0_4, %c0_5] : memref<1x512xf32, #tpu.memory_space<vmem>>, vector<1x512xf32>
    %cst = arith.constant dense<0.000000e+00> : vector<512xf32>
    %8 = vector.multi_reduction <add>, %6, %cst [0] : vector<8x512xf32> to vector<512xf32>
    %9 = vector.shape_cast %8 : vector<512xf32> to vector<1x512xf32>
    %10 = arith.addf %7, %9 : vector<1x512xf32>
    %c0_6 = arith.constant 0 : index
    %c0_7 = arith.constant 0 : index
    %11 = vector.load %arg5[%c0_6, %c0_7] : memref<1x512xf32, #tpu.memory_space<vmem>>, vector<1x512xf32>
    tpu.vector_store %arg5[%c0_6, %c0_7], %10 {strides = array<i32>} : memref<1x512xf32, #tpu.memory_space<vmem>>, vector<1x512xf32>,
    %c0_i32_8 = arith.constant 0 : i32
    %12 = arith.cmpi eq, %arg1, %c0_i32_8 : i32
    %13 = arith.extui %12 : i1 to i32
    %c0_i32_9 = arith.constant 0 : i32
    %14 = arith.cmpi ne, %13, %c0_i32_9 : i32
    scf.if %14 {
      %c0_10 = arith.constant 0 : index
      %c0_11 = arith.constant 0 : index
      %15 = vector.load %arg5[%c0_10, %c0_11] : memref<1x512xf32, #tpu.memory_space<vmem>>, vector<1x512xf32>
      %c0_12 = arith.constant 0 : index
      %c0_13 = arith.constant 0 : index
      %16 = vector.load %arg4[%c0_12, %c0_13] : memref<1x512xf32, #tpu.memory_space<vmem>>, vector<1x512xf32>
      tpu.vector_store %arg4[%c0_12, %c0_13], %15 {strides = array<i32>} : memref<1x512xf32, #tpu.memory_space<vmem>>, vector<1x512xf32>,
    } else {
    }
    return
  }
  func.func @transform_0(%arg0: i32, %arg1: i32) -> (i32, i32) {
    %c1_i32 = arith.constant 1 : i32
    %0 = arith.muli %arg0, %c1_i32 : i32
    %1 = arith.addi %0, %arg1 : i32
    %c0_i32 = arith.constant 0 : i32
    %c0_i32_0 = arith.constant 0 : i32
    return %1, %c0_i32 : i32, i32
  }
  func.func @transform_1(%arg0: i32, %arg1: i32) -> (i32, i32) {
    %c1_i32 = arith.constant 1 : i32
    %0 = arith.muli %arg0, %c1_i32 : i32
    %1 = arith.addi %0, %arg1 : i32
    %c0_i32 = arith.constant 0 : i32
    %c0_i32_0 = arith.constant 0 : i32
    return %1, %c0_i32 : i32, i32
  }
  func.func @transform_2(%arg0: i32, %arg1: i32) -> (i32, i32) {
    %c0_i32 = arith.constant 0 : i32
    %c0_i32_0 = arith.constant 0 : i32
    return %c0_i32, %arg0 : i32, i32
  }
}

</mosaic_0001>

<bundles_post_ra>
// kernel: run.5
= control target key start
LH: loop header
LB: loop body
LE: loop exit
PB: predicated region body
PF: predicated region fallthrough
CT: control target
= control target key end

     0   :  { %s1945_s12 = smov 0   ;;  %s1947_s13 = smov 0   ;;  %s2146_s0 = inlined_call_operand.vmem [shape: bf16[1024,128], index: 0, kind: input, shape index: {}]   ;;  %s2147_s1 = inlined_call_operand.vmem [shape: bf16[128,128], index: 1, kind: input, shape index: {}]   ;;  %s2148_s2 = inlined_call_operand.vmem [shape: f32[1,128], index: 2, kind: input, shape index: {}]   ;;  %s2149_s3 = inlined_call_operand.vmem [shape: bf16[1024,128], index: 3, kind: output, shape index: {}]  }
   0x1   :  { %s1949_s14 = smov 0  }
   0x2 LB: > { %s25_s15 = sadd.s32 1, %s1919_s13  ;;  %p1334_p0 = scmp.ge.s32.totalorder %s1923_s14, 1  ;;  %s1923_s14 = sphi %s1949_s14, %s13_s14   ;;  %s1919_s13 = sphi %s1947_s13, %s2151_s13   ;;  %s1915_s12 = sphi %s1945_s12, %s2150_s12  }
   0x3   : > { %p27_p1 = scmp.ge.s32.totalorder %s25_s15, 2  ;;  %p169_p2 = scmp.lt.s32.totalorder %s1923_s14, 3 }
   0x5   : > { %s2153_s15 = smov (%p27_p1, %s25_s15), 0  ;;  %p170_p3 = pnand %p1334_p0, %p169_p2 }
   0x6   : > { %v1861_v0 = vld [vmem:[%s2147_s1] sm:$0xff] (!%p170_p3)   ;;  %s1335_s18 = sshll.u32 (!%p170_p3), %s1915_s12, 6  ;;  %v1862_v1 = vld [vmem:[%s2147_s1 + $0x8] sm:$0xff] (!%p170_p3)   ;;  %v1863_v2 = vld [vmem:[%s2147_s1 + $0x10] sm:$0xff] (!%p170_p3)  }
   0x7   : > { %173 = sbr.rel (%p170_p3) target bundleno = 317 (0x13d), region = 32  ;;  %p204_p4 = scmp.lt.s32.totalorder (!%p170_p3), %s1335_s18, 127  ;;  %1741 = vmatprep.subr.bf16.mxu0 (!%p170_p3), %v1861_v0  ;;  %1821 = vmatprep.subr.bf16.mxu1 (!%p170_p3), %v1861_v0  ;;  %v1864_v3 = vld [vmem:[%s2147_s1 + $0x18] sm:$0xff] (!%p170_p3)   ;;  %v1865_v6 = vld [vmem:[%s2147_s1 + $0x20] sm:$0xff] (!%p170_p3)   ;;  %v1866_v7 = vld [vmem:[%s2147_s1 + $0x28] sm:$0xff] (!%p170_p3)  }
   0x8   : > { %1742 = vmatpush3.bf16.msra.mxu0 (!%p170_p3), %v1861_v0  ;;  %1829 = vmatpush3.bf16.msra.mxu1 (!%p170_p3), %v1861_v0  ;;  %v1867_v8 = vld [vmem:[%s2147_s1 + $0x30] sm:$0xff] (!%p170_p3)   ;;  %v1868_v9 = vld [vmem:[%s2147_s1 + $0x38] sm:$0xff] (!%p170_p3)   ;;  %v2032_v40 = vld [vmem:[%s2148_s2] ss:$0 sm:$0xff] (!%p170_p3) }
   0x9   : > { %1743 = vmatprep.subr.bf16.mxu0 (!%p170_p3), %v1862_v1  ;;  %1822 = vmatprep.subr.bf16.mxu1 (!%p170_p3), %v1862_v1 }
   0xc   : > { %1744 = vmatpush3.bf16.msra.mxu0 (!%p170_p3), %v1862_v1  ;;  %1830 = vmatpush3.bf16.msra.mxu1 (!%p170_p3), %v1862_v1 }
   0xd   : > { %1745 = vmatprep.subr.bf16.mxu0 (!%p170_p3), %v1863_v2  ;;  %1823 = vmatprep.subr.bf16.mxu1 (!%p170_p3), %v1863_v2 }
   0xe   : > { %s2155_s18 = smov (!%p204_p4, %s1335_s18), 127 }
   0xf   : > { %s1336_s23 = sshll.u32 %s2155_s18, 2 }
  0x10   : > { %s1980_s26 = scalar_lea.vmem %s2146_s0, %s1336_s23  ;;  %1746 = vmatpush3.bf16.msra.mxu0 %v1863_v2  ;;  %1831 = vmatpush3.bf16.msra.mxu1 %v1863_v2  ;;  %s2047_s17 = scalar_lea.vmem %s2149_s3, %s1336_s23 }
  0x11   : > { %v1869_v4 = vld [vmem:[%s1980_s26] sm:$0xff]   ;;  %1747 = vmatprep.subr.bf16.mxu0 %v1864_v3  ;;  %1824 = vmatprep.subr.bf16.mxu1 %v1864_v3  ;;  %v1871_v10 = vld [vmem:[%s1980_s26 + $0x8] sm:$0xff]   ;;  %v1873_v12 = vld [vmem:[%s1980_s26 + $0x10] sm:$0xff]  }
  0x12   : > { %v1870_v5 = vld [vmem:[%s1980_s26 + $0x80] sm:$0xff]   ;;  %1757 = vmatprep.mubr.bf16.mxu0 %v1869_v4  ;;  %v1872_v11 = vld [vmem:[%s1980_s26 + $0x88] sm:$0xff]   ;;  %v1874_v13 = vld [vmem:[%s1980_s26 + $0x90] sm:$0xff]  }
  0x13   : > { %1789 = vmatprep.mubr.bf16.mxu1 %v1870_v5  ;;  %v1875_v14 = vld [vmem:[%s1980_s26 + $0x18] sm:$0xff]   ;;  %v1877_v16 = vld [vmem:[%s1980_s26 + $0x20] sm:$0xff]   ;;  %v1879_v18 = vld [vmem:[%s1980_s26 + $0x28] sm:$0xff]  }
  0x14   : > { %1748 = vmatpush3.bf16.msra.mxu0 %v1864_v3  ;;  %1832 = vmatpush3.bf16.msra.mxu1 %v1864_v3  ;;  %v1876_v15 = vld [vmem:[%s1980_s26 + $0x98] sm:$0xff]   ;;  %v1878_v17 = vld [vmem:[%s1980_s26 + $0xa0] sm:$0xff]   ;;  %v1880_v19 = vld [vmem:[%s1980_s26 + $0xa8] sm:$0xff]  }
  0x15   : > { %1749 = vmatprep.subr.bf16.mxu0 %v1865_v6  ;;  %1825 = vmatprep.subr.bf16.mxu1 %v1865_v6  ;;  %v1881_v20 = vld [vmem:[%s1980_s26 + $0x30] sm:$0xff]   ;;  %v1883_v22 = vld [vmem:[%s1980_s26 + $0x38] sm:$0xff]   ;;  %v1885_v24 = vld [vmem:[%s1980_s26 + $0x40] sm:$0xff]  }
  0x16   : > { %v1882_v21 = vld [vmem:[%s1980_s26 + $0xb0] sm:$0xff]   ;;  %v1884_v23 = vld [vmem:[%s1980_s26 + $0xb8] sm:$0xff]   ;;  %v1886_v25 = vld [vmem:[%s1980_s26 + $0xc0] sm:$0xff]  }
  0x17   : > { %v1887_v26 = vld [vmem:[%s1980_s26 + $0x48] sm:$0xff]   ;;  %v1889_v28 = vld [vmem:[%s1980_s26 + $0x50] sm:$0xff]   ;;  %v1891_v30 = vld [vmem:[%s1980_s26 + $0x58] sm:$0xff]  }
  0x18   : > { %1750 = vmatpush3.bf16.msra.mxu0 %v1865_v6  ;;  %1833 = vmatpush3.bf16.msra.mxu1 %v1865_v6  ;;  %v1888_v27 = vld [vmem:[%s1980_s26 + $0xc8] sm:$0xff]   ;;  %v1890_v29 = vld [vmem:[%s1980_s26 + $0xd0] sm:$0xff]   ;;  %v1892_v31 = vld [vmem:[%s1980_s26 + $0xd8] sm:$0xff]  }
  0x19   : > { %1751 = vmatprep.subr.bf16.mxu0 %v1866_v7  ;;  %1826 = vmatprep.subr.bf16.mxu1 %v1866_v7  ;;  %v1893_v32 = vld [vmem:[%s1980_s26 + $0x60] sm:$0xff]   ;;  %v1895_v34 = vld [vmem:[%s1980_s26 + $0x68] sm:$0xff]   ;;  %v1897_v36 = vld [vmem:[%s1980_s26 + $0x70] sm:$0xff]  }
  0x1a   : > { %v1894_v33 = vld [vmem:[%s1980_s26 + $0xe0] sm:$0xff]   ;;  %v1896_v35 = vld [vmem:[%s1980_s26 + $0xe8] sm:$0xff]   ;;  %v1898_v37 = vld [vmem:[%s1980_s26 + $0xf0] sm:$0xff]  }
  0x1b   : > { %v1899_v38 = vld [vmem:[%s1980_s26 + $0x78] sm:$0xff]  }
  0x1c   : > { %1752 = vmatpush3.bf16.msra.mxu0 %v1866_v7  ;;  %1834 = vmatpush3.bf16.msra.mxu1 %v1866_v7  ;;  %v1900_v39 = vld [vmem:[%s1980_s26 + $0xf8] sm:$0xff]  }
  0x1d   : > { %1753 = vmatprep.subr.bf16.mxu0 %v1867_v8  ;;  %1827 = vmatprep.subr.bf16.mxu1 %v1867_v8 }
  0x20   : > { %1754 = vmatpush3.bf16.msra.mxu0 %v1867_v8  ;;  %1835 = vmatpush3.bf16.msra.mxu1 %v1867_v8 }
  0x21   : > { %1755 = vmatprep.subr.bf16.mxu0 %v1868_v9  ;;  %1828 = vmatprep.subr.bf16.mxu1 %v1868_v9 }
  0x24   : > { %1756 = vmatpush3.bf16.msra.mxu0 %v1868_v9  ;;  %1836 = vmatpush3.bf16.msra.mxu1 %v1868_v9 }
  0x27   : > { %1758 = vmatmul.mubr.bf16.vlgmr.msra.gmra.mrb[0].mxu0 %v1871_v10  ;;  %1790 = vmatmul.mubr.bf16.vlgmr.msra.gmra.mrb[0].mxu1 %v1872_v11 }
  0x28   : > { %1761 = vmatprep.mubr.bf16.mxu0 %v1873_v12  ;;  %1793 = vmatprep.mubr.bf16.mxu1 %v1874_v13 }
  0x2f   : > { %1762 = vmatmul.mubr.bf16.gmra.mrb[4].mxu0 %v1875_v14  ;;  %1794 = vmatmul.mubr.bf16.gmra.mrb[4].mxu1 %v1876_v15 }
  0x30   : > { %1765 = vmatprep.mubr.bf16.mxu0 %v1877_v16  ;;  %1797 = vmatprep.mubr.bf16.mxu1 %v1878_v17 }
  0x37   : > { %1766 = vmatmul.mubr.bf16.gmra.mrb[8].mxu0 %v1879_v18  ;;  %1798 = vmatmul.mubr.bf16.gmra.mrb[8].mxu1 %v1880_v19 }
  0x38   : > { %1769 = vmatprep.mubr.bf16.mxu0 %v1881_v20  ;;  %1801 = vmatprep.mubr.bf16.mxu1 %v1882_v21 }
  0x3f   : > { %1770 = vmatmul.mubr.bf16.gmra.mrb[12].mxu0 %v1883_v22  ;;  %1802 = vmatmul.mubr.bf16.gmra.mrb[12].mxu1 %v1884_v23 }
  0x40   : > { %1773 = vmatprep.mubr.bf16.mxu0 %v1885_v24  ;;  %1805 = vmatprep.mubr.bf16.mxu1 %v1886_v25 }
  0x47   : > { %1774 = vmatmul.mubr.bf16.gmra.mrb[16].mxu0 %v1887_v26  ;;  %1806 = vmatmul.mubr.bf16.gmra.mrb[16].mxu1 %v1888_v27 }
  0x48   : > { %1777 = vmatprep.mubr.bf16.mxu0 %v1889_v28  ;;  %1809 = vmatprep.mubr.bf16.mxu1 %v1890_v29 }
  0x4f   : > { %1778 = vmatmul.mubr.bf16.gmra.mrb[20].mxu0 %v1891_v30  ;;  %1810 = vmatmul.mubr.bf16.gmra.mrb[20].mxu1 %v1892_v31 }
  0x50   : > { %1781 = vmatprep.mubr.bf16.mxu0 %v1893_v32  ;;  %1813 = vmatprep.mubr.bf16.mxu1 %v1894_v33 }
  0x57   : > { %1782 = vmatmul.mubr.bf16.gmra.mrb[24].mxu0 %v1895_v34  ;;  %1814 = vmatmul.mubr.bf16.gmra.mrb[24].mxu1 %v1896_v35 }
  0x58   : > { %1785 = vmatprep.mubr.bf16.mxu0 %v1897_v36  ;;  %1817 = vmatprep.mubr.bf16.mxu1 %v1898_v37 }
  0x5f   : > { %1786 = vmatmul.mubr.bf16.gmra.mrb[28].mxu0 %v1899_v38  ;;  %1818 = vmatmul.mubr.bf16.gmra.mrb[28].mxu1 %v1900_v39 }
  0xfa   : > { %v1759_v41 = vpop.f32.mrb[0].mxu0  ;;  %v1791_v42 = vpop.f32.mrb[0].mxu1 }
  0xfb   : > { %v596_v43 = vadd.f32 %v1759_v41, %v2032_v40  ;;  %v724_v44 = vadd.f32 %v1791_v42, %v2032_v40  ;;  %v587_v45 = vpop.f32.mrb[1].mxu0  ;;  %v715_v46 = vpop.f32.mrb[1].mxu1 }
  0xfc   : > { %v588_v47 = vadd.f32 %v2032_v40, %v587_v45  ;;  %v716_v48 = vadd.f32 %v2032_v40, %v715_v46  ;;  %v1760_v49 = vpop.f32.mrb[2].mxu0  ;;  %v1792_v50 = vpop.f32.mrb[2].mxu1 }
  0xfd   : > { %v599_v51 = vadd.f32 %v1760_v49, %v2032_v40  ;;  %v727_v52 = vadd.f32 %v1792_v50, %v2032_v40  ;;  %v590_v53 = vpop.f32.mrb[3].mxu0  ;;  %v718_v54 = vpop.f32.mrb[3].mxu1  ;;  %v844_v57 = vmax.f32 %v596_v43, 0.0  ;;  %v876_v58 = vmax.f32 %v724_v44, 0.0 }
  0xfe   : > { %v591_v55 = vadd.f32 %v2032_v40, %v590_v53  ;;  %v719_v56 = vadd.f32 %v2032_v40, %v718_v54  ;;  %v842_v61 = vmax.f32 %v588_v47, 0.0  ;;  %v874_v62 = vmax.f32 %v716_v48, 0.0 }
  0xff   : > { %v845_v59 = vmax.f32 %v599_v51, 0.0  ;;  %v877_v60 = vmax.f32 %v727_v52, 0.0 }
 0x100   : > { %v843_v63 = vmax.f32 %v591_v55, 0.0  ;;  %v875_v0 = vmax.f32 %v719_v56, 0.0 }
 0x101   : > { %v1518_v1 = vpack.c.bf16 %v845_v59, %v844_v57  ;;  %v1598_v2 = vpack.c.bf16 %v877_v60, %v876_v58 }
 0x102   : > { %v1513_v3 = vpack.c.bf16 %v843_v63, %v842_v61  ;;  %v1593_v4 = vpack.c.bf16 %v875_v0, %v874_v62  ;;  %v1763_v5 = vpop.f32.mrb[4].mxu0  ;;  %v1795_v6 = vpop.f32.mrb[4].mxu1 }
 0x103   : > { %1670 = vst [vmem:[%s2047_s17 + $0x8] sm:$0xff] %v1518_v1   ;;  %1686 = vst [vmem:[%s2047_s17 + $0x88] sm:$0xff] %v1598_v2   ;;  %v612_v7 = vadd.f32 %v1763_v5, %v2032_v40  ;;  %v740_v8 = vadd.f32 %v1795_v6, %v2032_v40  ;;  %v603_v9 = vpop.f32.mrb[5].mxu0  ;;  %v731_v10 = vpop.f32.mrb[5].mxu1 }
 0x104   : > { %1514 = vst [vmem:[%s2047_s17] sm:$0xff] %v1513_v3   ;;  %1685 = vst [vmem:[%s2047_s17 + $0x80] sm:$0xff] %v1593_v4   ;;  %v604_v11 = vadd.f32 %v2032_v40, %v603_v9  ;;  %v732_v12 = vadd.f32 %v2032_v40, %v731_v10  ;;  %v1764_v13 = vpop.f32.mrb[6].mxu0  ;;  %v1796_v14 = vpop.f32.mrb[6].mxu1 }
 0x105   : > { %v615_v15 = vadd.f32 %v1764_v13, %v2032_v40  ;;  %v743_v16 = vadd.f32 %v1796_v14, %v2032_v40  ;;  %v606_v17 = vpop.f32.mrb[7].mxu0  ;;  %v734_v18 = vpop.f32.mrb[7].mxu1  ;;  %v848_v21 = vmax.f32 %v612_v7, 0.0  ;;  %v880_v22 = vmax.f32 %v740_v8, 0.0 }
 0x106   : > { %v607_v19 = vadd.f32 %v2032_v40, %v606_v17  ;;  %v735_v20 = vadd.f32 %v2032_v40, %v734_v18  ;;  %v846_v25 = vmax.f32 %v604_v11, 0.0  ;;  %v878_v26 = vmax.f32 %v732_v12, 0.0 }
 0x107   : > { %v849_v23 = vmax.f32 %v615_v15, 0.0  ;;  %v881_v24 = vmax.f32 %v743_v16, 0.0 }
 0x108   : > { %v847_v27 = vmax.f32 %v607_v19, 0.0  ;;  %v879_v28 = vmax.f32 %v735_v20, 0.0 }
 0x109   : > { %v1528_v29 = vpack.c.bf16 %v849_v23, %v848_v21  ;;  %v1608_v30 = vpack.c.bf16 %v881_v24, %v880_v22 }
 0x10a   : > { %v1523_v31 = vpack.c.bf16 %v847_v27, %v846_v25  ;;  %v1603_v32 = vpack.c.bf16 %v879_v28, %v878_v26  ;;  %v1767_v33 = vpop.f32.mrb[8].mxu0  ;;  %v1799_v34 = vpop.f32.mrb[8].mxu1 }
 0x10b   : > { %1672 = vst [vmem:[%s2047_s17 + $0x18] sm:$0xff] %v1528_v29   ;;  %1688 = vst [vmem:[%s2047_s17 + $0x98] sm:$0xff] %v1608_v30   ;;  %v628_v35 = vadd.f32 %v1767_v33, %v2032_v40  ;;  %v756_v36 = vadd.f32 %v1799_v34, %v2032_v40  ;;  %v619_v37 = vpop.f32.mrb[9].mxu0  ;;  %v747_v38 = vpop.f32.mrb[9].mxu1 }
 0x10c   : > { %1671 = vst [vmem:[%s2047_s17 + $0x10] sm:$0xff] %v1523_v31   ;;  %1687 = vst [vmem:[%s2047_s17 + $0x90] sm:$0xff] %v1603_v32   ;;  %v620_v39 = vadd.f32 %v2032_v40, %v619_v37  ;;  %v748_v41 = vadd.f32 %v2032_v40, %v747_v38  ;;  %v1768_v42 = vpop.f32.mrb[10].mxu0  ;;  %v1800_v43 = vpop.f32.mrb[10].mxu1 }
 0x10d   : > { %v631_v44 = vadd.f32 %v1768_v42, %v2032_v40  ;;  %v759_v45 = vadd.f32 %v1800_v43, %v2032_v40  ;;  %v622_v46 = vpop.f32.mrb[11].mxu0  ;;  %v750_v47 = vpop.f32.mrb[11].mxu1  ;;  %v852_v50 = vmax.f32 %v628_v35, 0.0  ;;  %v884_v51 = vmax.f32 %v756_v36, 0.0 }
 0x10e   : > { %v623_v48 = vadd.f32 %v2032_v40, %v622_v46  ;;  %v751_v49 = vadd.f32 %v2032_v40, %v750_v47  ;;  %v850_v54 = vmax.f32 %v620_v39, 0.0  ;;  %v882_v55 = vmax.f32 %v748_v41, 0.0 }
 0x10f   : > { %v853_v52 = vmax.f32 %v631_v44, 0.0  ;;  %v885_v53 = vmax.f32 %v759_v45, 0.0 }
 0x110   : > { %v851_v56 = vmax.f32 %v623_v48, 0.0  ;;  %v883_v57 = vmax.f32 %v751_v49, 0.0 }
 0x111   : > { %v1538_v58 = vpack.c.bf16 %v853_v52, %v852_v50  ;;  %v1618_v59 = vpack.c.bf16 %v885_v53, %v884_v51 }
 0x112   : > { %v1533_v60 = vpack.c.bf16 %v851_v56, %v850_v54  ;;  %v1613_v61 = vpack.c.bf16 %v883_v57, %v882_v55  ;;  %v1771_v62 = vpop.f32.mrb[12].mxu0  ;;  %v1803_v63 = vpop.f32.mrb[12].mxu1 }
 0x113   : > { %1674 = vst [vmem:[%s2047_s17 + $0x28] sm:$0xff] %v1538_v58   ;;  %1690 = vst [vmem:[%s2047_s17 + $0xa8] sm:$0xff] %v1618_v59   ;;  %v644_v0 = vadd.f32 %v1771_v62, %v2032_v40  ;;  %v772_v1 = vadd.f32 %v1803_v63, %v2032_v40  ;;  %v635_v2 = vpop.f32.mrb[13].mxu0  ;;  %v763_v3 = vpop.f32.mrb[13].mxu1 }
 0x114   : > { %1673 = vst [vmem:[%s2047_s17 + $0x20] sm:$0xff] %v1533_v60   ;;  %1689 = vst [vmem:[%s2047_s17 + $0xa0] sm:$0xff] %v1613_v61   ;;  %v636_v4 = vadd.f32 %v2032_v40, %v635_v2  ;;  %v764_v5 = vadd.f32 %v2032_v40, %v763_v3  ;;  %v1772_v6 = vpop.f32.mrb[14].mxu0  ;;  %v1804_v7 = vpop.f32.mrb[14].mxu1 }
 0x115   : > { %v647_v8 = vadd.f32 %v1772_v6, %v2032_v40  ;;  %v775_v9 = vadd.f32 %v1804_v7, %v2032_v40  ;;  %v638_v10 = vpop.f32.mrb[15].mxu0  ;;  %v766_v11 = vpop.f32.mrb[15].mxu1  ;;  %v856_v14 = vmax.f32 %v644_v0, 0.0  ;;  %v888_v15 = vmax.f32 %v772_v1, 0.0 }
 0x116   : > { %v639_v12 = vadd.f32 %v2032_v40, %v638_v10  ;;  %v767_v13 = vadd.f32 %v2032_v40, %v766_v11  ;;  %v854_v18 = vmax.f32 %v636_v4, 0.0  ;;  %v886_v19 = vmax.f32 %v764_v5, 0.0 }
 0x117   : > { %v857_v16 = vmax.f32 %v647_v8, 0.0  ;;  %v889_v17 = vmax.f32 %v775_v9, 0.0 }
 0x118   : > { %v855_v20 = vmax.f32 %v639_v12, 0.0  ;;  %v887_v21 = vmax.f32 %v767_v13, 0.0 }
 0x119   : > { %v1548_v22 = vpack.c.bf16 %v857_v16, %v856_v14  ;;  %v1628_v23 = vpack.c.bf16 %v889_v17, %v888_v15 }
 0x11a   : > { %v1543_v24 = vpack.c.bf16 %v855_v20, %v854_v18  ;;  %v1623_v25 = vpack.c.bf16 %v887_v21, %v886_v19  ;;  %v1775_v26 = vpop.f32.mrb[16].mxu0  ;;  %v1807_v27 = vpop.f32.mrb[16].mxu1 }
 0x11b   : > { %1676 = vst [vmem:[%s2047_s17 + $0x38] sm:$0xff] %v1548_v22   ;;  %1692 = vst [vmem:[%s2047_s17 + $0xb8] sm:$0xff] %v1628_v23   ;;  %v660_v28 = vadd.f32 %v1775_v26, %v2032_v40  ;;  %v788_v29 = vadd.f32 %v1807_v27, %v2032_v40  ;;  %v651_v30 = vpop.f32.mrb[17].mxu0  ;;  %v779_v31 = vpop.f32.mrb[17].mxu1 }
 0x11c   : > { %1675 = vst [vmem:[%s2047_s17 + $0x30] sm:$0xff] %v1543_v24   ;;  %1691 = vst [vmem:[%s2047_s17 + $0xb0] sm:$0xff] %v1623_v25   ;;  %v652_v32 = vadd.f32 %v2032_v40, %v651_v30  ;;  %v780_v33 = vadd.f32 %v2032_v40, %v779_v31  ;;  %v1776_v34 = vpop.f32.mrb[18].mxu0  ;;  %v1808_v35 = vpop.f32.mrb[18].mxu1 }
 0x11d   : > { %v663_v36 = vadd.f32 %v1776_v34, %v2032_v40  ;;  %v791_v37 = vadd.f32 %v1808_v35, %v2032_v40  ;;  %v654_v38 = vpop.f32.mrb[19].mxu0  ;;  %v782_v39 = vpop.f32.mrb[19].mxu1  ;;  %v860_v43 = vmax.f32 %v660_v28, 0.0  ;;  %v892_v44 = vmax.f32 %v788_v29, 0.0 }
 0x11e   : > { %v655_v41 = vadd.f32 %v2032_v40, %v654_v38  ;;  %v783_v42 = vadd.f32 %v2032_v40, %v782_v39  ;;  %v858_v47 = vmax.f32 %v652_v32, 0.0  ;;  %v890_v48 = vmax.f32 %v780_v33, 0.0 }
 0x11f   : > { %v861_v45 = vmax.f32 %v663_v36, 0.0  ;;  %v893_v46 = vmax.f32 %v791_v37, 0.0 }
 0x120   : > { %v859_v49 = vmax.f32 %v655_v41, 0.0  ;;  %v891_v50 = vmax.f32 %v783_v42, 0.0 }
 0x121   : > { %v1558_v51 = vpack.c.bf16 %v861_v45, %v860_v43  ;;  %v1638_v52 = vpack.c.bf16 %v893_v46, %v892_v44 }
 0x122   : > { %v1553_v53 = vpack.c.bf16 %v859_v49, %v858_v47  ;;  %v1633_v54 = vpack.c.bf16 %v891_v50, %v890_v48  ;;  %v1779_v55 = vpop.f32.mrb[20].mxu0  ;;  %v1811_v56 = vpop.f32.mrb[20].mxu1 }
 0x123   : > { %1678 = vst [vmem:[%s2047_s17 + $0x48] sm:$0xff] %v1558_v51   ;;  %1694 = vst [vmem:[%s2047_s17 + $0xc8] sm:$0xff] %v1638_v52   ;;  %v676_v57 = vadd.f32 %v1779_v55, %v2032_v40  ;;  %v804_v58 = vadd.f32 %v1811_v56, %v2032_v40  ;;  %v667_v59 = vpop.f32.mrb[21].mxu0  ;;  %v795_v60 = vpop.f32.mrb[21].mxu1 }
 0x124   : > { %1677 = vst [vmem:[%s2047_s17 + $0x40] sm:$0xff] %v1553_v53   ;;  %1693 = vst [vmem:[%s2047_s17 + $0xc0] sm:$0xff] %v1633_v54   ;;  %v668_v61 = vadd.f32 %v2032_v40, %v667_v59  ;;  %v796_v62 = vadd.f32 %v2032_v40, %v795_v60  ;;  %v1780_v63 = vpop.f32.mrb[22].mxu0  ;;  %v1812_v0 = vpop.f32.mrb[22].mxu1 }
 0x125   : > { %v679_v1 = vadd.f32 %v1780_v63, %v2032_v40  ;;  %v807_v2 = vadd.f32 %v1812_v0, %v2032_v40  ;;  %v670_v3 = vpop.f32.mrb[23].mxu0  ;;  %v798_v4 = vpop.f32.mrb[23].mxu1  ;;  %v864_v7 = vmax.f32 %v676_v57, 0.0  ;;  %v896_v8 = vmax.f32 %v804_v58, 0.0 }
 0x126   : > { %v671_v5 = vadd.f32 %v2032_v40, %v670_v3  ;;  %v799_v6 = vadd.f32 %v2032_v40, %v798_v4  ;;  %v862_v11 = vmax.f32 %v668_v61, 0.0  ;;  %v894_v12 = vmax.f32 %v796_v62, 0.0 }
 0x127   : > { %v865_v9 = vmax.f32 %v679_v1, 0.0  ;;  %v897_v10 = vmax.f32 %v807_v2, 0.0 }
 0x128   : > { %v863_v13 = vmax.f32 %v671_v5, 0.0  ;;  %v895_v14 = vmax.f32 %v799_v6, 0.0 }
 0x129   : > { %v1568_v15 = vpack.c.bf16 %v865_v9, %v864_v7  ;;  %v1648_v16 = vpack.c.bf16 %v897_v10, %v896_v8 }
 0x12a   : > { %v1563_v17 = vpack.c.bf16 %v863_v13, %v862_v11  ;;  %v1643_v18 = vpack.c.bf16 %v895_v14, %v894_v12  ;;  %v1783_v19 = vpop.f32.mrb[24].mxu0  ;;  %v1815_v20 = vpop.f32.mrb[24].mxu1 }
 0x12b   : > { %1680 = vst [vmem:[%s2047_s17 + $0x58] sm:$0xff] %v1568_v15   ;;  %1696 = vst [vmem:[%s2047_s17 + $0xd8] sm:$0xff] %v1648_v16   ;;  %v692_v21 = vadd.f32 %v1783_v19, %v2032_v40  ;;  %v820_v22 = vadd.f32 %v1815_v20, %v2032_v40  ;;  %v683_v23 = vpop.f32.mrb[25].mxu0  ;;  %v811_v24 = vpop.f32.mrb[25].mxu1 }
 0x12c   : > { %1679 = vst [vmem:[%s2047_s17 + $0x50] sm:$0xff] %v1563_v17   ;;  %1695 = vst [vmem:[%s2047_s17 + $0xd0] sm:$0xff] %v1643_v18   ;;  %v684_v25 = vadd.f32 %v2032_v40, %v683_v23  ;;  %v812_v26 = vadd.f32 %v2032_v40, %v811_v24  ;;  %v1784_v27 = vpop.f32.mrb[26].mxu0  ;;  %v1816_v28 = vpop.f32.mrb[26].mxu1 }
 0x12d   : > { %v695_v29 = vadd.f32 %v1784_v27, %v2032_v40  ;;  %v823_v30 = vadd.f32 %v1816_v28, %v2032_v40  ;;  %v686_v31 = vpop.f32.mrb[27].mxu0  ;;  %v814_v32 = vpop.f32.mrb[27].mxu1  ;;  %v868_v35 = vmax.f32 %v692_v21, 0.0  ;;  %v900_v36 = vmax.f32 %v820_v22, 0.0 }
 0x12e   : > { %v687_v33 = vadd.f32 %v2032_v40, %v686_v31  ;;  %v815_v34 = vadd.f32 %v2032_v40, %v814_v32  ;;  %v866_v39 = vmax.f32 %v684_v25, 0.0  ;;  %v898_v41 = vmax.f32 %v812_v26, 0.0 }
 0x12f   : > { %v869_v37 = vmax.f32 %v695_v29, 0.0  ;;  %v901_v38 = vmax.f32 %v823_v30, 0.0 }
 0x130   : > { %v867_v42 = vmax.f32 %v687_v33, 0.0  ;;  %v899_v43 = vmax.f32 %v815_v34, 0.0 }
 0x131   : > { %v1578_v44 = vpack.c.bf16 %v869_v37, %v868_v35  ;;  %v1658_v45 = vpack.c.bf16 %v901_v38, %v900_v36 }
 0x132   : > { %v1573_v46 = vpack.c.bf16 %v867_v42, %v866_v39  ;;  %v1653_v47 = vpack.c.bf16 %v899_v43, %v898_v41  ;;  %v1787_v48 = vpop.f32.mrb[28].mxu0  ;;  %v1819_v49 = vpop.f32.mrb[28].mxu1 }
 0x133   : > { %1682 = vst [vmem:[%s2047_s17 + $0x68] sm:$0xff] %v1578_v44   ;;  %1698 = vst [vmem:[%s2047_s17 + $0xe8] sm:$0xff] %v1658_v45   ;;  %v708_v50 = vadd.f32 %v1787_v48, %v2032_v40  ;;  %v836_v51 = vadd.f32 %v1819_v49, %v2032_v40  ;;  %v699_v52 = vpop.f32.mrb[29].mxu0  ;;  %v827_v53 = vpop.f32.mrb[29].mxu1 }
 0x134   : > { %1681 = vst [vmem:[%s2047_s17 + $0x60] sm:$0xff] %v1573_v46   ;;  %1697 = vst [vmem:[%s2047_s17 + $0xe0] sm:$0xff] %v1653_v47   ;;  %v700_v54 = vadd.f32 %v2032_v40, %v699_v52  ;;  %v828_v55 = vadd.f32 %v2032_v40, %v827_v53  ;;  %v1788_v56 = vpop.f32.mrb[30].mxu0  ;;  %v1820_v57 = vpop.f32.mrb[30].mxu1 }
 0x135   : > { %v711_v58 = vadd.f32 %v1788_v56, %v2032_v40  ;;  %v839_v59 = vadd.f32 %v1820_v57, %v2032_v40  ;;  %v702_v60 = vpop.f32.mrb[31].mxu0  ;;  %v830_v61 = vpop.f32.mrb[31].mxu1  ;;  %v872_v0 = vmax.f32 %v708_v50, 0.0  ;;  %v904_v1 = vmax.f32 %v836_v51, 0.0 }
 0x136   : > { %v703_v62 = vadd.f32 %v2032_v40, %v702_v60  ;;  %v831_v63 = vadd.f32 %v2032_v40, %v830_v61  ;;  %v870_v4 = vmax.f32 %v700_v54, 0.0  ;;  %v902_v5 = vmax.f32 %v828_v55, 0.0 }
 0x137   : > { %v873_v2 = vmax.f32 %v711_v58, 0.0  ;;  %v905_v3 = vmax.f32 %v839_v59, 0.0 }
 0x138   : > { %v871_v6 = vmax.f32 %v703_v62, 0.0  ;;  %v903_v7 = vmax.f32 %v831_v63, 0.0 }
 0x139   : > { %v1588_v8 = vpack.c.bf16 %v873_v2, %v872_v0  ;;  %v1668_v9 = vpack.c.bf16 %v905_v3, %v904_v1 }
 0x13a   : > { %v1583_v10 = vpack.c.bf16 %v871_v6, %v870_v4  ;;  %v1663_v11 = vpack.c.bf16 %v903_v7, %v902_v5 }
 0x13b   : > { %1684 = vst [vmem:[%s2047_s17 + $0x78] sm:$0xff] %v1588_v8   ;;  %1700 = vst [vmem:[%s2047_s17 + $0xf8] sm:$0xff] %v1668_v9  }
 0x13c   : > { %1683 = vst [vmem:[%s2047_s17 + $0x70] sm:$0xff] %v1583_v10   ;;  %1699 = vst [vmem:[%s2047_s17 + $0xf0] sm:$0xff] %v1663_v11  }
 0x13d PF: > { %s13_s14 = sadd.s32 1, %s1923_s14   ;;  %s2150_s12 = smov %s1919_s13 }
 0x13e   : > { %p10_p5 = scmp.ge.s32.totalorder %s13_s14, 4   ;;  %s2151_s13 = smov %s2153_s15 }
 0x140   :  { %12 = sbr.rel (!%p10_p5) target bundleno = 2 (0x2), region = 68 }

// kernel: run.7
= control target key start
LH: loop header
LB: loop body
LE: loop exit
PB: predicated region body
PF: predicated region fallthrough
CT: control target
= control target key end

     0   :  { %s583_s9 = smov 0   ;;  %s585_s10 = smov 0   ;;  %s799_s0 = inlined_call_operand.vmem [shape: f32[128,512], index: 0, kind: input, shape index: {}]   ;;  %s800_s1 = inlined_call_operand.vmem [shape: f32[128,512], index: 1, kind: input, shape index: {}]   ;;  %s801_s2 = inlined_call_operand.vmem [shape: f32[1,1024], index: 2, kind: output, shape index: {}]  }
   0x1   :  { %s587_s11 = smov 0  }
   0x2 LB: > { %s24_s12 = sadd.s32 1, %s560_s10  ;;  %p504_p0 = scmp.ge.s32.totalorder %s564_s11, 1  ;;  %s564_s11 = sphi %s587_s11, %s12_s11   ;;  %s560_s10 = sphi %s585_s10, %s805_s10   ;;  %s556_s9 = sphi %s583_s9, %s804_s9  }
   0x3   : > { %p26_p1 = scmp.ge.s32.totalorder %s24_s12, 2  ;;  %p146_p2 = scmp.lt.s32.totalorder %s564_s11, 3 }
   0x5   : > { %s807_s12 = smov (%p26_p1, %s24_s12), 0  ;;  %p147_p3 = pnand %p504_p0, %p146_p2 }
   0x6   : > { %s505_s13 = sshll.u32 (!%p147_p3), %s556_s9, 3  ;;  %v203_v0 = vlaneseq (!%p147_p3)  ;;  %v566_v2 = vmov (!%p147_p3), 0.0   ;;  %s511_s21 = sshll.u32 (!%p147_p3), %s556_s9, 2 }
   0x7   : > { %150 = sbr.rel (%p147_p3) target bundleno = 85 (0x55), region = 28  ;;  %p178_p4 = scmp.lt.s32.totalorder (!%p147_p3), %s505_s13, 15 }
   0x8   : > { %vm605_vm0 = vcmp.lt.s32.totalorder (!%p147_p3), %v203_v0, 512  ;;  %p195_p5 = scmp.lt.s32.totalorder (!%p147_p3), %s511_s21, 7 }
   0x9   : > { %207 = vst.msk [vmem:[#allocation2] sm:$0xf] (!%p147_p3), %vm605_vm0, %v566_v2 }
   0xe   : > { %s809_s13 = smov (!%p178_p4, %s505_s13), 15  ;;  %s811_s21 = smov (!%p195_p5, %s511_s21), 7 }
   0xf   : > { %s514_s14 = sshll.u32 %s809_s13, 5  ;;  %s197_s24 = scalar_lea.vmem %s801_s2, %s811_s21 }
  0x10   : > { %s614_s17 = scalar_lea.vmem %s799_s0, %s514_s14  ;;  %s619_s20 = scalar_lea.vmem %s800_s1, %s514_s14 }
  0x11   : > { %v208_v3 = vld [vmem:[%s614_s17] sm:$0xff]  ;;  %v209_v4 = vld [vmem:[%s614_s17 + $0x8] sm:$0xff]  ;;  %v210_v5 = vld [vmem:[%s614_s17 + $0x10] sm:$0xff] }
  0x12   : > { %v212_v6 = vld [vmem:[%s614_s17 + $0x20] sm:$0xff]  ;;  %v627_v8 = vld [vmem:[%s614_s17 + $0x18] sm:$0xff]  ;;  %v630_v9 = vld [vmem:[%s614_s17 + $0x28] sm:$0xff] }
  0x13   : > { %v240_v7 = vld [vmem:[%s619_s20] sm:$0xff]  ;;  %v241_v10 = vld [vmem:[%s619_s20 + $0x8] sm:$0xff]  ;;  %v242_v11 = vld [vmem:[%s619_s20 + $0x10] sm:$0xff] }
  0x14   : > { %v635_v12 = vld [vmem:[%s614_s17 + $0x30] sm:$0xff]  ;;  %v638_v13 = vld [vmem:[%s614_s17 + $0x40] sm:$0xff]  ;;  %v642_v15 = vld [vmem:[%s614_s17 + $0x38] sm:$0xff]  ;;  %v272_v20 = vsub.f32 %v208_v3, %v240_v7  ;;  %v273_v21 = vsub.f32 %v209_v4, %v241_v10  ;;  %v274_v27 = vsub.f32 %v210_v5, %v242_v11 }
  0x15   : > { %v244_v14 = vld [vmem:[%s619_s20 + $0x20] sm:$0xff]  ;;  %v645_v16 = vld [vmem:[%s614_s17 + $0x48] sm:$0xff]  ;;  %v648_v17 = vld [vmem:[%s614_s17 + $0x50] sm:$0xff] }
  0x16   : > { %v243_v18 = vld [vmem:[%s619_s20 + $0x18] sm:$0xff]  ;;  %v245_v19 = vld [vmem:[%s619_s20 + $0x28] sm:$0xff]  ;;  %v656_v23 = vld [vmem:[%s614_s17 + $0x60] sm:$0xff]  ;;  %v276_v33 = vsub.f32 %v212_v6, %v244_v14  ;;  %v304_v49 = vand.u32 2147483647, %v272_v20 }
  0x17   : > { %v653_v22 = vld [vmem:[%s614_s17 + $0x58] sm:$0xff]  ;;  %v659_v24 = vld [vmem:[%s614_s17 + $0x68] sm:$0xff]  ;;  %v662_v25 = vld [vmem:[%s619_s20 + $0x30] sm:$0xff]  ;;  %v275_v40 = vsub.f32 %v627_v8, %v243_v18  ;;  %v277_v41 = vsub.f32 %v630_v9, %v245_v19  ;;  %v305_v50 = vand.u32 2147483647, %v273_v21 }
  0x18   : > { %v248_v26 = vld [vmem:[%s619_s20 + $0x40] sm:$0xff]  ;;  %v666_v28 = vld [vmem:[%s614_s17 + $0x70] sm:$0xff]  ;;  %v669_v29 = vld [vmem:[%s614_s17 + $0x78] sm:$0xff]  ;;  %v278_v47 = vsub.f32 %v635_v12, %v662_v25  ;;  %v306_v59 = vand.u32 2147483647, %v274_v27 }
  0x19   : > { %v672_v30 = vld [vmem:[%s619_s20 + $0x38] sm:$0xff]  ;;  %v249_v31 = vld [vmem:[%s619_s20 + $0x48] sm:$0xff]  ;;  %v676_v32 = vld [vmem:[%s619_s20 + $0x50] sm:$0xff]  ;;  %v280_v48 = vsub.f32 %v638_v13, %v248_v26  ;;  %v308_v4 = vand.u32 2147483647, %v276_v33 }
  0x1a   : > { %v679_v34 = vld [vmem:[%s614_s17 + $0x80] sm:$0xff]  ;;  %v682_v35 = vld [vmem:[%s614_s17 + $0x88] sm:$0xff]  ;;  %v685_v36 = vld [vmem:[%s614_s17 + $0x90] sm:$0xff]  ;;  %v279_v56 = vsub.f32 %v642_v15, %v672_v30  ;;  %v281_v57 = vsub.f32 %v645_v16, %v249_v31  ;;  %v282_v58 = vsub.f32 %v648_v17, %v676_v32  ;;  %v307_v9 = vand.u32 2147483647, %v275_v40 }
  0x1b   : > { %v688_v37 = vld [vmem:[%s619_s20 + $0x58] sm:$0xff]  ;;  %v252_v38 = vld [vmem:[%s619_s20 + $0x60] sm:$0xff]  ;;  %v253_v39 = vld [vmem:[%s619_s20 + $0x68] sm:$0xff]  ;;  %v309_v10 = vand.u32 2147483647, %v277_v41  ;;  %v337_v30 = vadd.f32 %v308_v4, %v304_v49 }
  0x1c   : > { %v695_v42 = vld [vmem:[%s614_s17 + $0x98] sm:$0xff]  ;;  %v698_v43 = vld [vmem:[%s614_s17 + $0xa0] sm:$0xff]  ;;  %v701_v44 = vld [vmem:[%s614_s17 + $0xa8] sm:$0xff]  ;;  %v283_v63 = vsub.f32 %v653_v22, %v688_v37  ;;  %v284_v2 = vsub.f32 %v656_v23, %v252_v38  ;;  %v285_v3 = vsub.f32 %v659_v24, %v253_v39  ;;  %v312_v17 = vand.u32 2147483647, %v280_v48 }
  0x1d   : > { %v704_v45 = vld [vmem:[%s619_s20 + $0x70] sm:$0xff]  ;;  %v707_v46 = vld [vmem:[%s619_s20 + $0x78] sm:$0xff]  ;;  %v256_v53 = vld [vmem:[%s619_s20 + $0x80] sm:$0xff]  ;;  %v313_v24 = vand.u32 2147483647, %v281_v57 }
  0x1e   : > { %v713_v51 = vld [vmem:[%s614_s17 + $0xb0] sm:$0xff]  ;;  %v716_v52 = vld [vmem:[%s614_s17 + $0xb8] sm:$0xff]  ;;  %v257_v54 = vld [vmem:[%s619_s20 + $0x88] sm:$0xff]  ;;  %v286_v7 = vsub.f32 %v666_v28, %v704_v45  ;;  %v287_v8 = vsub.f32 %v669_v29, %v707_v46  ;;  %v288_v14 = vsub.f32 %v679_v34, %v256_v53  ;;  %v316_v29 = vand.u32 2147483647, %v284_v2 }
  0x1f   : > { %v721_v55 = vld [vmem:[%s619_s20 + $0x90] sm:$0xff]  ;;  %v729_v60 = vld [vmem:[%s619_s20 + $0x98] sm:$0xff]  ;;  %v260_v61 = vld [vmem:[%s619_s20 + $0xa0] sm:$0xff]  ;;  %v289_v15 = vsub.f32 %v682_v35, %v257_v54  ;;  %v310_v34 = vand.u32 2147483647, %v278_v47 }
  0x20   : > { %v261_v62 = vld [vmem:[%s619_s20 + $0xa8] sm:$0xff]  ;;  %v738_v5 = vld [vmem:[%s619_s20 + $0xb0] sm:$0xff]  ;;  %v741_v6 = vld [vmem:[%s619_s20 + $0xb8] sm:$0xff]  ;;  %v290_v16 = vsub.f32 %v685_v36, %v721_v55  ;;  %v291_v21 = vsub.f32 %v695_v42, %v729_v60  ;;  %v292_v22 = vsub.f32 %v698_v43, %v260_v61  ;;  %v317_v35 = vand.u32 2147483647, %v285_v3 }
  0x21   : > { %v232_v11 = vld [vmem:[%s614_s17 + $0xc0] sm:$0xff]  ;;  %v233_v12 = vld [vmem:[%s614_s17 + $0xc8] sm:$0xff]  ;;  %v755_v18 = vld [vmem:[%s614_s17 + $0xd0] sm:$0xff]  ;;  %v293_v23 = vsub.f32 %v701_v44, %v261_v62  ;;  %v294_v27 = vsub.f32 %v713_v51, %v738_v5  ;;  %v295_v28 = vsub.f32 %v716_v52, %v741_v6  ;;  %v350_v36 = vadd.f32 %v309_v10, %v305_v50 }
  0x22   : > { %v264_v13 = vld [vmem:[%s619_s20 + $0xc0] sm:$0xff]  ;;  %v265_v19 = vld [vmem:[%s619_s20 + $0xc8] sm:$0xff]  ;;  %v759_v20 = vld [vmem:[%s619_s20 + $0xd0] sm:$0xff]  ;;  %v320_v41 = vand.u32 2147483647, %v288_v14  ;;  %v338_v42 = vadd.f32 %v337_v30, %v312_v17  ;;  %v363_v61 = vadd.f32 %v310_v34, %v306_v59 }
  0x23   : > { %v235_v25 = vld [vmem:[%s614_s17 + $0xd8] sm:$0xff]  ;;  %v236_v31 = vld [vmem:[%s614_s17 + $0xe0] sm:$0xff]  ;;  %v296_v33 = vsub.f32 %v232_v11, %v264_v13  ;;  %v237_v37 = vld [vmem:[%s614_s17 + $0xe8] sm:$0xff]  ;;  %v297_v39 = vsub.f32 %v233_v12, %v265_v19  ;;  %v298_v40 = vsub.f32 %v755_v18, %v759_v20  ;;  %v311_v44 = vand.u32 2147483647, %v279_v56 }
  0x24   : > { %v267_v26 = vld [vmem:[%s619_s20 + $0xd8] sm:$0xff]  ;;  %v268_v32 = vld [vmem:[%s619_s20 + $0xe0] sm:$0xff]  ;;  %v269_v38 = vld [vmem:[%s619_s20 + $0xe8] sm:$0xff]  ;;  %v321_v45 = vand.u32 2147483647, %v289_v15  ;;  %v351_v46 = vadd.f32 %v350_v36, %v313_v24  ;;  %v339_v47 = vadd.f32 %v338_v42, %v316_v29 }
  0x25   : > { %v299_v43 = vsub.f32 %v235_v25, %v267_v26  ;;  %v300_v48 = vsub.f32 %v236_v31, %v268_v32  ;;  %v314_v49 = vand.u32 2147483647, %v282_v58  ;;  %v324_v51 = vand.u32 2147483647, %v292_v22  ;;  %v238_v62 = vld [vmem:[%s614_s17 + $0xf0] sm:$0xff]  ;;  %v239_v6 = vld [vmem:[%s614_s17 + $0xf8] sm:$0xff] }
  0x26   : > { %v301_v50 = vsub.f32 %v237_v37, %v269_v38  ;;  %v315_v52 = vand.u32 2147483647, %v283_v63  ;;  %v325_v53 = vand.u32 2147483647, %v293_v23  ;;  %v352_v54 = vadd.f32 %v351_v46, %v317_v35  ;;  %v270_v2 = vld [vmem:[%s619_s20 + $0xf0] sm:$0xff]  ;;  %v271_v58 = vld [vmem:[%s619_s20 + $0xf8] sm:$0xff] }
  0x27   : > { %v318_v55 = vand.u32 2147483647, %v286_v7  ;;  %v328_v57 = vand.u32 2147483647, %v296_v33  ;;  %v340_v60 = vadd.f32 %v339_v47, %v320_v41  ;;  %v319_v56 = vand.u32 2147483647, %v287_v8 }
  0x28   : > { %v329_v3 = vand.u32 2147483647, %v297_v39  ;;  %v353_v4 = vadd.f32 %v352_v54, %v321_v45  ;;  %v376_v5 = vadd.f32 %v311_v44, %v307_v9  ;;  %v322_v10 = vand.u32 2147483647, %v290_v16 }
  0x29   : > { %v332_v11 = vand.u32 2147483647, %v300_v48  ;;  %v341_v12 = vadd.f32 %v340_v60, %v324_v51  ;;  %v364_v13 = vadd.f32 %v363_v61, %v314_v49  ;;  %v323_v14 = vand.u32 2147483647, %v291_v21 }
  0x2a   : > { %v333_v63 = vand.u32 2147483647, %v301_v50  ;;  %v354_v15 = vadd.f32 %v353_v4, %v325_v53  ;;  %v377_v17 = vadd.f32 %v376_v5, %v315_v52  ;;  %v302_v7 = vsub.f32 %v238_v62, %v270_v2 }
  0x2b   : > { %v326_v18 = vand.u32 2147483647, %v294_v27  ;;  %v342_v19 = vadd.f32 %v341_v12, %v328_v57  ;;  %v365_v59 = vadd.f32 %v364_v13, %v318_v55  ;;  %v303_v20 = vsub.f32 %v239_v6, %v271_v58  ;;  %v336_v12 = vld [vmem:[#allocation2] sm:$0xf] }
  0x2c   : > { %v327_v22 = vand.u32 2147483647, %v295_v28  ;;  %v355_v8 = vadd.f32 %v354_v15, %v329_v3  ;;  %v378_v23 = vadd.f32 %v377_v17, %v319_v56  ;;  %v330_v24 = vand.u32 2147483647, %v298_v40 }
  0x2d   : > { %v343_v9 = vadd.f32 %v342_v19, %v332_v11  ;;  %v366_v25 = vadd.f32 %v365_v59, %v322_v10  ;;  %v331_v26 = vand.u32 2147483647, %v299_v43  ;;  %v334_v30 = vand.u32 2147483647, %v302_v7 }
  0x2e   : > { %v356_v16 = vadd.f32 %v355_v8, %v333_v63  ;;  %v379_v29 = vadd.f32 %v378_v23, %v323_v14  ;;  %v335_v32 = vand.u32 2147483647, %v303_v20  ;;  %v567_v45 = vmov 1966171168  }
  0x2f   : > { %v344_v31 = vrot.slane %v343_v9, 4  ;;  %v367_v21 = vadd.f32 %v366_v25, %v326_v18  ;;  %v396_v46 = vunpack.c.l.s4 %v567_v45  ;;  %v399_v52 = vshrl.u32 %v203_v0, 7 }
  0x30   : > { %v357_v33 = vrot.slane %v356_v16, 4  ;;  %v380_v34 = vadd.f32 %v379_v29, %v327_v22 }
  0x31   : > { %v345_v35 = vadd.f32 %v344_v31, %v343_v9  ;;  %v368_v27 = vadd.f32 %v367_v21, %v330_v24  ;;  %v397_v57 = vunpack.c.0.s8 %v396_v46 }
  0x32   : > { %v358_v36 = vadd.f32 %v357_v33, %v356_v16  ;;  %v381_v37 = vadd.f32 %v380_v34, %v331_v26 }
  0x33   : > { %v346_v38 = vrot.slane %v345_v35, 2  ;;  %v369_v28 = vadd.f32 %v368_v27, %v334_v30  ;;  %v400_v3 = vsub.s32 %v397_v57, %v399_v52 }
  0x34   : > { %v359_v39 = vrot.slane %v358_v36, 2  ;;  %v382_v41 = vadd.f32 %v381_v37, %v335_v32 }
  0x35   : > { %v347_v40 = vadd.f32 %v346_v38, %v345_v35  ;;  %v370_v42 = vrot.slane %v369_v28, 4 }
  0x36   : > { %v360_v44 = vadd.f32 %v359_v39, %v358_v36  ;;  %v383_v43 = vrot.slane %v382_v41, 4 }
  0x37   : > { %v348_v48 = vrot.slane %v347_v40, 1  ;;  %v371_v49 = vadd.f32 %v370_v42, %v369_v28 }
  0x38   : > { %v361_v51 = vrot.slane %v360_v44, 1  ;;  %v384_v47 = vadd.f32 %v383_v43, %v382_v41 }
  0x39   : > { %v372_v50 = vrot.slane %v371_v49, 2  ;;  %v349_v53 = vadd.f32 %v348_v48, %v347_v40 }
  0x3a   : > { %v362_v54 = vadd.f32 %v361_v51, %v360_v44  ;;  %v385_v55 = vrot.slane %v384_v47, 2 }
  0x3b   : > { %v373_v60 = vadd.f32 %v372_v50, %v371_v49 }
  0x3c   : > { %v386_v61 = vadd.f32 %v385_v55, %v384_v47  ;;  %v393_v56 = vcombine.low %v349_v53, %v362_v54 }
  0x3d   : > { %v374_v62 = vrot.slane %v373_v60, 1 }
  0x3e   : > { %v387_v2 = vrot.slane %v386_v61, 1  ;;  %v401_v58 = vrot.slane %v393_v56, %v400_v3 }
  0x3f   : > { %v375_v4 = vadd.f32 %v374_v62, %v373_v60 }
  0x40   : > { %v388_v5 = vadd.f32 %v387_v2, %v386_v61 }
  0x42   : > { %v394_v6 = vcombine.low %v375_v4, %v388_v5 }
  0x44   : > { %v408_v10 = vrot.slane %v394_v6, %v400_v3 }
  0x46   : > { %v409_v11 = vcombine.low %v401_v58, %v408_v10 }
  0x48   : > { %v416_v0 = vrot.slane %v409_v11, %v400_v3 }
  0x4a   : > { %v418_v13 = vadd.f32 %v416_v0, %v336_v12 }
  0x4c   : > { %423 = vst.msk [vmem:[#allocation2] sm:$0xf] %vm605_vm0, %v418_v13 }
  0x53   : > { %v427_v14 = vld [vmem:[#allocation2] sm:$0xf] }
  0x54   : > { %428 = vst.msk [vmem:[%s197_s24] sm:$0xf] %vm605_vm0, %v427_v14 }
  0x55 PF: > { %s12_s11 = sadd.s32 1, %s564_s11   ;;  %s804_s9 = smov %s560_s10 }
  0x56   : > { %p9_p6 = scmp.ge.s32.totalorder %s12_s11, 4   ;;  %s805_s10 = smov %s807_s12 }
  0x58   :  { %11 = sbr.rel (!%p9_p6) target bundleno = 2 (0x2), region = 69 }

// kernel: run.6
= control target key start
LH: loop header
LB: loop body
LE: loop exit
PB: predicated region body
PF: predicated region fallthrough
CT: control target
= control target key end

     0   :  { %s3522_s12 = smov 0   ;;  %s3524_s13 = smov 0   ;;  %s4330_s0 = inlined_call_operand.vmem [shape: bf16[1024,640], index: 0, kind: input, shape index: {}]   ;;  %s4331_s1 = inlined_call_operand.vmem [shape: bf16[640,128], index: 1, kind: input, shape index: {}]   ;;  %s4332_s2 = inlined_call_operand.vmem [shape: f32[1,128], index: 2, kind: input, shape index: {}]   ;;  %s4333_s3 = inlined_call_operand.vmem [shape: f32[1024,128], index: 3, kind: output, shape index: {}]  }
   0x1   :  { %s3526_s14 = smov 0  }
   0x2 LB: > { %s25_s15 = sadd.s32 1, %s3495_s13  ;;  %p2683_p0 = scmp.ge.s32.totalorder %s3499_s14, 1  ;;  %s3499_s14 = sphi %s3526_s14, %s13_s14   ;;  %s3495_s13 = sphi %s3524_s13, %s4365_s13   ;;  %s3491_s12 = sphi %s3522_s12, %s4364_s12  }
   0x3   : > { %p27_p1 = scmp.ge.s32.totalorder %s25_s15, 2  ;;  %p170_p2 = scmp.lt.s32.totalorder %s3499_s14, 3 }
   0x5   : > { %s4367_s15 = smov (%p27_p1, %s25_s15), 0  ;;  %p171_p3 = pnand %p2683_p0, %p170_p2 }
   0x7   : > { %174 = sbr.rel (%p171_p3) target bundleno = 612 (0x264), region = 32 }
   0xe   : > { %v3213_v0 = vld [vmem:[%s4331_s1] sm:$0xff]   ;;  %v3501_v1 = vmov 0   ;;  %s2684_s18 = sshll.u32 %s3491_s12, 6  ;;  %v3214_v2 = vld [vmem:[%s4331_s1 + $0x8] sm:$0xff]   ;;  %v3215_v3 = vld [vmem:[%s4331_s1 + $0x10] sm:$0xff]  }
   0xf   : > { %1580 = vmatprep.subr.bf16.mxu0 %v3501_v1  ;;  %3011 = vmatprep.subr.bf16.mxu1 %v3501_v1  ;;  %p206_p4 = scmp.lt.s32.totalorder %s2684_s18, 127  ;;  %v3216_v4 = vld [vmem:[%s4331_s1 + $0x18] sm:$0xff]   ;;  %v3217_v5 = vld [vmem:[%s4331_s1 + $0x20] sm:$0xff]   ;;  %v3218_v7 = vld [vmem:[%s4331_s1 + $0x28] sm:$0xff]  }
  0x10   : > { %1581 = vmatpush1.bf16.msra.mxu0 %v3213_v0  ;;  %3027 = vmatpush1.bf16.msra.mxu1 %v3213_v0  ;;  %v3219_v9 = vld [vmem:[%s4331_s1 + $0x30] sm:$0xff]   ;;  %v3220_v10 = vld [vmem:[%s4331_s1 + $0x38] sm:$0xff]   ;;  %v3221_v11 = vld [vmem:[%s4331_s1 + $0x40] sm:$0xff]  }
  0x11   : > { %1582 = vmatprep.subr.bf16.mxu0 %v3501_v1  ;;  %3012 = vmatprep.subr.bf16.mxu1 %v3501_v1  ;;  %s4369_s18 = smov (!%p206_p4, %s2684_s18), 127  ;;  %v3222_v12 = vld [vmem:[%s4331_s1 + $0x48] sm:$0xff]   ;;  %v3223_v13 = vld [vmem:[%s4331_s1 + $0x50] sm:$0xff]   ;;  %v3224_v14 = vld [vmem:[%s4331_s1 + $0x58] sm:$0xff]  }
  0x12   : > { %s3187_s25 = smul.u32 20, %s4369_s18  ;;  %v3225_v15 = vld [vmem:[%s4331_s1 + $0x60] sm:$0xff]   ;;  %v3226_v16 = vld [vmem:[%s4331_s1 + $0x68] sm:$0xff]   ;;  %v3227_v17 = vld [vmem:[%s4331_s1 + $0x70] sm:$0xff]   ;;  %s2687_s9 = sshll.u32 %s4369_s18, 3 }
  0x13   : > { %v3228_v18 = vld [vmem:[%s4331_s1 + $0x78] sm:$0xff]   ;;  %v3236_v19 = vld [vmem:[%s4331_s1 + $0x100] sm:$0xff]   ;;  %v3261_v25 = vld [vmem:[%s4331_s1 + $0x108] sm:$0xff]   ;;  %s4091_s11 = scalar_lea.vmem %s4333_s3, %s2687_s9 }
  0x14   : > { %1583 = vmatpush1.bf16.msra.mxu0 %v3214_v2  ;;  %3028 = vmatpush1.bf16.msra.mxu1 %v3214_v2  ;;  %s3569_s30 = scalar_lea.vmem %s4330_s0, %s3187_s25  ;;  %v3235_v22 = vld [vmem:[%s4331_s1 + $0x80] sm:$0xff]   ;;  %v3237_v26 = vld [vmem:[%s4331_s1 + $0x88] sm:$0xff]   ;;  %v3286_v27 = vld [vmem:[%s4331_s1 + $0x110] sm:$0xff]  }
  0x15   : > { %1584 = vmatprep.subr.bf16.mxu0 %v3501_v1  ;;  %3013 = vmatprep.subr.bf16.mxu1 %v3501_v1  ;;  %v3231_v6 = vld [vmem:[%s3569_s30 + $0x4] ss:$20 sps:$4 sm:$0xff]   ;;  %v3229_v20 = vld [vmem:[%s3569_s30] ss:$20 sps:$4 sm:$0xff]   ;;  %v3242_v28 = vld [vmem:[%s3569_s30 + $0x28] ss:$20 sps:$4 sm:$0xff]  }
  0x16   : > { %v3234_v8 = vld [vmem:[%s3569_s30 + $0x144] ss:$20 sps:$4 sm:$0xff]   ;;  %1612 = vmatprep.mubr.bf16.mxu0 %v3231_v6  ;;  %v3232_v21 = vld [vmem:[%s3569_s30 + $0x140] ss:$20 sps:$4 sm:$0xff]   ;;  %v3243_v29 = vld [vmem:[%s3569_s30 + $0x168] ss:$20 sps:$4 sm:$0xff]  }
  0x17   : > { %1676 = vmatprep.mubr.bf16.mxu1 %v3234_v8  ;;  %v3238_v23 = vld [vmem:[%s3569_s30 + $0x2c] ss:$20 sps:$4 sm:$0xff]   ;;  %v3244_v30 = vld [vmem:[%s4331_s1 + $0x90] sm:$0xff]   ;;  %v3308_v33 = vld [vmem:[%s4331_s1 + $0x118] sm:$0xff]  }
  0x18   : > { %1585 = vmatpush1.bf16.msra.mxu0 %v3215_v3  ;;  %3029 = vmatpush1.bf16.msra.mxu1 %v3215_v3  ;;  %v3240_v24 = vld [vmem:[%s3569_s30 + $0x16c] ss:$20 sps:$4 sm:$0xff]   ;;  %v3246_v31 = vld [vmem:[%s3569_s30 + $0x54] ss:$20 sps:$4 sm:$0xff]   ;;  %v3245_v34 = vld [vmem:[%s4331_s1 + $0x98] sm:$0xff]  }
  0x19   : > { %1586 = vmatprep.subr.bf16.mxu0 %v3501_v1  ;;  %3014 = vmatprep.subr.bf16.mxu1 %v3501_v1  ;;  %v3248_v32 = vld [vmem:[%s3569_s30 + $0x194] ss:$20 sps:$4 sm:$0xff]   ;;  %v3250_v35 = vld [vmem:[%s3569_s30 + $0x50] ss:$20 sps:$4 sm:$0xff]   ;;  %v3258_v43 = vld [vmem:[%s3569_s30 + $0x78] ss:$20 sps:$4 sm:$0xff]  }
  0x1a   : > { %v3251_v36 = vld [vmem:[%s3569_s30 + $0x190] ss:$20 sps:$4 sm:$0xff]   ;;  %v3253_v41 = vld [vmem:[%s4331_s1 + $0xa8] sm:$0xff]   ;;  %v3262_v49 = vld [vmem:[%s4331_s1 + $0xb8] sm:$0xff]  }
  0x1b   : > { %v3252_v37 = vld [vmem:[%s4331_s1 + $0xa0] sm:$0xff]   ;;  %v3254_v38 = vld [vmem:[%s3569_s30 + $0x7c] ss:$20 sps:$4 sm:$0xff]   ;;  %v3346_v42 = vld [vmem:[%s4331_s1 + $0x128] sm:$0xff]  }
  0x1c   : > { %1587 = vmatpush1.bf16.msra.mxu0 %v3216_v4  ;;  %3030 = vmatpush1.bf16.msra.mxu1 %v3216_v4  ;;  %v3256_v39 = vld [vmem:[%s3569_s30 + $0x1bc] ss:$20 sps:$4 sm:$0xff]   ;;  %v3327_v40 = vld [vmem:[%s4331_s1 + $0x120] sm:$0xff]   ;;  %v3259_v44 = vld [vmem:[%s3569_s30 + $0x1b8] ss:$20 sps:$4 sm:$0xff]  }
  0x1d   : > { %1588 = vmatprep.subr.bf16.mxu0 %v3501_v1  ;;  %3015 = vmatprep.subr.bf16.mxu1 %v3501_v1  ;;  %v3260_v45 = vld [vmem:[%s4331_s1 + $0xb0] sm:$0xff]   ;;  %v3263_v46 = vld [vmem:[%s3569_s30 + $0xa4] ss:$20 sps:$4 sm:$0xff]   ;;  %v3271_v53 = vld [vmem:[%s3569_s30 + $0xcc] ss:$20 sps:$4 sm:$0xff]  }
  0x1e   : > { %v3265_v47 = vld [vmem:[%s3569_s30 + $0x1e4] ss:$20 sps:$4 sm:$0xff]   ;;  %v3365_v48 = vld [vmem:[%s4331_s1 + $0x130] sm:$0xff]   ;;  %v3273_v54 = vld [vmem:[%s3569_s30 + $0x20c] ss:$20 sps:$4 sm:$0xff]  }
  0x1f   : > { %v3267_v50 = vld [vmem:[%s3569_s30 + $0xa0] ss:$20 sps:$4 sm:$0xff]   ;;  %v3270_v55 = vld [vmem:[%s4331_s1 + $0xc8] sm:$0xff]   ;;  %v3384_v61 = vld [vmem:[%s4331_s1 + $0x138] sm:$0xff]  }
  0x20   : > { %1589 = vmatpush1.bf16.msra.mxu0 %v3217_v5  ;;  %3031 = vmatpush1.bf16.msra.mxu1 %v3217_v5  ;;  %v3268_v51 = vld [vmem:[%s3569_s30 + $0x1e0] ss:$20 sps:$4 sm:$0xff]   ;;  %v3275_v56 = vld [vmem:[%s3569_s30 + $0xc8] ss:$20 sps:$4 sm:$0xff]   ;;  %v3283_v63 = vld [vmem:[%s3569_s30 + $0xf0] ss:$20 sps:$4 sm:$0xff]  }
  0x21   : > { %1590 = vmatprep.subr.bf16.mxu0 %v3501_v1  ;;  %3016 = vmatprep.subr.bf16.mxu1 %v3501_v1  ;;  %v3269_v52 = vld [vmem:[%s4331_s1 + $0xc0] sm:$0xff]   ;;  %v3276_v57 = vld [vmem:[%s3569_s30 + $0x208] ss:$20 sps:$4 sm:$0xff]   ;;  %v3277_v58 = vld [vmem:[%s4331_s1 + $0xd0] sm:$0xff]  }
  0x22   : > { %v3279_v59 = vld [vmem:[%s3569_s30 + $0xf4] ss:$20 sps:$4 sm:$0xff]   ;;  %v3278_v62 = vld [vmem:[%s4331_s1 + $0xd8] sm:$0xff]   ;;  %v3284_v0 = vld [vmem:[%s3569_s30 + $0x230] ss:$20 sps:$4 sm:$0xff]  }
  0x23   : > { %v3281_v60 = vld [vmem:[%s3569_s30 + $0x234] ss:$20 sps:$4 sm:$0xff]   ;;  %v3285_v2 = vld [vmem:[%s4331_s1 + $0xe0] sm:$0xff]   ;;  %v3288_v3 = vld [vmem:[%s3569_s30 + $0x11c] ss:$20 sps:$4 sm:$0xff]  }
  0x24   : > { %1591 = vmatpush1.bf16.msra.mxu0 %v3218_v7  ;;  %3032 = vmatpush1.bf16.msra.mxu1 %v3218_v7  ;;  %v3290_v4 = vld [vmem:[%s3569_s30 + $0x25c] ss:$20 sps:$4 sm:$0xff]   ;;  %v3287_v5 = vld [vmem:[%s4331_s1 + $0xe8] sm:$0xff]  }
  0x25   : > { %1592 = vmatprep.subr.bf16.mxu0 %v3501_v1  ;;  %3017 = vmatprep.subr.bf16.mxu1 %v3501_v1  ;;  %v3292_v6 = vld [vmem:[%s3569_s30 + $0x118] ss:$20 sps:$4 sm:$0xff]   ;;  %v3294_v8 = vld [vmem:[%s4331_s1 + $0xf0] sm:$0xff]  }
  0x26   : > { %v3293_v7 = vld [vmem:[%s3569_s30 + $0x258] ss:$20 sps:$4 sm:$0xff]  }
  0x28   : > { %1593 = vmatpush1.bf16.msra.mxu0 %v3219_v9  ;;  %3033 = vmatpush1.bf16.msra.mxu1 %v3219_v9  ;;  %v3296_v9 = vld [vmem:[%s3569_s30 + $0x284] ss:$20 sps:$4 sm:$0xff]  }
  0x29   : > { %1594 = vmatprep.subr.bf16.mxu0 %v3501_v1  ;;  %3018 = vmatprep.subr.bf16.mxu1 %v3501_v1 }
  0x2c   : > { %1595 = vmatpush1.bf16.msra.mxu0 %v3220_v10  ;;  %3034 = vmatpush1.bf16.msra.mxu1 %v3220_v10  ;;  %v3300_v10 = vld [vmem:[%s3569_s30 + $0xc] ss:$20 sps:$4 sm:$0xff]  }
  0x2d   : > { %1596 = vmatprep.subr.bf16.mxu0 %v3501_v1  ;;  %3019 = vmatprep.subr.bf16.mxu1 %v3501_v1 }
  0x30   : > { %1597 = vmatpush1.bf16.msra.mxu0 %v3221_v11  ;;  %3035 = vmatpush1.bf16.msra.mxu1 %v3221_v11  ;;  %v3295_v11 = vld [vmem:[%s4331_s1 + $0xf8] sm:$0xff]  }
  0x31   : > { %1598 = vmatprep.subr.bf16.mxu0 %v3501_v1  ;;  %3020 = vmatprep.subr.bf16.mxu1 %v3501_v1 }
  0x34   : > { %1599 = vmatpush1.bf16.msra.mxu0 %v3222_v12  ;;  %3036 = vmatpush1.bf16.msra.mxu1 %v3222_v12  ;;  %v3298_v12 = vld [vmem:[%s3569_s30 + $0x8] ss:$20 sps:$4 sm:$0xff]  }
  0x35   : > { %1600 = vmatprep.subr.bf16.mxu0 %v3501_v1  ;;  %3021 = vmatprep.subr.bf16.mxu1 %v3501_v1 }
  0x38   : > { %1601 = vmatpush1.bf16.msra.mxu0 %v3223_v13  ;;  %3037 = vmatpush1.bf16.msra.mxu1 %v3223_v13  ;;  %v3301_v13 = vld [vmem:[%s3569_s30 + $0x280] ss:$20 sps:$4 sm:$0xff]  }
  0x39   : > { %1602 = vmatprep.subr.bf16.mxu0 %v3501_v1  ;;  %3022 = vmatprep.subr.bf16.mxu1 %v3501_v1 }
  0x3c   : > { %1603 = vmatpush1.bf16.msra.mxu0 %v3224_v14  ;;  %3038 = vmatpush1.bf16.msra.mxu1 %v3224_v14  ;;  %v3302_v14 = vld [vmem:[%s3569_s30 + $0x2ac] ss:$20 sps:$4 sm:$0xff]  }
  0x3d   : > { %1604 = vmatprep.subr.bf16.mxu0 %v3501_v1  ;;  %3023 = vmatprep.subr.bf16.mxu1 %v3501_v1 }
  0x40   : > { %1605 = vmatpush1.bf16.msra.mxu0 %v3225_v15  ;;  %3039 = vmatpush1.bf16.msra.mxu1 %v3225_v15  ;;  %v3304_v15 = vld [vmem:[%s3569_s30 + $0x34] ss:$20 sps:$4 sm:$0xff]  }
  0x41   : > { %1606 = vmatprep.subr.bf16.mxu0 %v3501_v1  ;;  %3024 = vmatprep.subr.bf16.mxu1 %v3501_v1 }
  0x44   : > { %1607 = vmatpush1.bf16.msra.mxu0 %v3226_v16  ;;  %3040 = vmatpush1.bf16.msra.mxu1 %v3226_v16  ;;  %v3306_v16 = vld [vmem:[%s3569_s30 + $0x2a8] ss:$20 sps:$4 sm:$0xff]  }
  0x45   : > { %1608 = vmatprep.subr.bf16.mxu0 %v3501_v1  ;;  %3025 = vmatprep.subr.bf16.mxu1 %v3501_v1 }
  0x48   : > { %1609 = vmatpush1.bf16.msra.mxu0 %v3227_v17  ;;  %3041 = vmatpush1.bf16.msra.mxu1 %v3227_v17  ;;  %v3307_v17 = vld [vmem:[%s3569_s30 + $0x30] ss:$20 sps:$4 sm:$0xff]  }
  0x49   : > { %1610 = vmatprep.subr.bf16.mxu0 %v3501_v1  ;;  %3026 = vmatprep.subr.bf16.mxu1 %v3501_v1 }
  0x4c   : > { %1611 = vmatpush1.bf16.msra.mxu0 %v3228_v18  ;;  %3042 = vmatpush1.bf16.msra.mxu1 %v3228_v18  ;;  %v3309_v18 = vld [vmem:[%s3569_s30 + $0x2d4] ss:$20 sps:$4 sm:$0xff]  }
  0x4d   : > { %1869 = vmatprep.subr.bf16.mxu0 %v3501_v1  ;;  %2931 = vmatprep.subr.bf16.mxu1 %v3236_v19 }
  0x4f   : > { %1613 = vmatmul.mubr.bf16.vlgmr.msra.gmra.mrb[0].mxu0 %v3229_v20  ;;  %1677 = vmatmul.mubr.bf16.vlgmr.msra.gmra.mrb[0].mxu1 %v3232_v21  ;;  %v3314_v20 = vld [vmem:[%s3569_s30 + $0x58] ss:$20 sps:$4 sm:$0xff]   ;;  %v3315_v21 = vld [vmem:[%s3569_s30 + $0x2fc] ss:$20 sps:$4 sm:$0xff]  }
  0x50   : > { %1870 = vmatpush1.bf16.msra.mxu0 %v3235_v22  ;;  %2932 = vmatpush3.bf16.msra.mxu1 %v3236_v19  ;;  %v3313_v19 = vld [vmem:[%s3569_s30 + $0x2d0] ss:$20 sps:$4 sm:$0xff]  }
  0x51   : > { %1871 = vmatprep.subr.bf16.mxu0 %v3501_v1  ;;  %1620 = vmatprep.mubr.bf16.mxu0 %v3238_v23  ;;  %v3317_v22 = vld [vmem:[%s3569_s30 + $0x84] ss:$20 sps:$4 sm:$0xff]  }
  0x52   : > { %1684 = vmatprep.mubr.bf16.mxu1 %v3240_v24  ;;  %2933 = vmatprep.subr.bf16.mxu1 %v3261_v25  ;;  %v3319_v23 = vld [vmem:[%s3569_s30 + $0x2f8] ss:$20 sps:$4 sm:$0xff]   ;;  %v3320_v24 = vld [vmem:[%s3569_s30 + $0x80] ss:$20 sps:$4 sm:$0xff]  }
  0x54   : > { %1872 = vmatpush1.bf16.msra.mxu0 %v3237_v26  ;;  %2934 = vmatpush3.bf16.msra.mxu1 %v3261_v25  ;;  %v3321_v25 = vld [vmem:[%s3569_s30 + $0x324] ss:$20 sps:$4 sm:$0xff]   ;;  %v3323_v26 = vld [vmem:[%s3569_s30 + $0xac] ss:$20 sps:$4 sm:$0xff]  }
  0x55   : > { %1873 = vmatprep.subr.bf16.mxu0 %v3501_v1  ;;  %2935 = vmatprep.subr.bf16.mxu1 %v3286_v27 }
  0x57   : > { %1621 = vmatmul.mubr.bf16.gmra.mrb[4].mxu0 %v3242_v28  ;;  %1685 = vmatmul.mubr.bf16.gmra.mrb[4].mxu1 %v3243_v29  ;;  %v3326_v28 = vld [vmem:[%s3569_s30 + $0xa8] ss:$20 sps:$4 sm:$0xff]   ;;  %v3328_v29 = vld [vmem:[%s3569_s30 + $0x34c] ss:$20 sps:$4 sm:$0xff]  }
  0x58   : > { %1874 = vmatpush1.bf16.msra.mxu0 %v3244_v30  ;;  %1628 = vmatprep.mubr.bf16.mxu0 %v3246_v31  ;;  %v3330_v30 = vld [vmem:[%s3569_s30 + $0xd4] ss:$20 sps:$4 sm:$0xff]  }
  0x59   : > { %1875 = vmatprep.subr.bf16.mxu0 %v3501_v1  ;;  %1692 = vmatprep.mubr.bf16.mxu1 %v3248_v32  ;;  %v3332_v31 = vld [vmem:[%s3569_s30 + $0x348] ss:$20 sps:$4 sm:$0xff]   ;;  %v3333_v32 = vld [vmem:[%s3569_s30 + $0xd0] ss:$20 sps:$4 sm:$0xff]  }
  0x5a   : > { %2936 = vmatpush3.bf16.msra.mxu1 %v3286_v27  ;;  %v3325_v27 = vld [vmem:[%s3569_s30 + $0x320] ss:$20 sps:$4 sm:$0xff]  }
  0x5b   : > { %2937 = vmatprep.subr.bf16.mxu1 %v3308_v33 }
  0x5c   : > { %1876 = vmatpush1.bf16.msra.mxu0 %v3245_v34  ;;  %v3336_v34 = vld [vmem:[%s3569_s30 + $0xfc] ss:$20 sps:$4 sm:$0xff]  }
  0x5d   : > { %1877 = vmatprep.subr.bf16.mxu0 %v3501_v1 }
  0x5e   : > { %2938 = vmatpush3.bf16.msra.mxu1 %v3308_v33  ;;  %v3334_v33 = vld [vmem:[%s3569_s30 + $0x374] ss:$20 sps:$4 sm:$0xff]  }
  0x5f   : > { %1629 = vmatmul.mubr.bf16.gmra.mrb[8].mxu0 %v3250_v35  ;;  %1693 = vmatmul.mubr.bf16.gmra.mrb[8].mxu1 %v3251_v36  ;;  %v3338_v35 = vld [vmem:[%s3569_s30 + $0x370] ss:$20 sps:$4 sm:$0xff]   ;;  %v3339_v36 = vld [vmem:[%s3569_s30 + $0xf8] ss:$20 sps:$4 sm:$0xff]  }
  0x60   : > { %1878 = vmatpush1.bf16.msra.mxu0 %v3252_v37  ;;  %1636 = vmatprep.mubr.bf16.mxu0 %v3254_v38  ;;  %v3340_v37 = vld [vmem:[%s3569_s30 + $0x39c] ss:$20 sps:$4 sm:$0xff]   ;;  %v3342_v38 = vld [vmem:[%s3569_s30 + $0x124] ss:$20 sps:$4 sm:$0xff]  }
  0x61   : > { %1879 = vmatprep.subr.bf16.mxu0 %v3501_v1  ;;  %1700 = vmatprep.mubr.bf16.mxu1 %v3256_v39  ;;  %v3344_v39 = vld [vmem:[%s3569_s30 + $0x398] ss:$20 sps:$4 sm:$0xff]  }
  0x62   : > { %2939 = vmatprep.subr.bf16.mxu1 %v3327_v40 }
  0x63   : > { %2940 = vmatpush3.bf16.msra.mxu1 %v3327_v40  ;;  %v3345_v40 = vld [vmem:[%s3569_s30 + $0x120] ss:$20 sps:$4 sm:$0xff]  }
  0x64   : > { %1880 = vmatpush1.bf16.msra.mxu0 %v3253_v41  ;;  %2941 = vmatprep.subr.bf16.mxu1 %v3346_v42  ;;  %v3347_v41 = vld [vmem:[%s3569_s30 + $0x3c4] ss:$20 sps:$4 sm:$0xff]  }
  0x65   : > { %1881 = vmatprep.subr.bf16.mxu0 %v3501_v1 }
  0x67   : > { %1637 = vmatmul.mubr.bf16.gmra.mrb[12].mxu0 %v3258_v43  ;;  %1701 = vmatmul.mubr.bf16.gmra.mrb[12].mxu1 %v3259_v44  ;;  %v3351_v43 = vld [vmem:[%s3569_s30 + $0x3c0] ss:$20 sps:$4 sm:$0xff]   ;;  %v3352_v44 = vld [vmem:[%s3569_s30 + $0x148] ss:$20 sps:$4 sm:$0xff]  }
  0x68   : > { %1882 = vmatpush1.bf16.msra.mxu0 %v3260_v45  ;;  %1644 = vmatprep.mubr.bf16.mxu0 %v3263_v46  ;;  %v3353_v45 = vld [vmem:[%s3569_s30 + $0x3ec] ss:$20 sps:$4 sm:$0xff]   ;;  %v3355_v46 = vld [vmem:[%s3569_s30 + $0x174] ss:$20 sps:$4 sm:$0xff]  }
  0x69   : > { %1883 = vmatprep.subr.bf16.mxu0 %v3501_v1  ;;  %1708 = vmatprep.mubr.bf16.mxu1 %v3265_v47  ;;  %v3357_v47 = vld [vmem:[%s3569_s30 + $0x3e8] ss:$20 sps:$4 sm:$0xff]  }
  0x6a   : > { %2942 = vmatpush3.bf16.msra.mxu1 %v3346_v42  ;;  %v3349_v42 = vld [vmem:[%s3569_s30 + $0x14c] ss:$20 sps:$4 sm:$0xff]  }
  0x6b   : > { %2943 = vmatprep.subr.bf16.mxu1 %v3365_v48 }
  0x6c   : > { %1884 = vmatpush1.bf16.msra.mxu0 %v3262_v49  ;;  %v3359_v49 = vld [vmem:[%s3569_s30 + $0x414] ss:$20 sps:$4 sm:$0xff]  }
  0x6d   : > { %1885 = vmatprep.subr.bf16.mxu0 %v3501_v1 }
  0x6e   : > { %2944 = vmatpush3.bf16.msra.mxu1 %v3365_v48  ;;  %v3358_v48 = vld [vmem:[%s3569_s30 + $0x170] ss:$20 sps:$4 sm:$0xff]  }
  0x6f   : > { %1645 = vmatmul.mubr.bf16.gmra.mrb[16].mxu0 %v3267_v50  ;;  %1709 = vmatmul.mubr.bf16.gmra.mrb[16].mxu1 %v3268_v51  ;;  %v3361_v50 = vld [vmem:[%s3569_s30 + $0x19c] ss:$20 sps:$4 sm:$0xff]  }
  0x70   : > { %1886 = vmatpush1.bf16.msra.mxu0 %v3269_v52  ;;  %1652 = vmatprep.mubr.bf16.mxu0 %v3271_v53  ;;  %v3363_v51 = vld [vmem:[%s3569_s30 + $0x410] ss:$20 sps:$4 sm:$0xff]   ;;  %v3364_v52 = vld [vmem:[%s3569_s30 + $0x198] ss:$20 sps:$4 sm:$0xff]  }
  0x71   : > { %1887 = vmatprep.subr.bf16.mxu0 %v3501_v1  ;;  %1716 = vmatprep.mubr.bf16.mxu1 %v3273_v54  ;;  %v3366_v53 = vld [vmem:[%s3569_s30 + $0x43c] ss:$20 sps:$4 sm:$0xff]   ;;  %v3368_v54 = vld [vmem:[%s3569_s30 + $0x1c4] ss:$20 sps:$4 sm:$0xff]  }
  0x72   : > { %2945 = vmatprep.subr.bf16.mxu1 %v3384_v61 }
  0x73   : > { %2946 = vmatpush3.bf16.msra.mxu1 %v3384_v61  ;;  %v3378_v61 = vld [vmem:[%s3569_s30 + $0x48c] ss:$20 sps:$4 sm:$0xff]  }
  0x74   : > { %1888 = vmatpush1.bf16.msra.mxu0 %v3270_v55  ;;  %v3370_v55 = vld [vmem:[%s3569_s30 + $0x438] ss:$20 sps:$4 sm:$0xff]  }
  0x75   : > { %1889 = vmatprep.subr.bf16.mxu0 %v3501_v1 }
  0x77   : > { %1653 = vmatmul.mubr.bf16.gmra.mrb[20].mxu0 %v3275_v56  ;;  %1717 = vmatmul.mubr.bf16.gmra.mrb[20].mxu1 %v3276_v57  ;;  %v3371_v56 = vld [vmem:[%s3569_s30 + $0x1c0] ss:$20 sps:$4 sm:$0xff]   ;;  %v3372_v57 = vld [vmem:[%s3569_s30 + $0x464] ss:$20 sps:$4 sm:$0xff]  }
  0x78   : > { %1890 = vmatpush1.bf16.msra.mxu0 %v3277_v58  ;;  %1660 = vmatprep.mubr.bf16.mxu0 %v3279_v59  ;;  %v3374_v58 = vld [vmem:[%s3569_s30 + $0x1ec] ss:$20 sps:$4 sm:$0xff]  }
  0x79   : > { %1891 = vmatprep.subr.bf16.mxu0 %v3501_v1  ;;  %1724 = vmatprep.mubr.bf16.mxu1 %v3281_v60  ;;  %v3376_v59 = vld [vmem:[%s3569_s30 + $0x460] ss:$20 sps:$4 sm:$0xff]   ;;  %v3377_v60 = vld [vmem:[%s3569_s30 + $0x1e8] ss:$20 sps:$4 sm:$0xff]  }
  0x7c   : > { %1892 = vmatpush1.bf16.msra.mxu0 %v3278_v62  ;;  %v3380_v62 = vld [vmem:[%s3569_s30 + $0x214] ss:$20 sps:$4 sm:$0xff]  }
  0x7d   : > { %1893 = vmatprep.subr.bf16.mxu0 %v3501_v1 }
  0x7f   : > { %1661 = vmatmul.mubr.bf16.gmra.mrb[24].mxu0 %v3283_v63  ;;  %1725 = vmatmul.mubr.bf16.gmra.mrb[24].mxu1 %v3284_v0  ;;  %v3382_v63 = vld [vmem:[%s3569_s30 + $0x488] ss:$20 sps:$4 sm:$0xff]   ;;  %v3383_v0 = vld [vmem:[%s3569_s30 + $0x210] ss:$20 sps:$4 sm:$0xff]  }
  0x80   : > { %1894 = vmatpush1.bf16.msra.mxu0 %v3285_v2  ;;  %1668 = vmatprep.mubr.bf16.mxu0 %v3288_v3  ;;  %v3385_v2 = vld [vmem:[%s3569_s30 + $0x4b4] ss:$20 sps:$4 sm:$0xff]   ;;  %v3387_v3 = vld [vmem:[%s3569_s30 + $0x23c] ss:$20 sps:$4 sm:$0xff]  }
  0x81   : > { %1895 = vmatprep.subr.bf16.mxu0 %v3501_v1  ;;  %1732 = vmatprep.mubr.bf16.mxu1 %v3290_v4  ;;  %v3389_v4 = vld [vmem:[%s3569_s30 + $0x4b0] ss:$20 sps:$4 sm:$0xff]  }
  0x84   : > { %1896 = vmatpush1.bf16.msra.mxu0 %v3287_v5  ;;  %v3390_v5 = vld [vmem:[%s3569_s30 + $0x238] ss:$20 sps:$4 sm:$0xff]  }
  0x85   : > { %1897 = vmatprep.subr.bf16.mxu0 %v3501_v1 }
  0x87   : > { %1669 = vmatmul.mubr.bf16.gmra.mrb[28].mxu0 %v3292_v6  ;;  %1733 = vmatmul.mubr.bf16.gmra.mrb[28].mxu1 %v3293_v7  ;;  %v3391_v6 = vld [vmem:[%s3569_s30 + $0x4dc] ss:$20 sps:$4 sm:$0xff]   ;;  %v3393_v7 = vld [vmem:[%s3569_s30 + $0x264] ss:$20 sps:$4 sm:$0xff]  }
  0x88   : > { %1898 = vmatpush1.bf16.msra.mxu0 %v3294_v8  ;;  %1740 = vmatprep.mubr.bf16.mxu1 %v3296_v9  ;;  %v3395_v8 = vld [vmem:[%s3569_s30 + $0x4d8] ss:$20 sps:$4 sm:$0xff]   ;;  %v3396_v9 = vld [vmem:[%s3569_s30 + $0x260] ss:$20 sps:$4 sm:$0xff]  }
  0x89   : > { %1899 = vmatprep.subr.bf16.mxu0 %v3501_v1  ;;  %1901 = vmatprep.mubr.bf16.mxu0 %v3300_v10  ;;  %v3311_v1 = vld [vmem:[%s3569_s30 + $0x5c] ss:$20 sps:$4 sm:$0xff]   ;;  %v3397_v10 = vld [vmem:[%s3569_s30 + $0x28c] ss:$20 sps:$4 sm:$0xff]  }
  0x8c   : > { %1900 = vmatpush1.bf16.msra.mxu0 %v3295_v11  ;;  %v3399_v11 = vld [vmem:[%s3569_s30 + $0x10] ss:$20 sps:$4 sm:$0xff]  }
  0x8f   : > { %1741 = vmatmul.mubr.bf16.gmra.mrb[32].mxu1 %v3301_v13  ;;  %1902 = vmatmul.mubr.bf16.vlgmr.msra.gmra.mrb[0].mxu0 %v3298_v12  ;;  %v3400_v12 = vld [vmem:[%s3569_s30 + $0x288] ss:$20 sps:$4 sm:$0xff]   ;;  %v3401_v13 = vld [vmem:[%s3569_s30 + $0x38] ss:$20 sps:$4 sm:$0xff]  }
  0x90   : > { %1748 = vmatprep.mubr.bf16.mxu1 %v3302_v14  ;;  %1909 = vmatprep.mubr.bf16.mxu0 %v3304_v15  ;;  %v3402_v14 = vld [vmem:[%s3569_s30 + $0x2b4] ss:$20 sps:$4 sm:$0xff]  }
  0x91   : > { %v3404_v15 = vld [vmem:[%s3569_s30 + $0x60] ss:$20 sps:$4 sm:$0xff]  }
  0x97   : > { %1749 = vmatmul.mubr.bf16.gmra.mrb[36].mxu1 %v3306_v16  ;;  %1910 = vmatmul.mubr.bf16.gmra.mrb[4].mxu0 %v3307_v17  ;;  %v3405_v16 = vld [vmem:[%s3569_s30 + $0x2b0] ss:$20 sps:$4 sm:$0xff]   ;;  %v3406_v17 = vld [vmem:[%s3569_s30 + $0x88] ss:$20 sps:$4 sm:$0xff]  }
  0x98   : > { %1756 = vmatprep.mubr.bf16.mxu1 %v3309_v18  ;;  %1917 = vmatprep.mubr.bf16.mxu0 %v3311_v1  ;;  %v3407_v18 = vld [vmem:[%s3569_s30 + $0x2dc] ss:$20 sps:$4 sm:$0xff]  }
  0x99   : > { %v3409_v1 = vld [vmem:[%s3569_s30 + $0xb0] ss:$20 sps:$4 sm:$0xff]  }
  0x9f   : > { %1757 = vmatmul.mubr.bf16.gmra.mrb[40].mxu1 %v3313_v19  ;;  %1918 = vmatmul.mubr.bf16.gmra.mrb[8].mxu0 %v3314_v20  ;;  %v3410_v19 = vld [vmem:[%s3569_s30 + $0x2d8] ss:$20 sps:$4 sm:$0xff]  }
  0xa0   : > { %1764 = vmatprep.mubr.bf16.mxu1 %v3315_v21  ;;  %1925 = vmatprep.mubr.bf16.mxu0 %v3317_v22  ;;  %v3411_v20 = vld [vmem:[%s3569_s30 + $0xd8] ss:$20 sps:$4 sm:$0xff]   ;;  %v3414_v22 = vld [vmem:[%s3569_s30 + $0x100] ss:$20 sps:$4 sm:$0xff]  }
  0xa1   : > { %v3412_v21 = vld [vmem:[%s3569_s30 + $0x304] ss:$20 sps:$4 sm:$0xff]  }
  0xa7   : > { %1765 = vmatmul.mubr.bf16.gmra.mrb[44].mxu1 %v3319_v23  ;;  %1926 = vmatmul.mubr.bf16.gmra.mrb[12].mxu0 %v3320_v24 }
  0xa8   : > { %1772 = vmatprep.mubr.bf16.mxu1 %v3321_v25  ;;  %1933 = vmatprep.mubr.bf16.mxu0 %v3323_v26  ;;  %v3415_v25 = vld [vmem:[%s3569_s30 + $0x300] ss:$20 sps:$4 sm:$0xff]   ;;  %v3416_v26 = vld [vmem:[%s3569_s30 + $0x128] ss:$20 sps:$4 sm:$0xff]  }
  0xaf   : > { %1773 = vmatmul.mubr.bf16.gmra.mrb[48].mxu1 %v3325_v27  ;;  %1934 = vmatmul.mubr.bf16.gmra.mrb[16].mxu0 %v3326_v28  ;;  %v3417_v28 = vld [vmem:[%s3569_s30 + $0x32c] ss:$20 sps:$4 sm:$0xff]  }
  0xb0   : > { %1780 = vmatprep.mubr.bf16.mxu1 %v3328_v29  ;;  %1941 = vmatprep.mubr.bf16.mxu0 %v3330_v30  ;;  %v3419_v29 = vld [vmem:[%s3569_s30 + $0x150] ss:$20 sps:$4 sm:$0xff]  }
  0xb7   : > { %1781 = vmatmul.mubr.bf16.gmra.mrb[52].mxu1 %v3332_v31  ;;  %1942 = vmatmul.mubr.bf16.gmra.mrb[20].mxu0 %v3333_v32 }
  0xb8   : > { %1788 = vmatprep.mubr.bf16.mxu1 %v3334_v33  ;;  %1949 = vmatprep.mubr.bf16.mxu0 %v3336_v34  ;;  %v3420_v33 = vld [vmem:[%s3569_s30 + $0x328] ss:$20 sps:$4 sm:$0xff]   ;;  %v3421_v34 = vld [vmem:[%s3569_s30 + $0x178] ss:$20 sps:$4 sm:$0xff]  }
  0xbf   : > { %1789 = vmatmul.mubr.bf16.gmra.mrb[56].mxu1 %v3338_v35  ;;  %1950 = vmatmul.mubr.bf16.gmra.mrb[24].mxu0 %v3339_v36  ;;  %v3422_v36 = vld [vmem:[%s3569_s30 + $0x354] ss:$20 sps:$4 sm:$0xff]  }
  0xc0   : > { %1796 = vmatprep.mubr.bf16.mxu1 %v3340_v37  ;;  %1957 = vmatprep.mubr.bf16.mxu0 %v3342_v38  ;;  %v3424_v37 = vld [vmem:[%s3569_s30 + $0x1a0] ss:$20 sps:$4 sm:$0xff]  }
  0xc7   : > { %1797 = vmatmul.mubr.bf16.gmra.mrb[60].mxu1 %v3344_v39  ;;  %1958 = vmatmul.mubr.bf16.gmra.mrb[28].mxu0 %v3345_v40 }
  0xc8   : > { %1804 = vmatprep.mubr.bf16.mxu1 %v3347_v41  ;;  %1965 = vmatprep.mubr.bf16.mxu0 %v3349_v42  ;;  %v3425_v41 = vld [vmem:[%s3569_s30 + $0x350] ss:$20 sps:$4 sm:$0xff]   ;;  %v3426_v42 = vld [vmem:[%s3569_s30 + $0x1c8] ss:$20 sps:$4 sm:$0xff]  }
  0xcf   : > { %1805 = vmatmul.mubr.bf16.gmra.mrb[64].mxu1 %v3351_v43  ;;  %1966 = vmatmul.mubr.bf16.gmra.mrb[32].mxu0 %v3352_v44  ;;  %v3427_v44 = vld [vmem:[%s3569_s30 + $0x37c] ss:$20 sps:$4 sm:$0xff]  }
  0xd0   : > { %1812 = vmatprep.mubr.bf16.mxu1 %v3353_v45  ;;  %1973 = vmatprep.mubr.bf16.mxu0 %v3355_v46  ;;  %v3429_v45 = vld [vmem:[%s3569_s30 + $0x1f0] ss:$20 sps:$4 sm:$0xff]  }
  0xd7   : > { %1813 = vmatmul.mubr.bf16.gmra.mrb[68].mxu1 %v3357_v47  ;;  %1974 = vmatmul.mubr.bf16.gmra.mrb[36].mxu0 %v3358_v48 }
  0xd8   : > { %1820 = vmatprep.mubr.bf16.mxu1 %v3359_v49  ;;  %1981 = vmatprep.mubr.bf16.mxu0 %v3361_v50  ;;  %v3430_v49 = vld [vmem:[%s3569_s30 + $0x378] ss:$20 sps:$4 sm:$0xff]  }
  0xd9   : > { %v3431_v50 = vld [vmem:[%s3569_s30 + $0x218] ss:$20 sps:$4 sm:$0xff]  }
  0xdf   : > { %1821 = vmatmul.mubr.bf16.gmra.mrb[72].mxu1 %v3363_v51  ;;  %1982 = vmatmul.mubr.bf16.gmra.mrb[40].mxu0 %v3364_v52  ;;  %v3432_v52 = vld [vmem:[%s3569_s30 + $0x3a4] ss:$20 sps:$4 sm:$0xff]  }
  0xe0   : > { %1828 = vmatprep.mubr.bf16.mxu1 %v3366_v53  ;;  %1989 = vmatprep.mubr.bf16.mxu0 %v3368_v54  ;;  %v3434_v53 = vld [vmem:[%s3569_s30 + $0x240] ss:$20 sps:$4 sm:$0xff]  }
  0xe7   : > { %1829 = vmatmul.mubr.bf16.gmra.mrb[76].mxu1 %v3370_v55  ;;  %1990 = vmatmul.mubr.bf16.gmra.mrb[44].mxu0 %v3371_v56 }
  0xe8   : > { %1836 = vmatprep.mubr.bf16.mxu1 %v3372_v57  ;;  %1997 = vmatprep.mubr.bf16.mxu0 %v3374_v58  ;;  %v3435_v57 = vld [vmem:[%s3569_s30 + $0x3a0] ss:$20 sps:$4 sm:$0xff]   ;;  %v3436_v58 = vld [vmem:[%s3569_s30 + $0x268] ss:$20 sps:$4 sm:$0xff]  }
  0xef   : > { %1837 = vmatmul.mubr.bf16.gmra.mrb[80].mxu1 %v3376_v59  ;;  %1998 = vmatmul.mubr.bf16.gmra.mrb[48].mxu0 %v3377_v60  ;;  %v3437_v60 = vld [vmem:[%s3569_s30 + $0x3cc] ss:$20 sps:$4 sm:$0xff]  }
  0xf0   : > { %1844 = vmatprep.mubr.bf16.mxu1 %v3378_v61  ;;  %2005 = vmatprep.mubr.bf16.mxu0 %v3380_v62  ;;  %v3439_v61 = vld [vmem:[%s3569_s30 + $0x290] ss:$20 sps:$4 sm:$0xff]  }
  0xf7   : > { %1845 = vmatmul.mubr.bf16.gmra.mrb[84].mxu1 %v3382_v63  ;;  %2006 = vmatmul.mubr.bf16.gmra.mrb[52].mxu0 %v3383_v0 }
  0xf8   : > { %1852 = vmatprep.mubr.bf16.mxu1 %v3385_v2  ;;  %2013 = vmatprep.mubr.bf16.mxu0 %v3387_v3  ;;  %v3440_v2 = vld [vmem:[%s3569_s30 + $0x3c8] ss:$20 sps:$4 sm:$0xff]   ;;  %v3441_v3 = vld [vmem:[%s3569_s30 + $0x2b8] ss:$20 sps:$4 sm:$0xff]  }
  0xff   : > { %1853 = vmatmul.mubr.bf16.gmra.mrb[88].mxu1 %v3389_v4  ;;  %2014 = vmatmul.mubr.bf16.gmra.mrb[56].mxu0 %v3390_v5  ;;  %v3442_v5 = vld [vmem:[%s3569_s30 + $0x3f4] ss:$20 sps:$4 sm:$0xff]  }
 0x100   : > { %1860 = vmatprep.mubr.bf16.mxu1 %v3391_v6  ;;  %2021 = vmatprep.mubr.bf16.mxu0 %v3393_v7  ;;  %v3444_v6 = vld [vmem:[%s3569_s30 + $0x2e0] ss:$20 sps:$4 sm:$0xff]  }
 0x107   : > { %1861 = vmatmul.mubr.bf16.gmra.mrb[92].mxu1 %v3395_v8  ;;  %2022 = vmatmul.mubr.bf16.gmra.mrb[60].mxu0 %v3396_v9 }
 0x108   : > { %2029 = vmatprep.mubr.bf16.mxu0 %v3397_v10  ;;  %2947 = vmatprep.mubr.bf16.mxu1 %v3399_v11  ;;  %v3445_v10 = vld [vmem:[%s3569_s30 + $0x3f0] ss:$20 sps:$4 sm:$0xff]   ;;  %v3446_v11 = vld [vmem:[%s3569_s30 + $0x308] ss:$20 sps:$4 sm:$0xff]  }
 0x10f   : > { %2030 = vmatmul.mubr.bf16.gmra.mrb[64].mxu0 %v3400_v12  ;;  %2948 = vmatmul.mubr.bf16.vlgmr.msra.gmra.mrb[96].mxu1 %v3401_v13  ;;  %v3447_v13 = vld [vmem:[%s3569_s30 + $0x41c] ss:$20 sps:$4 sm:$0xff]  }
 0x110   : > { %2037 = vmatprep.mubr.bf16.mxu0 %v3402_v14  ;;  %2951 = vmatprep.mubr.bf16.mxu1 %v3404_v15  ;;  %v3449_v14 = vld [vmem:[%s3569_s30 + $0x330] ss:$20 sps:$4 sm:$0xff]  }
 0x117   : > { %2038 = vmatmul.mubr.bf16.gmra.mrb[68].mxu0 %v3405_v16  ;;  %2952 = vmatmul.mubr.bf16.gmra.mrb[100].mxu1 %v3406_v17 }
 0x118   : > { %2045 = vmatprep.mubr.bf16.mxu0 %v3407_v18  ;;  %2955 = vmatprep.mubr.bf16.mxu1 %v3409_v1  ;;  %v3450_v18 = vld [vmem:[%s3569_s30 + $0x418] ss:$20 sps:$4 sm:$0xff]  }
 0x119   : > { %v3451_v1 = vld [vmem:[%s3569_s30 + $0x358] ss:$20 sps:$4 sm:$0xff]  }
 0x11f   : > { %2046 = vmatmul.mubr.bf16.gmra.mrb[72].mxu0 %v3410_v19  ;;  %2956 = vmatmul.mubr.bf16.gmra.mrb[104].mxu1 %v3411_v20  ;;  %v3452_v20 = vld [vmem:[%s3569_s30 + $0x444] ss:$20 sps:$4 sm:$0xff]  }
 0x120   : > { %2053 = vmatprep.mubr.bf16.mxu0 %v3412_v21  ;;  %2959 = vmatprep.mubr.bf16.mxu1 %v3414_v22  ;;  %v3454_v21 = vld [vmem:[%s3569_s30 + $0x380] ss:$20 sps:$4 sm:$0xff]  }
 0x122   : > { %v3826_v23 = vpop.f32.mrb[0].mxu1 }
 0x123   : > { %v1680_v24 = vpop.f32.mrb[1].mxu1 }
 0x124   : > { %v3830_v27 = vpop.f32.mrb[2].mxu1 }
 0x125   : > { %v1683_v30 = vpop.f32.mrb[3].mxu1 }
 0x126   : > { %v3456_v30 = vld [vmem:[%s3569_s30 + $0x3a8] ss:$20 sps:$4 sm:$0xff]  }
 0x127   : > { %2054 = vmatmul.mubr.bf16.gmra.mrb[76].mxu0 %v3415_v25  ;;  %2960 = vmatmul.mubr.bf16.gmra.mrb[108].mxu1 %v3416_v26 }
 0x128   : > { %2061 = vmatprep.mubr.bf16.mxu0 %v3417_v28  ;;  %2963 = vmatprep.mubr.bf16.mxu1 %v3419_v29  ;;  %v3455_v29 = vld [vmem:[%s3569_s30 + $0x440] ss:$20 sps:$4 sm:$0xff]  }
 0x12a   : > { %v3834_v31 = vpop.f32.mrb[4].mxu1 }
 0x12b   : > { %v1688_v32 = vpop.f32.mrb[5].mxu1 }
 0x12c   : > { %v3838_v35 = vpop.f32.mrb[6].mxu1 }
 0x12d   : > { %v1691_v38 = vpop.f32.mrb[7].mxu1 }
 0x12f   : > { %2062 = vmatmul.mubr.bf16.gmra.mrb[80].mxu0 %v3420_v33  ;;  %2964 = vmatmul.mubr.bf16.gmra.mrb[112].mxu1 %v3421_v34  ;;  %v3457_v34 = vld [vmem:[%s3569_s30 + $0x46c] ss:$20 sps:$4 sm:$0xff]  }
 0x130   : > { %2069 = vmatprep.mubr.bf16.mxu0 %v3422_v36  ;;  %2967 = vmatprep.mubr.bf16.mxu1 %v3424_v37  ;;  %v3459_v36 = vld [vmem:[%s3569_s30 + $0x3d0] ss:$20 sps:$4 sm:$0xff]  }
 0x132   : > { %v3842_v39 = vpop.f32.mrb[8].mxu1 }
 0x133   : > { %v1696_v40 = vpop.f32.mrb[9].mxu1 }
 0x134   : > { %v3846_v43 = vpop.f32.mrb[10].mxu1 }
 0x135   : > { %v1699_v46 = vpop.f32.mrb[11].mxu1 }
 0x136   : > { %v3461_v46 = vld [vmem:[%s3569_s30 + $0x3f8] ss:$20 sps:$4 sm:$0xff]  }
 0x137   : > { %2070 = vmatmul.mubr.bf16.gmra.mrb[84].mxu0 %v3425_v41  ;;  %2968 = vmatmul.mubr.bf16.gmra.mrb[116].mxu1 %v3426_v42 }
 0x138   : > { %2077 = vmatprep.mubr.bf16.mxu0 %v3427_v44  ;;  %2971 = vmatprep.mubr.bf16.mxu1 %v3429_v45  ;;  %v3460_v45 = vld [vmem:[%s3569_s30 + $0x468] ss:$20 sps:$4 sm:$0xff]  }
 0x13a   : > { %v3850_v47 = vpop.f32.mrb[12].mxu1 }
 0x13b   : > { %v1704_v48 = vpop.f32.mrb[13].mxu1 }
 0x13c   : > { %v3854_v51 = vpop.f32.mrb[14].mxu1 }
 0x13d   : > { %v1707_v54 = vpop.f32.mrb[15].mxu1 }
 0x13f   : > { %2078 = vmatmul.mubr.bf16.gmra.mrb[88].mxu0 %v3430_v49  ;;  %2972 = vmatmul.mubr.bf16.gmra.mrb[120].mxu1 %v3431_v50  ;;  %v3462_v50 = vld [vmem:[%s3569_s30 + $0x494] ss:$20 sps:$4 sm:$0xff]  }
 0x140   : > { %2085 = vmatprep.mubr.bf16.mxu0 %v3432_v52  ;;  %2975 = vmatprep.mubr.bf16.mxu1 %v3434_v53  ;;  %v3464_v52 = vld [vmem:[%s3569_s30 + $0x420] ss:$20 sps:$4 sm:$0xff]  }
 0x142   : > { %v3858_v55 = vpop.f32.mrb[16].mxu1 }
 0x143   : > { %v1712_v56 = vpop.f32.mrb[17].mxu1 }
 0x144   : > { %v3862_v59 = vpop.f32.mrb[18].mxu1 }
 0x145   : > { %v1715_v62 = vpop.f32.mrb[19].mxu1 }
 0x146   : > { %v3466_v62 = vld [vmem:[%s3569_s30 + $0x448] ss:$20 sps:$4 sm:$0xff]  }
 0x147   : > { %2086 = vmatmul.mubr.bf16.gmra.mrb[92].mxu0 %v3435_v57  ;;  %2976 = vmatmul.mubr.bf16.gmra.mrb[124].mxu1 %v3436_v58 }
 0x148   : > { %2093 = vmatprep.mubr.bf16.mxu0 %v3437_v60  ;;  %2979 = vmatprep.mubr.bf16.mxu1 %v3439_v61  ;;  %v3465_v61 = vld [vmem:[%s3569_s30 + $0x490] ss:$20 sps:$4 sm:$0xff]  }
 0x14a   : > { %v3866_v63 = vpop.f32.mrb[20].mxu1 }
 0x14b   : > { %v1720_v0 = vpop.f32.mrb[21].mxu1 }
 0x14c   : > { %v3870_v4 = vpop.f32.mrb[22].mxu1 }
 0x14d   : > { %v1723_v7 = vpop.f32.mrb[23].mxu1 }
 0x14f   : > { %2094 = vmatmul.mubr.bf16.gmra.mrb[96].mxu0 %v3440_v2  ;;  %2980 = vmatmul.mubr.bf16.gmra.mrb[128].mxu1 %v3441_v3  ;;  %v3467_v3 = vld [vmem:[%s3569_s30 + $0x4bc] ss:$20 sps:$4 sm:$0xff]  }
 0x150   : > { %2101 = vmatprep.mubr.bf16.mxu0 %v3442_v5  ;;  %2983 = vmatprep.mubr.bf16.mxu1 %v3444_v6  ;;  %v3469_v5 = vld [vmem:[%s3569_s30 + $0x470] ss:$20 sps:$4 sm:$0xff]  }
 0x152   : > { %v3874_v8 = vpop.f32.mrb[24].mxu1 }
 0x153   : > { %v1728_v9 = vpop.f32.mrb[25].mxu1 }
 0x154   : > { %v3878_v12 = vpop.f32.mrb[26].mxu1 }
 0x155   : > { %v1731_v15 = vpop.f32.mrb[27].mxu1 }
 0x156   : > { %v3471_v15 = vld [vmem:[%s3569_s30 + $0x498] ss:$20 sps:$4 sm:$0xff]  }
 0x157   : > { %2102 = vmatmul.mubr.bf16.gmra.mrb[100].mxu0 %v3445_v10  ;;  %2984 = vmatmul.mubr.bf16.gmra.mrb[132].mxu1 %v3446_v11 }
 0x158   : > { %2109 = vmatprep.mubr.bf16.mxu0 %v3447_v13  ;;  %2987 = vmatprep.mubr.bf16.mxu1 %v3449_v14  ;;  %v3470_v14 = vld [vmem:[%s3569_s30 + $0x4b8] ss:$20 sps:$4 sm:$0xff]  }
 0x15a   : > { %v3882_v16 = vpop.f32.mrb[28].mxu1 }
 0x15b   : > { %v1736_v17 = vpop.f32.mrb[29].mxu1 }
 0x15c   : > { %v3886_v19 = vpop.f32.mrb[30].mxu1 }
 0x15d   : > { %v1739_v22 = vpop.f32.mrb[31].mxu1 }
 0x15f   : > { %2110 = vmatmul.mubr.bf16.gmra.mrb[104].mxu0 %v3450_v18  ;;  %2988 = vmatmul.mubr.bf16.gmra.mrb[136].mxu1 %v3451_v1  ;;  %v3472_v1 = vld [vmem:[%s3569_s30 + $0x4e4] ss:$20 sps:$4 sm:$0xff]  }
 0x160   : > { %2117 = vmatprep.mubr.bf16.mxu0 %v3452_v20  ;;  %2991 = vmatprep.mubr.bf16.mxu1 %v3454_v21  ;;  %v3474_v20 = vld [vmem:[%s3569_s30 + $0x4c0] ss:$20 sps:$4 sm:$0xff]  }
 0x162   : > { %v3890_v24 = vpop.f32.mrb[32].mxu1  ;;  %v3892_v25 = vpop.f32.mrb[0].mxu0 }
 0x163   : > { %v1744_v26 = vpop.f32.mrb[33].mxu1  ;;  %v1905_v28 = vpop.f32.mrb[1].mxu0 }
 0x164   : > { %v3896_v32 = vpop.f32.mrb[34].mxu1  ;;  %v3898_v33 = vpop.f32.mrb[2].mxu0 }
 0x165   : > { %v1747_v37 = vpop.f32.mrb[35].mxu1  ;;  %v1908_v38 = vpop.f32.mrb[3].mxu0 }
 0x167   : > { %2118 = vmatmul.mubr.bf16.gmra.mrb[108].mxu0 %v3455_v29  ;;  %2992 = vmatmul.mubr.bf16.gmra.mrb[140].mxu1 %v3456_v30 }
 0x168   : > { %2125 = vmatprep.mubr.bf16.mxu0 %v3457_v34  ;;  %2995 = vmatprep.mubr.bf16.mxu1 %v3459_v36  ;;  %v3475_v34 = vld [vmem:[%s3569_s30 + $0x4e0] ss:$20 sps:$4 sm:$0xff]   ;;  %v3476_v36 = vld [vmem:[%s3569_s30 + $0x4e8] ss:$20 sps:$4 sm:$0xff]  }
 0x16a   : > { %v3902_v40 = vpop.f32.mrb[36].mxu1  ;;  %v3904_v41 = vpop.f32.mrb[4].mxu0 }
 0x16b   : > { %v1752_v42 = vpop.f32.mrb[37].mxu1  ;;  %v1913_v44 = vpop.f32.mrb[5].mxu0 }
 0x16c   : > { %v3908_v48 = vpop.f32.mrb[38].mxu1  ;;  %v3910_v49 = vpop.f32.mrb[6].mxu0 }
 0x16d   : > { %v1755_v53 = vpop.f32.mrb[39].mxu1  ;;  %v1916_v54 = vpop.f32.mrb[7].mxu0 }
 0x16f   : > { %2126 = vmatmul.mubr.bf16.gmra.mrb[112].mxu0 %v3460_v45  ;;  %2996 = vmatmul.mubr.bf16.gmra.mrb[144].mxu1 %v3461_v46 }
 0x170   : > { %2133 = vmatprep.mubr.bf16.mxu0 %v3462_v50  ;;  %2999 = vmatprep.mubr.bf16.mxu1 %v3464_v52 }
 0x172   : > { %v3914_v56 = vpop.f32.mrb[40].mxu1  ;;  %v3916_v57 = vpop.f32.mrb[8].mxu0 }
 0x173   : > { %v1760_v58 = vpop.f32.mrb[41].mxu1  ;;  %v1921_v60 = vpop.f32.mrb[9].mxu0 }
 0x174   : > { %v3920_v0 = vpop.f32.mrb[42].mxu1  ;;  %v3922_v2 = vpop.f32.mrb[10].mxu0 }
 0x175   : > { %v1763_v6 = vpop.f32.mrb[43].mxu1  ;;  %v1924_v7 = vpop.f32.mrb[11].mxu0 }
 0x177   : > { %2134 = vmatmul.mubr.bf16.gmra.mrb[116].mxu0 %v3465_v61  ;;  %3000 = vmatmul.mubr.bf16.gmra.mrb[148].mxu1 %v3466_v62 }
 0x178   : > { %2141 = vmatprep.mubr.bf16.mxu0 %v3467_v3  ;;  %3003 = vmatprep.mubr.bf16.mxu1 %v3469_v5 }
 0x17a   : > { %v3926_v9 = vpop.f32.mrb[44].mxu1  ;;  %v3928_v10 = vpop.f32.mrb[12].mxu0 }
 0x17b   : > { %v1768_v11 = vpop.f32.mrb[45].mxu1  ;;  %v1929_v13 = vpop.f32.mrb[13].mxu0 }
 0x17c   : > { %v3932_v17 = vpop.f32.mrb[46].mxu1  ;;  %v3934_v18 = vpop.f32.mrb[14].mxu0 }
 0x17d   : > { %v1771_v21 = vpop.f32.mrb[47].mxu1  ;;  %v1932_v22 = vpop.f32.mrb[15].mxu0 }
 0x17f   : > { %2142 = vmatmul.mubr.bf16.gmra.mrb[120].mxu0 %v3470_v14  ;;  %3004 = vmatmul.mubr.bf16.gmra.mrb[152].mxu1 %v3471_v15 }
 0x180   : > { %2149 = vmatprep.mubr.bf16.mxu0 %v3472_v1  ;;  %3007 = vmatprep.mubr.bf16.mxu1 %v3474_v20 }
 0x182   : > { %v3938_v26 = vpop.f32.mrb[48].mxu1  ;;  %v3940_v28 = vpop.f32.mrb[16].mxu0 }
 0x183   : > { %v1776_v29 = vpop.f32.mrb[49].mxu1  ;;  %v1937_v30 = vpop.f32.mrb[17].mxu0 }
 0x184   : > { %v3944_v37 = vpop.f32.mrb[50].mxu1  ;;  %v3946_v38 = vpop.f32.mrb[18].mxu0 }
 0x185   : > { %v1779_v42 = vpop.f32.mrb[51].mxu1  ;;  %v1940_v44 = vpop.f32.mrb[19].mxu0 }
 0x187   : > { %2150 = vmatmul.mubr.bf16.gmra.mrb[124].mxu0 %v3475_v34  ;;  %3008 = vmatmul.mubr.bf16.gmra.mrb[156].mxu1 %v3476_v36  ;;  %v3975_v34 = vld [vmem:[%s4332_s2] ss:$0 sm:$0xff] }
 0x188   : > { %v1679_v36 = vadd.f32 %v3975_v34, %v3826_v23  ;;  %v1687_v23 = vadd.f32 %v3975_v34, %v3834_v31  ;;  %v1695_v31 = vadd.f32 %v3975_v34, %v3842_v39  ;;  %v1703_v39 = vadd.f32 %v3975_v34, %v3850_v47 }
 0x189   : > { %v1711_v47 = vadd.f32 %v3975_v34, %v3858_v55  ;;  %v1719_v55 = vadd.f32 %v3975_v34, %v3866_v63  ;;  %v1727_v63 = vadd.f32 %v3975_v34, %v3874_v8  ;;  %v1735_v8 = vadd.f32 %v3975_v34, %v3882_v16 }
 0x18a   : > { %v3948_v45 = vpop.f32.mrb[52].mxu1  ;;  %v3950_v46 = vpop.f32.mrb[20].mxu0  ;;  %v1743_v16 = vadd.f32 %v3975_v34, %v3890_v24 }
 0x18b   : > { %v1784_v50 = vpop.f32.mrb[53].mxu1  ;;  %v1945_v52 = vpop.f32.mrb[21].mxu0 }
 0x18c   : > { %v3952_v53 = vpop.f32.mrb[54].mxu1  ;;  %v3954_v54 = vpop.f32.mrb[22].mxu0  ;;  %v1682_v50 = vadd.f32 %v3975_v34, %v3830_v27  ;;  %v1690_v27 = vadd.f32 %v3975_v34, %v3838_v35  ;;  %v1698_v35 = vadd.f32 %v3975_v34, %v3846_v43  ;;  %v1706_v43 = vadd.f32 %v3975_v34, %v3854_v51 }
 0x18d   : > { %v1787_v58 = vpop.f32.mrb[55].mxu1  ;;  %v1948_v60 = vpop.f32.mrb[23].mxu0  ;;  %v1714_v51 = vadd.f32 %v3975_v34, %v3862_v59  ;;  %v1722_v59 = vadd.f32 %v3975_v34, %v3870_v4  ;;  %v1730_v4 = vadd.f32 %v3975_v34, %v3878_v12  ;;  %v1738_v12 = vadd.f32 %v3975_v34, %v3886_v19 }
 0x18e   : > { %v3043_v19 = vadd.f32 %v3975_v34, %v3892_v25 }
 0x192   : > { %v3956_v61 = vpop.f32.mrb[56].mxu1  ;;  %v3958_v62 = vpop.f32.mrb[24].mxu0 }
 0x193   : > { %v1792_v3 = vpop.f32.mrb[57].mxu1  ;;  %v1953_v5 = vpop.f32.mrb[25].mxu0 }
 0x194   : > { %v3960_v6 = vpop.f32.mrb[58].mxu1  ;;  %v3962_v7 = vpop.f32.mrb[26].mxu0 }
 0x195   : > { %v1795_v11 = vpop.f32.mrb[59].mxu1  ;;  %v1956_v13 = vpop.f32.mrb[27].mxu0 }
 0x19a   : > { %v3964_v14 = vpop.f32.mrb[60].mxu1  ;;  %v3966_v15 = vpop.f32.mrb[28].mxu0 }
 0x19b   : > { %v1800_v1 = vpop.f32.mrb[61].mxu1  ;;  %v1961_v20 = vpop.f32.mrb[29].mxu0 }
 0x19c   : > { %v3968_v21 = vpop.f32.mrb[62].mxu1  ;;  %v3970_v22 = vpop.f32.mrb[30].mxu0 }
 0x19d   : > { %v1803_v29 = vpop.f32.mrb[63].mxu1  ;;  %v1964_v30 = vpop.f32.mrb[31].mxu0 }
 0x1a2   : > { %v3979_v42 = vpop.f32.mrb[64].mxu1  ;;  %v1967_v44 = vpop.f32.mrb[32].mxu0 }
 0x1a3   : > { %v3983_v52 = vadd.f32 %v1967_v44, %v1679_v36  ;;  %v1808_v58 = vpop.f32.mrb[65].mxu1  ;;  %v1969_v60 = vpop.f32.mrb[33].mxu0 }
 0x1a4   : > { %v3985_v3 = vpop.f32.mrb[66].mxu1  ;;  %v1970_v5 = vpop.f32.mrb[34].mxu0 }
 0x1a5   : > { %v3987_v11 = vadd.f32 %v1970_v5, %v1682_v50  ;;  %v1811_v13 = vpop.f32.mrb[67].mxu1  ;;  %v1972_v1 = vpop.f32.mrb[35].mxu0 }
 0x1aa   : > { %v3991_v20 = vpop.f32.mrb[68].mxu1  ;;  %v1975_v29 = vpop.f32.mrb[36].mxu0 }
 0x1ab   : > { %4334 = vst [vmem:[#allocation2_spill] sm:$0xff] %v3991_v20  ;;  %v3995_v30 = vadd.f32 %v1975_v29, %v1687_v23  ;;  %v1816_v36 = vpop.f32.mrb[69].mxu1  ;;  %v1977_v44 = vpop.f32.mrb[37].mxu0 }
 0x1ac   : > { %v3997_v58 = vpop.f32.mrb[70].mxu1  ;;  %v1978_v60 = vpop.f32.mrb[38].mxu0 }
 0x1ad   : > { %4335 = vst [vmem:[#allocation3_spill] sm:$0xff] %v3997_v58  ;;  %v3999_v50 = vadd.f32 %v1978_v60, %v1690_v27  ;;  %v1819_v5 = vpop.f32.mrb[71].mxu1  ;;  %v1980_v13 = vpop.f32.mrb[39].mxu0 }
 0x1b2   : > { %v4003_v1 = vpop.f32.mrb[72].mxu1  ;;  %v1983_v20 = vpop.f32.mrb[40].mxu0 }
 0x1b3   : > { %4336 = vst [vmem:[#allocation4_spill] sm:$0xff] %v4003_v1  ;;  %v4007_v23 = vadd.f32 %v1983_v20, %v1695_v31  ;;  %v1824_v29 = vpop.f32.mrb[73].mxu1  ;;  %v1985_v36 = vpop.f32.mrb[41].mxu0 }
 0x1b4   : > { %v4009_v44 = vpop.f32.mrb[74].mxu1  ;;  %v1986_v58 = vpop.f32.mrb[42].mxu0 }
 0x1b5   : > { %4337 = vst [vmem:[#allocation5_spill] sm:$0xff] %v4009_v44  ;;  %v4011_v27 = vadd.f32 %v1986_v58, %v1698_v35  ;;  %v1827_v60 = vpop.f32.mrb[75].mxu1  ;;  %v1988_v5 = vpop.f32.mrb[43].mxu0 }
 0x1ba   : > { %v4015_v13 = vpop.f32.mrb[76].mxu1  ;;  %v1991_v1 = vpop.f32.mrb[44].mxu0 }
 0x1bb   : > { %4338 = vst [vmem:[#allocation6_spill] sm:$0xff] %v4015_v13  ;;  %v4019_v20 = vadd.f32 %v1991_v1, %v1703_v39  ;;  %v1832_v31 = vpop.f32.mrb[77].mxu1  ;;  %v1993_v29 = vpop.f32.mrb[45].mxu0 }
 0x1bc   : > { %v4021_v36 = vpop.f32.mrb[78].mxu1  ;;  %v1994_v44 = vpop.f32.mrb[46].mxu0 }
 0x1bd   : > { %4339 = vst [vmem:[#allocation7_spill] sm:$0xff] %v4021_v36  ;;  %v4023_v58 = vadd.f32 %v1994_v44, %v1706_v43  ;;  %v1835_v35 = vpop.f32.mrb[79].mxu1  ;;  %v1996_v60 = vpop.f32.mrb[47].mxu0 }
 0x1c2   : > { %v4027_v5 = vpop.f32.mrb[80].mxu1  ;;  %v1999_v13 = vpop.f32.mrb[48].mxu0 }
 0x1c3   : > { %4340 = vst [vmem:[#allocation8_spill] sm:$0xff] %v4027_v5  ;;  %v4031_v1 = vadd.f32 %v1999_v13, %v1711_v47  ;;  %v1840_v39 = vpop.f32.mrb[81].mxu1  ;;  %v2001_v31 = vpop.f32.mrb[49].mxu0 }
 0x1c4   : > { %v4033_v29 = vpop.f32.mrb[82].mxu1  ;;  %v2002_v36 = vpop.f32.mrb[50].mxu0 }
 0x1c5   : > { %4341 = vst [vmem:[#allocation9_spill] sm:$0xff] %v4033_v29  ;;  %v4035_v44 = vadd.f32 %v2002_v36, %v1714_v51  ;;  %v1843_v43 = vpop.f32.mrb[83].mxu1  ;;  %v2004_v35 = vpop.f32.mrb[51].mxu0 }
 0x1ca   : > { %v4039_v60 = vpop.f32.mrb[84].mxu1  ;;  %v2007_v5 = vpop.f32.mrb[52].mxu0 }
 0x1cb   : > { %4342 = vst [vmem:[#allocation10_spill] sm:$0xff] %v4039_v60  ;;  %v4043_v13 = vadd.f32 %v2007_v5, %v1719_v55  ;;  %v1848_v47 = vpop.f32.mrb[85].mxu1  ;;  %v2009_v39 = vpop.f32.mrb[53].mxu0 }
 0x1cc   : > { %v4045_v31 = vpop.f32.mrb[86].mxu1  ;;  %v2010_v29 = vpop.f32.mrb[54].mxu0 }
 0x1cd   : > { %4343 = vst [vmem:[#allocation11_spill] sm:$0xff] %v4045_v31  ;;  %v4047_v36 = vadd.f32 %v2010_v29, %v1722_v59  ;;  %v1851_v51 = vpop.f32.mrb[87].mxu1  ;;  %v2012_v43 = vpop.f32.mrb[55].mxu0 }
 0x1d2   : > { %v4051_v35 = vpop.f32.mrb[88].mxu1  ;;  %v2015_v60 = vpop.f32.mrb[56].mxu0 }
 0x1d3   : > { %4344 = vst [vmem:[#allocation12_spill] sm:$0xff] %v4051_v35  ;;  %v4055_v5 = vadd.f32 %v2015_v60, %v1727_v63  ;;  %v1856_v55 = vpop.f32.mrb[89].mxu1  ;;  %v2017_v47 = vpop.f32.mrb[57].mxu0 }
 0x1d4   : > { %v4057_v39 = vpop.f32.mrb[90].mxu1  ;;  %v2018_v31 = vpop.f32.mrb[58].mxu0 }
 0x1d5   : > { %4345 = vst [vmem:[#allocation13_spill] sm:$0xff] %v4057_v39  ;;  %v4059_v29 = vadd.f32 %v2018_v31, %v1730_v4  ;;  %v1859_v59 = vpop.f32.mrb[91].mxu1  ;;  %v2020_v51 = vpop.f32.mrb[59].mxu0 }
 0x1da   : > { %v4063_v43 = vpop.f32.mrb[92].mxu1  ;;  %v2023_v35 = vpop.f32.mrb[60].mxu0 }
 0x1db   : > { %4346 = vst [vmem:[#allocation14_spill] sm:$0xff] %v4063_v43  ;;  %v4067_v60 = vadd.f32 %v2023_v35, %v1735_v8  ;;  %v1864_v63 = vpop.f32.mrb[93].mxu1  ;;  %v2025_v55 = vpop.f32.mrb[61].mxu0  ;;  %v3045_v43 = vadd.f32 %v3975_v34, %v3904_v41  ;;  %v3044_v41 = vadd.f32 %v3975_v34, %v3898_v33 }
 0x1dc   : > { %v4069_v47 = vpop.f32.mrb[94].mxu1  ;;  %v2026_v31 = vpop.f32.mrb[62].mxu0  ;;  %v1746_v63 = vadd.f32 %v3975_v34, %v3896_v32 }
 0x1dd   : > { %4347 = vst [vmem:[#allocation15_spill] sm:$0xff] %v4069_v47  ;;  %v4071_v4 = vadd.f32 %v2026_v31, %v1738_v12  ;;  %v1867_v59 = vpop.f32.mrb[95].mxu1  ;;  %v2028_v51 = vpop.f32.mrb[63].mxu0  ;;  %v3046_v12 = vadd.f32 %v3975_v34, %v3910_v49 }
 0x1e2   : > { %v2031_v35 = vpop.f32.mrb[64].mxu0  ;;  %v2949_v8 = vpop.f32.mrb[96].mxu1 }
 0x1e3   : > { %v4084_v55 = vadd.f32 %v2031_v35, %v1743_v16  ;;  %v2201_v31 = vadd.f32 %v3045_v43, %v2949_v8  ;;  %v2033_v59 = vpop.f32.mrb[65].mxu0  ;;  %v2192_v24 = vpop.f32.mrb[97].mxu1 }
 0x1e4   : > { %v2193_v25 = vadd.f32 %v3043_v19, %v2192_v24  ;;  %v2034_v32 = vpop.f32.mrb[66].mxu0  ;;  %v2950_v51 = vpop.f32.mrb[98].mxu1  ;;  %v3049_v19 = vadd.f32 %v3975_v34, %v3928_v10  ;;  %v1754_v24 = vadd.f32 %v3975_v34, %v3908_v48 }
 0x1e5   : > { %4348 = vst [vmem:[#allocation16_spill] sm:$0xff] %v4084_v55  ;;  %v2449_v49 = vmax.f32 %v2201_v31, 0.0  ;;  %v4093_v16 = vadd.f32 %v2034_v32, %v1746_v63  ;;  %v2204_v43 = vadd.f32 %v3046_v12, %v2950_v51  ;;  %v2036_v35 = vpop.f32.mrb[67].mxu0  ;;  %v2195_v8 = vpop.f32.mrb[99].mxu1  ;;  %v1751_v55 = vadd.f32 %v3975_v34, %v3902_v40 }
 0x1e6   : > { %v2447_v59 = vmax.f32 %v2193_v25, 0.0  ;;  %v2196_v33 = vadd.f32 %v3044_v41, %v2195_v8  ;;  %v3047_v63 = vadd.f32 %v3975_v34, %v3916_v57  ;;  %v3050_v41 = vadd.f32 %v3975_v34, %v3934_v18 }
 0x1e7   : > { %2513 = vst [vmem:[%s4091_s11 + $0x10] sm:$0xff] %v2449_v49  ;;  %v2450_v47 = vmax.f32 %v2204_v43, 0.0 }
 0x1e8   : > { %2511 = vst [vmem:[%s4091_s11] sm:$0xff] %v2447_v59  ;;  %v2448_v39 = vmax.f32 %v2196_v33, 0.0 }
 0x1e9   : > { %2514 = vst [vmem:[%s4091_s11 + $0x18] sm:$0xff] %v2450_v47  ;;  %v3048_v47 = vadd.f32 %v3975_v34, %v3922_v2  ;;  %v1759_v2 = vadd.f32 %v3975_v34, %v3914_v56 }
 0x1ea   : > { %2512 = vst [vmem:[%s4091_s11 + $0x8] sm:$0xff] %v2448_v39  ;;  %v2039_v12 = vpop.f32.mrb[68].mxu0  ;;  %v2953_v31 = vpop.f32.mrb[100].mxu1 }
 0x1eb   : > { %v4109_v25 = vadd.f32 %v2039_v12, %v1751_v55  ;;  %v2217_v40 = vadd.f32 %v3049_v19, %v2953_v31  ;;  %v2041_v32 = vpop.f32.mrb[69].mxu0  ;;  %v2208_v10 = vpop.f32.mrb[101].mxu1  ;;  %v3053_v19 = vadd.f32 %v3975_v34, %v3950_v46 }
 0x1ec   : > { %v2209_v57 = vadd.f32 %v3047_v63, %v2208_v10  ;;  %v2042_v39 = vpop.f32.mrb[70].mxu0  ;;  %v2954_v51 = vpop.f32.mrb[102].mxu1  ;;  %v3051_v63 = vadd.f32 %v3975_v34, %v3940_v28  ;;  %v3052_v10 = vadd.f32 %v3975_v34, %v3946_v38  ;;  %v1767_v38 = vadd.f32 %v3975_v34, %v3926_v9 }
 0x1ed   : > { %v2453_v49 = vmax.f32 %v2217_v40, 0.0  ;;  %v4113_v48 = vadd.f32 %v2042_v39, %v1754_v24  ;;  %v2220_v43 = vadd.f32 %v3050_v41, %v2954_v51  ;;  %v2044_v18 = vpop.f32.mrb[71].mxu0  ;;  %v2211_v35 = vpop.f32.mrb[103].mxu1  ;;  %v1762_v24 = vadd.f32 %v3975_v34, %v3920_v0 }
 0x1ee   : > { %v2451_v55 = vmax.f32 %v2209_v57, 0.0  ;;  %v2212_v8 = vadd.f32 %v3048_v47, %v2211_v35  ;;  %v3054_v41 = vadd.f32 %v3975_v34, %v3954_v54 }
 0x1ef   : > { %2517 = vst [vmem:[%s4091_s11 + $0x30] sm:$0xff] %v2453_v49  ;;  %v2454_v59 = vmax.f32 %v2220_v43, 0.0 }
 0x1f0   : > { %2515 = vst [vmem:[%s4091_s11 + $0x20] sm:$0xff] %v2451_v55  ;;  %v2452_v33 = vmax.f32 %v2212_v8, 0.0  ;;  %v3057_v8 = vadd.f32 %v3975_v34, %v3966_v15 }
 0x1f1   : > { %2518 = vst [vmem:[%s4091_s11 + $0x38] sm:$0xff] %v2454_v59  ;;  %v3055_v59 = vadd.f32 %v3975_v34, %v3958_v62 }
 0x1f2   : > { %2516 = vst [vmem:[%s4091_s11 + $0x28] sm:$0xff] %v2452_v33  ;;  %v2047_v12 = vpop.f32.mrb[72].mxu0  ;;  %v2957_v31 = vpop.f32.mrb[104].mxu1 }
 0x1f3   : > { %v4129_v40 = vadd.f32 %v2047_v12, %v1759_v2  ;;  %v2233_v56 = vadd.f32 %v3053_v19, %v2957_v31  ;;  %v2049_v32 = vpop.f32.mrb[73].mxu0  ;;  %v2224_v46 = vpop.f32.mrb[105].mxu1  ;;  %v1770_v19 = vadd.f32 %v3975_v34, %v3932_v17 }
 0x1f4   : > { %v2225_v28 = vadd.f32 %v3051_v63, %v2224_v46  ;;  %v2050_v47 = vpop.f32.mrb[74].mxu0  ;;  %v2958_v57 = vpop.f32.mrb[106].mxu1  ;;  %v3058_v63 = vadd.f32 %v3975_v34, %v3970_v22 }
 0x1f5   : > { %v2457_v39 = vmax.f32 %v2233_v56, 0.0  ;;  %v4133_v0 = vadd.f32 %v2050_v47, %v1762_v24  ;;  %v2236_v51 = vadd.f32 %v3054_v41, %v2958_v57  ;;  %v2052_v54 = vpop.f32.mrb[75].mxu0  ;;  %v2227_v49 = vpop.f32.mrb[107].mxu1  ;;  %v3056_v24 = vadd.f32 %v3975_v34, %v3962_v7 }
 0x1f6   : > { %v2455_v43 = vmax.f32 %v2225_v28, 0.0  ;;  %v2228_v18 = vadd.f32 %v3052_v10, %v2227_v49  ;;  %v1775_v7 = vadd.f32 %v3975_v34, %v3938_v26  ;;  %v1778_v49 = vadd.f32 %v3975_v34, %v3944_v37 }
 0x1f7   : > { %2521 = vst [vmem:[%s4091_s11 + $0x50] sm:$0xff] %v2457_v39  ;;  %v2458_v35 = vmax.f32 %v2236_v51, 0.0 }
 0x1f8   : > { %2519 = vst [vmem:[%s4091_s11 + $0x40] sm:$0xff] %v2455_v43  ;;  %v2456_v55 = vmax.f32 %v2228_v18, 0.0 }
 0x1f9   : > { %2522 = vst [vmem:[%s4091_s11 + $0x58] sm:$0xff] %v2458_v35 }
 0x1fa   : > { %2520 = vst [vmem:[%s4091_s11 + $0x48] sm:$0xff] %v2456_v55  ;;  %v2055_v33 = vpop.f32.mrb[76].mxu0  ;;  %v2961_v2 = vpop.f32.mrb[108].mxu1 }
 0x1fb   : > { %v4149_v12 = vadd.f32 %v2055_v33, %v1767_v38  ;;  %v2249_v9 = vadd.f32 %v3057_v8, %v2961_v2  ;;  %v2057_v31 = vpop.f32.mrb[77].mxu0  ;;  %v2240_v15 = vpop.f32.mrb[109].mxu1 }
 0x1fc   : > { %v2241_v62 = vadd.f32 %v3055_v59, %v2240_v15  ;;  %v2058_v41 = vpop.f32.mrb[78].mxu0  ;;  %v2962_v56 = vpop.f32.mrb[110].mxu1 }
 0x1fd   : > { %v2461_v32 = vmax.f32 %v2249_v9, 0.0  ;;  %v4153_v17 = vadd.f32 %v2058_v41, %v1770_v19  ;;  %v2252_v46 = vadd.f32 %v3058_v63, %v2962_v56  ;;  %v2060_v22 = vpop.f32.mrb[79].mxu0  ;;  %v2243_v10 = vpop.f32.mrb[111].mxu1 }
 0x1fe   : > { %v2459_v28 = vmax.f32 %v2241_v62, 0.0  ;;  %v2244_v47 = vadd.f32 %v3056_v24, %v2243_v10 }
 0x1ff   : > { %2525 = vst [vmem:[%s4091_s11 + $0x70] sm:$0xff] %v2461_v32  ;;  %v2462_v57 = vmax.f32 %v2252_v46, 0.0 }
 0x200   : > { %2523 = vst [vmem:[%s4091_s11 + $0x60] sm:$0xff] %v2459_v28  ;;  %v2460_v39 = vmax.f32 %v2244_v47, 0.0 }
 0x201   : > { %2526 = vst [vmem:[%s4091_s11 + $0x78] sm:$0xff] %v2462_v57 }
 0x202   : > { %2524 = vst [vmem:[%s4091_s11 + $0x68] sm:$0xff] %v2460_v39  ;;  %v2063_v51 = vpop.f32.mrb[80].mxu0  ;;  %v2965_v54 = vpop.f32.mrb[112].mxu1 }
 0x203   : > { %v4163_v43 = vadd.f32 %v2063_v51, %v1775_v7  ;;  %v2265_v18 = vadd.f32 %v2965_v54, %v3995_v30  ;;  %v2065_v35 = vpop.f32.mrb[81].mxu0  ;;  %v2256_v55 = vpop.f32.mrb[113].mxu1 }
 0x204   : > { %v2257_v38 = vadd.f32 %v2256_v55, %v3983_v52  ;;  %v2066_v26 = vpop.f32.mrb[82].mxu0  ;;  %v2966_v8 = vpop.f32.mrb[114].mxu1  ;;  %v1783_v52 = vadd.f32 %v3975_v34, %v3948_v45 }
 0x205   : > { %v2465_v59 = vmax.f32 %v2265_v18, 0.0  ;;  %v4167_v33 = vadd.f32 %v2066_v26, %v1778_v49  ;;  %v2268_v2 = vadd.f32 %v2966_v8, %v3999_v50  ;;  %v2068_v19 = vpop.f32.mrb[83].mxu0  ;;  %v2259_v37 = vpop.f32.mrb[115].mxu1  ;;  %v1786_v50 = vadd.f32 %v3975_v34, %v3952_v53 }
 0x206   : > { %v2463_v63 = vmax.f32 %v2257_v38, 0.0  ;;  %v2260_v9 = vadd.f32 %v2259_v37, %v3987_v11 }
 0x207   : > { %2529 = vst [vmem:[%s4091_s11 + $0x90] sm:$0xff] %v2465_v59  ;;  %v2466_v30 = vmax.f32 %v2268_v2, 0.0 }
 0x208   : > { %2527 = vst [vmem:[%s4091_s11 + $0x80] sm:$0xff] %v2463_v63  ;;  %v2464_v31 = vmax.f32 %v2260_v9, 0.0 }
 0x209   : > { %2530 = vst [vmem:[%s4091_s11 + $0x98] sm:$0xff] %v2466_v30 }
 0x20a   : > { %2528 = vst [vmem:[%s4091_s11 + $0x88] sm:$0xff] %v2464_v31  ;;  %v2071_v15 = vpop.f32.mrb[84].mxu0  ;;  %v2969_v24 = vpop.f32.mrb[116].mxu1 }
 0x20b   : > { %v4179_v62 = vadd.f32 %v2071_v15, %v1783_v52  ;;  %v2281_v11 = vadd.f32 %v2969_v24, %v4019_v20  ;;  %v2073_v41 = vpop.f32.mrb[85].mxu0  ;;  %v2272_v56 = vpop.f32.mrb[117].mxu1 }
 0x20c   : > { %v2273_v32 = vadd.f32 %v2272_v56, %v4007_v23  ;;  %v2074_v45 = vpop.f32.mrb[86].mxu0  ;;  %v2970_v46 = vpop.f32.mrb[118].mxu1  ;;  %v1791_v23 = vadd.f32 %v3975_v34, %v3956_v61 }
 0x20d   : > { %v2469_v22 = vmax.f32 %v2281_v11, 0.0  ;;  %v4183_v10 = vadd.f32 %v2074_v45, %v1786_v50  ;;  %v2284_v28 = vadd.f32 %v2970_v46, %v4023_v58  ;;  %v2076_v47 = vpop.f32.mrb[87].mxu0  ;;  %v2275_v53 = vpop.f32.mrb[119].mxu1  ;;  %v1794_v58 = vadd.f32 %v3975_v34, %v3960_v6 }
 0x20e   : > { %v2467_v57 = vmax.f32 %v2273_v32, 0.0  ;;  %v2276_v39 = vadd.f32 %v2275_v53, %v4011_v27 }
 0x20f   : > { %2533 = vst [vmem:[%s4091_s11 + $0xb0] sm:$0xff] %v2469_v22  ;;  %v2470_v20 = vmax.f32 %v2284_v28, 0.0 }
 0x210   : > { %2531 = vst [vmem:[%s4091_s11 + $0xa0] sm:$0xff] %v2467_v57  ;;  %v2468_v7 = vmax.f32 %v2276_v39, 0.0 }
 0x211   : > { %2534 = vst [vmem:[%s4091_s11 + $0xb8] sm:$0xff] %v2470_v20  ;;  %v4349_v20 = vld [vmem:[#allocation16_spill] sm:$0xff] }
 0x212   : > { %2532 = vst [vmem:[%s4091_s11 + $0xa8] sm:$0xff] %v2468_v7  ;;  %v2079_v51 = vpop.f32.mrb[88].mxu0  ;;  %v2973_v54 = vpop.f32.mrb[120].mxu1 }
 0x213   : > { %v4195_v49 = vadd.f32 %v2079_v51, %v1791_v23  ;;  %v2297_v27 = vadd.f32 %v2973_v54, %v4043_v13  ;;  %v2081_v18 = vpop.f32.mrb[89].mxu0  ;;  %v2288_v35 = vpop.f32.mrb[121].mxu1 }
 0x214   : > { %v2289_v55 = vadd.f32 %v2288_v35, %v4031_v1  ;;  %v2082_v61 = vpop.f32.mrb[90].mxu0  ;;  %v2974_v38 = vpop.f32.mrb[122].mxu1  ;;  %v1799_v1 = vadd.f32 %v3975_v34, %v3964_v14 }
 0x215   : > { %v2473_v26 = vmax.f32 %v2297_v27, 0.0  ;;  %v4199_v8 = vadd.f32 %v2082_v61, %v1794_v58  ;;  %v2300_v59 = vadd.f32 %v2974_v38, %v4047_v36  ;;  %v2084_v2 = vpop.f32.mrb[91].mxu0  ;;  %v2291_v6 = vpop.f32.mrb[123].mxu1  ;;  %v1802_v36 = vadd.f32 %v3975_v34, %v3968_v21  ;;  %v4350_v61 = vld [vmem:[#allocation2_spill] sm:$0xff] }
 0x216   : > { %v2471_v19 = vmax.f32 %v2289_v55, 0.0  ;;  %v2292_v37 = vadd.f32 %v2291_v6, %v4035_v44  ;;  %v1815_v38 = vadd.f32 %v3975_v34, %v4350_v61  ;;  %v4351_v2 = vld [vmem:[#allocation3_spill] sm:$0xff] }
 0x217   : > { %2537 = vst [vmem:[%s4091_s11 + $0xd0] sm:$0xff] %v2473_v26  ;;  %v2474_v13 = vmax.f32 %v2300_v59, 0.0 }
 0x218   : > { %2535 = vst [vmem:[%s4091_s11 + $0xc0] sm:$0xff] %v2471_v19  ;;  %v2472_v63 = vmax.f32 %v2292_v37, 0.0 }
 0x219   : > { %2538 = vst [vmem:[%s4091_s11 + $0xd8] sm:$0xff] %v2474_v13 }
 0x21a   : > { %2536 = vst [vmem:[%s4091_s11 + $0xc8] sm:$0xff] %v2472_v63  ;;  %v2087_v9 = vpop.f32.mrb[92].mxu0  ;;  %v2977_v30 = vpop.f32.mrb[124].mxu1 }
 0x21b   : > { %v4211_v31 = vadd.f32 %v2087_v9, %v1799_v1  ;;  %v2313_v44 = vadd.f32 %v2977_v30, %v4067_v60  ;;  %v2089_v52 = vpop.f32.mrb[93].mxu0  ;;  %v2304_v15 = vpop.f32.mrb[125].mxu1 }
 0x21c   : > { %v2305_v24 = vadd.f32 %v2304_v15, %v4055_v5  ;;  %v2090_v14 = vpop.f32.mrb[94].mxu0  ;;  %v2978_v50 = vpop.f32.mrb[126].mxu1  ;;  %v1807_v5 = vadd.f32 %v3975_v34, %v3979_v42 }
 0x21d   : > { %v2477_v11 = vmax.f32 %v2313_v44, 0.0  ;;  %v4215_v41 = vadd.f32 %v2090_v14, %v1802_v36  ;;  %v2316_v56 = vadd.f32 %v2978_v50, %v4071_v4  ;;  %v2092_v32 = vpop.f32.mrb[95].mxu0  ;;  %v2307_v21 = vpop.f32.mrb[127].mxu1  ;;  %v1810_v4 = vadd.f32 %v3975_v34, %v3985_v3  ;;  %v4352_v50 = vld [vmem:[#allocation4_spill] sm:$0xff] }
 0x21e   : > { %v2475_v45 = vmax.f32 %v2305_v24, 0.0  ;;  %v2308_v46 = vadd.f32 %v2307_v21, %v4059_v29  ;;  %v4353_v32 = vld [vmem:[#allocation5_spill] sm:$0xff] }
 0x21f   : > { %2541 = vst [vmem:[%s4091_s11 + $0xf0] sm:$0xff] %v2477_v11  ;;  %v2478_v60 = vmax.f32 %v2316_v56, 0.0 }
 0x220   : > { %2539 = vst [vmem:[%s4091_s11 + $0xe0] sm:$0xff] %v2475_v45  ;;  %v2476_v22 = vmax.f32 %v2308_v46, 0.0 }
 0x221   : > { %2542 = vst [vmem:[%s4091_s11 + $0xf8] sm:$0xff] %v2478_v60 }
 0x222   : > { %2540 = vst [vmem:[%s4091_s11 + $0xe8] sm:$0xff] %v2476_v22  ;;  %v2095_v28 = vpop.f32.mrb[96].mxu0  ;;  %v2981_v47 = vpop.f32.mrb[128].mxu1 }
 0x223   : > { %v4227_v53 = vadd.f32 %v2095_v28, %v1807_v5  ;;  %v2329_v29 = vadd.f32 %v2981_v47, %v4109_v25  ;;  %v2097_v57 = vpop.f32.mrb[97].mxu0  ;;  %v2320_v39 = vpop.f32.mrb[129].mxu1 }
 0x224   : > { %v2321_v7 = vadd.f32 %v2320_v39, %v4349_v20  ;;  %v2098_v42 = vpop.f32.mrb[98].mxu0  ;;  %v2982_v23 = vpop.f32.mrb[130].mxu1 }
 0x225   : > { %v2481_v51 = vmax.f32 %v2329_v29, 0.0  ;;  %v4231_v54 = vadd.f32 %v2098_v42, %v1810_v4  ;;  %v2332_v58 = vadd.f32 %v2982_v23, %v4113_v48  ;;  %v2100_v27 = vpop.f32.mrb[99].mxu0  ;;  %v2323_v3 = vpop.f32.mrb[131].mxu1  ;;  %v1818_v48 = vadd.f32 %v3975_v34, %v4351_v2  ;;  %v4354_v42 = vld [vmem:[#allocation6_spill] sm:$0xff] }
 0x226   : > { %v2479_v18 = vmax.f32 %v2321_v7, 0.0  ;;  %v2324_v35 = vadd.f32 %v2323_v3, %v4093_v16 }
 0x227   : > { %2545 = vst [vmem:[%s4091_s11 + $0x110] sm:$0xff] %v2481_v51  ;;  %v2482_v25 = vmax.f32 %v2332_v58, 0.0  ;;  %v4355_v58 = vld [vmem:[#allocation7_spill] sm:$0xff] }
 0x228   : > { %2543 = vst [vmem:[%s4091_s11 + $0x100] sm:$0xff] %v2479_v18  ;;  %v2480_v55 = vmax.f32 %v2324_v35, 0.0 }
 0x229   : > { %2546 = vst [vmem:[%s4091_s11 + $0x118] sm:$0xff] %v2482_v25 }
 0x22a   : > { %2544 = vst [vmem:[%s4091_s11 + $0x108] sm:$0xff] %v2480_v55  ;;  %v2103_v26 = vpop.f32.mrb[100].mxu0  ;;  %v2985_v59 = vpop.f32.mrb[132].mxu1 }
 0x22b   : > { %v4243_v6 = vadd.f32 %v2103_v26, %v1815_v38  ;;  %v2345_v16 = vadd.f32 %v2985_v59, %v4149_v12  ;;  %v2105_v19 = vpop.f32.mrb[101].mxu0  ;;  %v2336_v37 = vpop.f32.mrb[133].mxu1 }
 0x22c   : > { %v2337_v13 = vadd.f32 %v2336_v37, %v4129_v40  ;;  %v2106_v63 = vpop.f32.mrb[102].mxu0  ;;  %v2986_v1 = vpop.f32.mrb[134].mxu1  ;;  %v1823_v40 = vadd.f32 %v3975_v34, %v4352_v50  ;;  %v4356_v37 = vld [vmem:[#allocation8_spill] sm:$0xff] }
 0x22d   : > { %v2485_v9 = vmax.f32 %v2345_v16, 0.0  ;;  %v4247_v30 = vadd.f32 %v2106_v63, %v1818_v48  ;;  %v2348_v36 = vadd.f32 %v2986_v1, %v4153_v17  ;;  %v2108_v44 = vpop.f32.mrb[103].mxu0  ;;  %v2339_v52 = vpop.f32.mrb[135].mxu1  ;;  %v1826_v17 = vadd.f32 %v3975_v34, %v4353_v32  ;;  %v4357_v1 = vld [vmem:[#allocation9_spill] sm:$0xff] }
 0x22e   : > { %v2483_v15 = vmax.f32 %v2337_v13, 0.0  ;;  %v2340_v24 = vadd.f32 %v2339_v52, %v4133_v0  ;;  %v1839_v13 = vadd.f32 %v3975_v34, %v4356_v37 }
 0x22f   : > { %2549 = vst [vmem:[%s4091_s11 + $0x130] sm:$0xff] %v2485_v9  ;;  %v2486_v12 = vmax.f32 %v2348_v36, 0.0 }
 0x230   : > { %2547 = vst [vmem:[%s4091_s11 + $0x120] sm:$0xff] %v2483_v15  ;;  %v2484_v14 = vmax.f32 %v2340_v24, 0.0 }
 0x231   : > { %2550 = vst [vmem:[%s4091_s11 + $0x138] sm:$0xff] %v2486_v12 }
 0x232   : > { %2548 = vst [vmem:[%s4091_s11 + $0x128] sm:$0xff] %v2484_v14  ;;  %v2111_v11 = vpop.f32.mrb[104].mxu0  ;;  %v2989_v56 = vpop.f32.mrb[136].mxu1 }
 0x233   : > { %v4259_v21 = vadd.f32 %v2111_v11, %v1823_v40  ;;  %v2361_v0 = vadd.f32 %v2989_v56, %v4179_v62  ;;  %v2113_v45 = vpop.f32.mrb[105].mxu0  ;;  %v2352_v46 = vpop.f32.mrb[137].mxu1 }
 0x234   : > { %v2353_v60 = vadd.f32 %v2352_v46, %v4163_v43  ;;  %v2114_v22 = vpop.f32.mrb[106].mxu0  ;;  %v2990_v5 = vpop.f32.mrb[138].mxu1  ;;  %v1831_v43 = vadd.f32 %v3975_v34, %v4354_v42 }
 0x235   : > { %v2489_v28 = vmax.f32 %v2361_v0, 0.0  ;;  %v4263_v47 = vadd.f32 %v2114_v22, %v1826_v17  ;;  %v2364_v4 = vadd.f32 %v2990_v5, %v4183_v10  ;;  %v2116_v29 = vpop.f32.mrb[107].mxu0  ;;  %v2355_v57 = vpop.f32.mrb[139].mxu1  ;;  %v1834_v10 = vadd.f32 %v3975_v34, %v4355_v58  ;;  %v4358_v0 = vld [vmem:[#allocation10_spill] sm:$0xff] }
 0x236   : > { %v2487_v39 = vmax.f32 %v2353_v60, 0.0  ;;  %v2356_v20 = vadd.f32 %v2355_v57, %v4167_v33  ;;  %v1847_v45 = vadd.f32 %v3975_v34, %v4358_v0  ;;  %v4359_v60 = vld [vmem:[#allocation11_spill] sm:$0xff] }
 0x237   : > { %2553 = vst [vmem:[%s4091_s11 + $0x150] sm:$0xff] %v2489_v28  ;;  %v2490_v62 = vmax.f32 %v2364_v4, 0.0 }
 0x238   : > { %2551 = vst [vmem:[%s4091_s11 + $0x140] sm:$0xff] %v2487_v39  ;;  %v2488_v7 = vmax.f32 %v2356_v20, 0.0 }
 0x239   : > { %2554 = vst [vmem:[%s4091_s11 + $0x158] sm:$0xff] %v2490_v62 }
 0x23a   : > { %2552 = vst [vmem:[%s4091_s11 + $0x148] sm:$0xff] %v2488_v7  ;;  %v2119_v23 = vpop.f32.mrb[108].mxu0  ;;  %v2993_v51 = vpop.f32.mrb[140].mxu1 }
 0x23b   : > { %v2120_v27 = vadd.f32 %v2119_v23, %v1831_v43  ;;  %v2377_v3 = vadd.f32 %v2993_v51, %v4211_v31  ;;  %v2121_v33 = vpop.f32.mrb[109].mxu0  ;;  %v2368_v18 = vpop.f32.mrb[141].mxu1 }
 0x23c   : > { %v2369_v35 = vadd.f32 %v2368_v18, %v4195_v49  ;;  %v2122_v25 = vpop.f32.mrb[110].mxu0  ;;  %v2994_v55 = vpop.f32.mrb[142].mxu1  ;;  %v4361_v33 = vld [vmem:[#allocation13_spill] sm:$0xff] }
 0x23d   : > { %v2493_v61 = vmax.f32 %v2377_v3, 0.0  ;;  %v2123_v38 = vadd.f32 %v2122_v25, %v1834_v10  ;;  %v2380_v26 = vadd.f32 %v2994_v55, %v4215_v41  ;;  %v2124_v59 = vpop.f32.mrb[111].mxu0  ;;  %v2371_v2 = vpop.f32.mrb[143].mxu1  ;;  %v1842_v41 = vadd.f32 %v3975_v34, %v4357_v1  ;;  %v4360_v10 = vld [vmem:[#allocation12_spill] sm:$0xff] }
 0x23e   : > { %v2491_v48 = vmax.f32 %v2369_v35, 0.0  ;;  %v2372_v16 = vadd.f32 %v2371_v2, %v4199_v8  ;;  %v1858_v18 = vadd.f32 %v3975_v34, %v4361_v33 }
 0x23f   : > { %2557 = vst [vmem:[%s4091_s11 + $0x170] sm:$0xff] %v2493_v61  ;;  %v2494_v19 = vmax.f32 %v2380_v26, 0.0 }
 0x240   : > { %2555 = vst [vmem:[%s4091_s11 + $0x160] sm:$0xff] %v2491_v48  ;;  %v2492_v31 = vmax.f32 %v2372_v16, 0.0 }
 0x241   : > { %2558 = vst [vmem:[%s4091_s11 + $0x178] sm:$0xff] %v2494_v19 }
 0x242   : > { %2556 = vst [vmem:[%s4091_s11 + $0x168] sm:$0xff] %v2492_v31  ;;  %v2127_v49 = vpop.f32.mrb[112].mxu0  ;;  %v2997_v63 = vpop.f32.mrb[144].mxu1 }
 0x243   : > { %v2128_v9 = vadd.f32 %v2127_v49, %v1839_v13  ;;  %v2393_v36 = vadd.f32 %v2997_v63, %v4243_v6  ;;  %v2129_v8 = vpop.f32.mrb[113].mxu0  ;;  %v2384_v44 = vpop.f32.mrb[145].mxu1  ;;  %v4362_v63 = vld [vmem:[#allocation14_spill] sm:$0xff] }
 0x244   : > { %v2385_v52 = vadd.f32 %v2384_v44, %v4227_v53  ;;  %v2130_v15 = vpop.f32.mrb[114].mxu0  ;;  %v2998_v24 = vpop.f32.mrb[146].mxu1  ;;  %v1863_v1 = vadd.f32 %v3975_v34, %v4362_v63 }
 0x245   : > { %v2497_v12 = vmax.f32 %v2393_v36, 0.0  ;;  %v2131_v14 = vadd.f32 %v2130_v15, %v1842_v41  ;;  %v2396_v50 = vadd.f32 %v2998_v24, %v4247_v30  ;;  %v2132_v40 = vpop.f32.mrb[115].mxu0  ;;  %v2387_v11 = vpop.f32.mrb[147].mxu1  ;;  %v1850_v30 = vadd.f32 %v3975_v34, %v4359_v60  ;;  %v4363_v36 = vld [vmem:[#allocation15_spill] sm:$0xff] }
 0x246   : > { %v2495_v56 = vmax.f32 %v2385_v52, 0.0  ;;  %v2388_v32 = vadd.f32 %v2387_v11, %v4231_v54  ;;  %v1866_v8 = vadd.f32 %v3975_v34, %v4363_v36 }
 0x247   : > { %2561 = vst [vmem:[%s4091_s11 + $0x190] sm:$0xff] %v2497_v12  ;;  %v2498_v17 = vmax.f32 %v2396_v50, 0.0 }
 0x248   : > { %2559 = vst [vmem:[%s4091_s11 + $0x180] sm:$0xff] %v2495_v56  ;;  %v2496_v6 = vmax.f32 %v2388_v32, 0.0 }
 0x249   : > { %2562 = vst [vmem:[%s4091_s11 + $0x198] sm:$0xff] %v2498_v17 }
 0x24a   : > { %2560 = vst [vmem:[%s4091_s11 + $0x188] sm:$0xff] %v2496_v6  ;;  %v2135_v53 = vpop.f32.mrb[116].mxu0  ;;  %v3001_v46 = vpop.f32.mrb[148].mxu1 }
 0x24b   : > { %v2136_v22 = vadd.f32 %v2135_v53, %v1847_v45  ;;  %v2409_v5 = vadd.f32 %v3001_v46, %v2120_v27  ;;  %v2137_v28 = vpop.f32.mrb[117].mxu0  ;;  %v2400_v54 = vpop.f32.mrb[149].mxu1  ;;  %v1855_v27 = vadd.f32 %v3975_v34, %v4360_v10 }
 0x24c   : > { %v2401_v4 = vadd.f32 %v2400_v54, %v4259_v21  ;;  %v2138_v29 = vpop.f32.mrb[118].mxu0  ;;  %v3002_v57 = vpop.f32.mrb[150].mxu1 }
 0x24d   : > { %v2501_v39 = vmax.f32 %v2409_v5, 0.0  ;;  %v2139_v20 = vadd.f32 %v2138_v29, %v1850_v30  ;;  %v2412_v62 = vadd.f32 %v3002_v57, %v2123_v38  ;;  %v2140_v7 = vpop.f32.mrb[119].mxu0  ;;  %v2403_v42 = vpop.f32.mrb[151].mxu1 }
 0x24e   : > { %v2499_v43 = vmax.f32 %v2401_v4, 0.0  ;;  %v2404_v23 = vadd.f32 %v2403_v42, %v4263_v47 }
 0x24f   : > { %2565 = vst [vmem:[%s4091_s11 + $0x1b0] sm:$0xff] %v2501_v39  ;;  %v2502_v51 = vmax.f32 %v2412_v62, 0.0 }
 0x250   : > { %2563 = vst [vmem:[%s4091_s11 + $0x1a0] sm:$0xff] %v2499_v43  ;;  %v2500_v58 = vmax.f32 %v2404_v23, 0.0 }
 0x251   : > { %2566 = vst [vmem:[%s4091_s11 + $0x1b8] sm:$0xff] %v2502_v51 }
 0x252   : > { %2564 = vst [vmem:[%s4091_s11 + $0x1a8] sm:$0xff] %v2500_v58  ;;  %v2143_v21 = vpop.f32.mrb[120].mxu0  ;;  %v3005_v3 = vpop.f32.mrb[152].mxu1 }
 0x253   : > { %v2144_v35 = vadd.f32 %v2143_v21, %v1855_v27  ;;  %v2425_v25 = vadd.f32 %v3005_v3, %v2136_v22  ;;  %v2145_v55 = vpop.f32.mrb[121].mxu0  ;;  %v2416_v47 = vpop.f32.mrb[153].mxu1 }
 0x254   : > { %v2417_v61 = vadd.f32 %v2416_v47, %v2128_v9  ;;  %v2146_v38 = vpop.f32.mrb[122].mxu0  ;;  %v3006_v26 = vpop.f32.mrb[154].mxu1 }
 0x255   : > { %v2505_v59 = vmax.f32 %v2425_v25, 0.0  ;;  %v2147_v2 = vadd.f32 %v2146_v38, %v1858_v18  ;;  %v2428_v48 = vadd.f32 %v3006_v26, %v2139_v20  ;;  %v2148_v16 = vpop.f32.mrb[123].mxu0  ;;  %v2419_v19 = vpop.f32.mrb[155].mxu1 }
 0x256   : > { %v2503_v31 = vmax.f32 %v2417_v61, 0.0  ;;  %v2420_v37 = vadd.f32 %v2419_v19, %v2131_v14 }
 0x257   : > { %2569 = vst [vmem:[%s4091_s11 + $0x1d0] sm:$0xff] %v2505_v59  ;;  %v2506_v13 = vmax.f32 %v2428_v48, 0.0 }
 0x258   : > { %2567 = vst [vmem:[%s4091_s11 + $0x1c0] sm:$0xff] %v2503_v31  ;;  %v2504_v49 = vmax.f32 %v2420_v37, 0.0 }
 0x259   : > { %2570 = vst [vmem:[%s4091_s11 + $0x1d8] sm:$0xff] %v2506_v13 }
 0x25a   : > { %2568 = vst [vmem:[%s4091_s11 + $0x1c8] sm:$0xff] %v2504_v49  ;;  %v2151_v41 = vpop.f32.mrb[124].mxu0  ;;  %v3009_v9 = vpop.f32.mrb[156].mxu1 }
 0x25b   : > { %v2152_v44 = vadd.f32 %v2151_v41, %v1863_v1  ;;  %v2153_v52 = vpop.f32.mrb[125].mxu0  ;;  %v2432_v15 = vpop.f32.mrb[157].mxu1 }
 0x25c   : > { %v2433_v24 = vadd.f32 %v2432_v15, %v2144_v35  ;;  %v2154_v12 = vpop.f32.mrb[126].mxu0  ;;  %v3010_v14 = vpop.f32.mrb[158].mxu1 }
 0x25d   : > { %v2441_v50 = vadd.f32 %v3009_v9, %v2152_v44  ;;  %v2155_v40 = vadd.f32 %v2154_v12, %v1866_v8  ;;  %v2156_v11 = vpop.f32.mrb[127].mxu0  ;;  %v2435_v56 = vpop.f32.mrb[159].mxu1 }
 0x25e   : > { %v2507_v32 = vmax.f32 %v2433_v24, 0.0  ;;  %v2436_v17 = vadd.f32 %v2435_v56, %v2147_v2 }
 0x25f   : > { %v2509_v6 = vmax.f32 %v2441_v50, 0.0  ;;  %v2444_v0 = vadd.f32 %v3010_v14, %v2155_v40 }
 0x260   : > { %2571 = vst [vmem:[%s4091_s11 + $0x1e0] sm:$0xff] %v2507_v32  ;;  %v2508_v45 = vmax.f32 %v2436_v17, 0.0 }
 0x261   : > { %2573 = vst [vmem:[%s4091_s11 + $0x1f0] sm:$0xff] %v2509_v6  ;;  %v2510_v34 = vmax.f32 %v2444_v0, 0.0 }
 0x262   : > { %2572 = vst [vmem:[%s4091_s11 + $0x1e8] sm:$0xff] %v2508_v45 }
 0x263   : > { %2574 = vst [vmem:[%s4091_s11 + $0x1f8] sm:$0xff] %v2510_v34 }
 0x264 PF: > { %s13_s14 = sadd.s32 1, %s3499_s14   ;;  %s4364_s12 = smov %s3495_s13 }
 0x265   : > { %p10_p5 = scmp.ge.s32.totalorder %s13_s14, 4   ;;  %s4365_s13 = smov %s4367_s15 }
 0x267   :  { %12 = sbr.rel (!%p10_p5) target bundleno = 2 (0x2), region = 68 }

// kernel: run.4
= control target key start
LH: loop header
LB: loop body
LE: loop exit
PB: predicated region body
PF: predicated region fallthrough
CT: control target
= control target key end

     0   :  { %s431_s9 = smov 0   ;;  %s433_s10 = smov 0   ;;  %s482_s0 = inlined_call_operand.vmem [shape: f32[16,512], index: 0, kind: input, shape index: {}]   ;;  %s483_s1 = inlined_call_operand.vmem [shape: f32[16,512], index: 1, kind: input, shape index: {}]   ;;  %s484_s2 = inlined_call_operand.vmem [shape: f32[1,1024], index: 2, kind: output, shape index: {}]  }
   0x1   :  { %s435_s11 = smov 0  }
   0x2 LB: > { %s24_s12 = sadd.s32 1, %s408_s10  ;;  %p354_p0 = scmp.ge.s32.totalorder %s412_s11, 1  ;;  %s412_s11 = sphi %s435_s11, %s12_s11   ;;  %s408_s10 = sphi %s433_s10, %s488_s10   ;;  %s404_s9 = sphi %s431_s9, %s487_s9  }
   0x3   : > { %p26_p1 = scmp.ge.s32.totalorder %s24_s12, 2  ;;  %p142_p2 = scmp.lt.s32.totalorder %s412_s11, 3 }
   0x5   : > { %s490_s12 = smov (%p26_p1, %s24_s12), 0  ;;  %p143_p3 = pnand %p354_p0, %p142_p2 }
   0x6   : > { %v193_v0 = vlaneseq (!%p143_p3)  ;;  %p171_p4 = scmp.lt.s32.totalorder (!%p143_p3), %s404_s9, 1  ;;  %v414_v2 = vmov (!%p143_p3), 0.0   ;;  %v415_v23 = vmov (!%p143_p3), 1966171168   ;;  %s359_s21 = sshll.u32 (!%p143_p3), %s404_s9, 2 }
   0x7   : > { %146 = sbr.rel (%p143_p3) target bundleno = 56 (0x38), region = 28  ;;  %v246_v24 = vunpack.c.l.s4 (!%p143_p3), %v415_v23  ;;  %p185_p5 = scmp.lt.s32.totalorder (!%p143_p3), %s359_s21, 7 }
   0x8   : > { %vm452_vm0 = vcmp.lt.s32.totalorder (!%p143_p3), %v193_v0, 512  ;;  %v249_v34 = vshrl.u32 (!%p143_p3), %v193_v0, 7 }
   0x9   : > { %197 = vst.msk [vmem:[#allocation2] sm:$0xf] (!%p143_p3), %vm452_vm0, %v414_v2  ;;  %v247_v33 = vunpack.c.0.s8 (!%p143_p3), %v246_v24 }
   0xb   : > { %v250_v43 = vsub.s32 (!%p143_p3), %v247_v33, %v249_v34 }
   0xe   : > { %s172_s13 = scalar_select %p171_p4, %s404_s9, 1 }
   0xf   : > { %s492_s21 = smov (!%p185_p5, %s359_s21), 7 }
  0x10   : > { %s362_s14 = sshll.u32 %s172_s13, 5  ;;  %v214_v53 = vld [vmem:[#allocation2] sm:$0xf]  ;;  %s187_s24 = scalar_lea.vmem %s484_s2, %s492_s21 }
  0x11   : > { %s175_s17 = scalar_lea.vmem %s482_s0, %s362_s14  ;;  %s182_s20 = scalar_lea.vmem %s483_s1, %s362_s14 }
  0x12   : > { %v198_v3 = vld [vmem:[%s175_s17] sm:$0xff]  ;;  %v199_v4 = vld [vmem:[%s175_s17 + $0x8] sm:$0xff]  ;;  %v200_v5 = vld [vmem:[%s175_s17 + $0x10] sm:$0xff] }
  0x13   : > { %v201_v6 = vld [vmem:[%s175_s17 + $0x18] sm:$0xff]  ;;  %v202_v7 = vld [vmem:[%s182_s20] sm:$0xff]  ;;  %v203_v8 = vld [vmem:[%s182_s20 + $0x8] sm:$0xff] }
  0x14   : > { %v204_v9 = vld [vmem:[%s182_s20 + $0x10] sm:$0xff]  ;;  %v205_v10 = vld [vmem:[%s182_s20 + $0x18] sm:$0xff]  ;;  %v206_v11 = vsub.f32 %v198_v3, %v202_v7  ;;  %v207_v12 = vsub.f32 %v199_v4, %v203_v8 }
  0x15   : > { %v208_v13 = vsub.f32 %v200_v5, %v204_v9  ;;  %v209_v14 = vsub.f32 %v201_v6, %v205_v10 }
  0x16   : > { %v210_v15 = vand.u32 2147483647, %v206_v11  ;;  %v211_v16 = vand.u32 2147483647, %v207_v12 }
  0x17   : > { %v212_v17 = vand.u32 2147483647, %v208_v13  ;;  %v213_v18 = vand.u32 2147483647, %v209_v14 }
  0x18   : > { %v215_v19 = vrot.slane %v210_v15, 4  ;;  %v221_v20 = vrot.slane %v211_v16, 4 }
  0x19   : > { %v227_v21 = vrot.slane %v212_v17, 4  ;;  %v233_v22 = vrot.slane %v213_v18, 4 }
  0x1a   : > { %v216_v25 = vadd.f32 %v215_v19, %v210_v15  ;;  %v222_v26 = vadd.f32 %v221_v20, %v211_v16 }
  0x1b   : > { %v228_v27 = vadd.f32 %v227_v21, %v212_v17  ;;  %v234_v28 = vadd.f32 %v233_v22, %v213_v18 }
  0x1c   : > { %v217_v29 = vrot.slane %v216_v25, 2  ;;  %v223_v30 = vrot.slane %v222_v26, 2 }
  0x1d   : > { %v229_v31 = vrot.slane %v228_v27, 2  ;;  %v235_v32 = vrot.slane %v234_v28, 2 }
  0x1e   : > { %v218_v35 = vadd.f32 %v217_v29, %v216_v25  ;;  %v224_v36 = vadd.f32 %v223_v30, %v222_v26 }
  0x1f   : > { %v230_v37 = vadd.f32 %v229_v31, %v228_v27  ;;  %v236_v38 = vadd.f32 %v235_v32, %v234_v28 }
  0x20   : > { %v219_v39 = vrot.slane %v218_v35, 1  ;;  %v225_v40 = vrot.slane %v224_v36, 1 }
  0x21   : > { %v231_v41 = vrot.slane %v230_v37, 1  ;;  %v237_v42 = vrot.slane %v236_v38, 1 }
  0x22   : > { %v220_v44 = vadd.f32 %v219_v39, %v218_v35  ;;  %v226_v45 = vadd.f32 %v225_v40, %v224_v36 }
  0x23   : > { %v232_v46 = vadd.f32 %v231_v41, %v230_v37  ;;  %v238_v47 = vadd.f32 %v237_v42, %v236_v38 }
  0x24   : > { %v243_v48 = vcombine.low %v220_v44, %v226_v45 }
  0x25   : > { %v244_v49 = vcombine.low %v232_v46, %v238_v47 }
  0x26   : > { %v251_v50 = vrot.slane %v243_v48, %v250_v43 }
  0x27   : > { %v258_v51 = vrot.slane %v244_v49, %v250_v43 }
  0x29   : > { %v259_v52 = vcombine.low %v251_v50, %v258_v51 }
  0x2b   : > { %v266_v54 = vrot.slane %v259_v52, %v250_v43 }
  0x2d   : > { %v268_v55 = vadd.f32 %v266_v54, %v214_v53 }
  0x2f   : > { %273 = vst.msk [vmem:[#allocation2] sm:$0xf] %vm452_vm0, %v268_v55 }
  0x36   : > { %v277_v56 = vld [vmem:[#allocation2] sm:$0xf] }
  0x37   : > { %278 = vst.msk [vmem:[%s187_s24] sm:$0xf] %vm452_vm0, %v277_v56 }
  0x38 PF: > { %s12_s11 = sadd.s32 1, %s412_s11   ;;  %s487_s9 = smov %s408_s10 }
  0x39   : > { %p9_p6 = scmp.ge.s32.totalorder %s12_s11, 4   ;;  %s488_s10 = smov %s490_s12 }
  0x3b   :  { %11 = sbr.rel (!%p9_p6) target bundleno = 2 (0x2), region = 69 }

</bundles_post_ra>
